<compile_context>
chip_gen: v7x
topology: tpu7x:2x2x1
jax: 0.10.0
libtpu: 0.0.40
codegen_flags: <defaults>
</compile_context>

<pallas_src>
import jax
import jax.numpy as jnp
from jax.experimental import pallas as pl
from jax.experimental.pallas import tpu as pltpu


def _round_up(v: int, m: int) -> int:
    return ((v + m - 1) // m) * m


def _en_equivariant_mlp_kernel(x_ref, ssel_ref, w1_ref, b1_ref, w2_ref, b2_ref,
                               wp_ref, o_ref):
    # x_ref : (TN, 3*F_in)   vertices on sublanes, flattened (spatial, feature)
    #                        on lanes (native module layout, free reshape).
    # o_ref : (TN, 3*F_out)
    f32 = jnp.float32
    hp = jax.lax.Precision.HIGHEST   # keep f32 numerics (do not relax to DEFAULT)

    x = x_ref[...].astype(f32)                                   # (TN, 3*F_in)

    # contraction(x): E(n)-invariant features, sum over the 3 spatial comps,
    # expressed as (x*x) @ S with a constant 0/1 selector (no lane slicing).
    s = jnp.dot(x * x, ssel_ref[...], precision=hp,
                preferred_element_type=f32)                      # (TN, F_in)
    # norm_function = identity.

    # ExtendedLinearList: Linear -> relu -> Linear -> identity.
    # The second layer's weight/bias are pre-tiled to 3*F_out columns so its
    # output is already h broadcast over the 3 spatial components.
    h = jnp.dot(s, w1_ref[...], precision=hp,
                preferred_element_type=f32) + b1_ref[...]        # (TN, H)
    h = jnp.maximum(h, 0.0)
    h3 = jnp.dot(h, w2_ref[...], precision=hp,
                 preferred_element_type=f32) + b2_ref[...]       # (TN, 3*F_out)

    # Proportional (linear, no bias) on all 3 spatial components at once via a
    # block-diagonal kron(I3, Wp) weight, fused with tensor_product.
    lx = jnp.dot(x, wp_ref[...], precision=hp,
                 preferred_element_type=f32)                     # (TN, 3*F_out)

    o_ref[...] = (lx * h3).astype(o_ref.dtype)


def en_equivariant_mlp(x, w1, b1, w2, b2, wp, *, tile_n=None):
    """x: (N, 3, F_in); w1: (F_in, H); b1: (H,); w2: (H, F_out); b2: (F_out,);
    wp: (F_in, F_out).  Returns (N, 3, F_out)."""
    N, D, F_in = x.shape
    H = w1.shape[1]
    F_out = w2.shape[1]
    assert D == 3

    # --- tile selection -----------------------------------------------------
    # Big tiles amortize the ~0.35 us fixed per-grid-step overhead; cap so the
    # "parallel" grid keeps >= ~4 steps (v7x has 2 TensorCores) and never
    # exceed the (sublane-rounded) problem size.  Vertices sit on sublanes, so
    # tile_n only needs to be a multiple of 8; we round to 128 for tidy DMAs.
    if tile_n is None:
        tile_n = 4096
    tile_n = min(tile_n, max(128, _round_up(pl.cdiv(N, 4), 128)))
    tile_n = max(8, min(tile_n, _round_up(N, 8)))

    # --- scoped-VMEM budget (explicit: v5e default is only 16 MiB) ----------
    # Every (tile_n, <=128)-wide f32 value costs tile_n*512 B in VMEM (lane
    # padding).  ~4 such row-blocks for double-buffered I/O plus a handful of
    # live intermediates; 16x gives comfortable headroom while staying well
    # under v7x's 64 MiB per-TC physical VMEM at the default tile.
    row_bytes = 128 * 4
    vmem_limit = int(min(48 * 1024 * 1024,
                         max(8 * 1024 * 1024, 16 * tile_n * row_bytes)))

    # --- wrapper-side constant / layout prep (no HBM round trips) -----------
    # Contiguous reshapes only (bitcasts, no data movement); the tiny derived
    # weight matrices are one-time constants.
    dt = x.dtype
    x2d = jnp.reshape(x, (N, D * F_in))                     # (N, 3*F_in), free
    ssel = jnp.tile(jnp.eye(F_in, dtype=dt), (D, 1))        # (3*F_in, F_in)
    b1r = jnp.reshape(b1, (1, H))
    w2_big = jnp.tile(w2, (1, D))                           # (H, 3*F_out)
    b2_big = jnp.reshape(jnp.tile(b2, D), (1, D * F_out))   # (1, 3*F_out)
    wp_big = jnp.kron(jnp.eye(D, dtype=dt), wp)             # (3*F_in, 3*F_out)

    grid = (pl.cdiv(N, tile_n),)
    out2d = pl.pallas_call(
        _en_equivariant_mlp_kernel,
        out_shape=jax.ShapeDtypeStruct((N, D * F_out), dt),
        grid=grid,
        in_specs=[
            pl.BlockSpec((tile_n, D * F_in), lambda i: (i, 0)),
            pl.BlockSpec((D * F_in, F_in), lambda i: (0, 0)),
            pl.BlockSpec((F_in, H), lambda i: (0, 0)),
            pl.BlockSpec((1, H), lambda i: (0, 0)),
            pl.BlockSpec((H, D * F_out), lambda i: (0, 0)),
            pl.BlockSpec((1, D * F_out), lambda i: (0, 0)),
            pl.BlockSpec((D * F_in, D * F_out), lambda i: (0, 0)),
        ],
        out_specs=pl.BlockSpec((tile_n, D * F_out), lambda i: (i, 0)),
        compiler_params=pltpu.CompilerParams(
            dimension_semantics=("parallel",),
            vmem_limit_bytes=vmem_limit,
        ),
    )(x2d, ssel, w1, b1r, w2_big, b2_big, wp_big)

    return jnp.reshape(out2d, (N, D, F_out))                # free reshape


def _reference(x, w1, b1, w2, b2, wp):
    hp = jax.lax.Precision.HIGHEST
    s = jnp.sum(x * x, axis=1)                                  # contraction
    h = jnp.maximum(jnp.dot(s, w1, precision=hp) + b1, 0.0)     # Linear + relu
    h = jnp.dot(h, w2, precision=hp) + b2                       # Linear + identity
    lx = jnp.einsum("npf,fg->npg", x, wp, precision=hp)         # Proportional
    return lx * h[:, None, :]                                   # tensor_product


if __name__ == "__main__":
    # nodes = [F_in, H, F_out] = [8, 32, 16], create_linear_weight=True,
    # activations = ["relu", "identity"], bias=True, norm_function="identity".
    # N deliberately not a multiple of the tile so the partial-last-block path
    # is exercised (valid rows written, padded tail masked).
    N, D, F_in, H, F_out = 1000, 3, 8, 32, 16

    key = jax.random.PRNGKey(0)
    kx, k1, kb1, k2, kb2, kp = jax.random.split(key, 6)

    x = jax.random.normal(kx, (N, D, F_in), dtype=jnp.float32)
    w1 = jax.random.normal(k1, (F_in, H), dtype=jnp.float32) * 0.1
    b1 = jax.random.normal(kb1, (H,), dtype=jnp.float32) * 0.1
    w2 = jax.random.normal(k2, (H, F_out), dtype=jnp.float32) * 0.1
    b2 = jax.random.normal(kb2, (F_out,), dtype=jnp.float32) * 0.1
    wp = jax.random.normal(kp, (F_in, F_out), dtype=jnp.float32) * 0.1

    # TODO(synk): dropout layers are identity here (eval mode); training-time
    # stochastic dropout is not implemented in the kernel.

    fwd = jax.jit(en_equivariant_mlp)
    out = fwd(x, w1, b1, w2, b2, wp)
    out = jax.block_until_ready(out)

    ref = _reference(x, w1, b1, w2, b2, wp)
    assert out.shape == (N, D, F_out)
    assert jnp.allclose(out, ref, atol=1e-5, rtol=1e-5), float(
        jnp.max(jnp.abs(out - ref)))

    print("KERNEL_OK")
</pallas_src>

<mosaic_0001>
module attributes {stable_mosaic.version = 11 : i64} {
  func.func @_en_equivariant_mlp_kernel(%arg0: i32, %arg1: memref<256x24xf32, #tpu.memory_space<vmem>>, %arg2: memref<24x8xf32, #tpu.memory_space<vmem>>, %arg3: memref<8x32xf32, #tpu.memory_space<vmem>>, %arg4: memref<1x32xf32, #tpu.memory_space<vmem>>, %arg5: memref<32x48xf32, #tpu.memory_space<vmem>>, %arg6: memref<1x48xf32, #tpu.memory_space<vmem>>, %arg7: memref<24x48xf32, #tpu.memory_space<vmem>>, %arg8: memref<256x48xf32, #tpu.memory_space<vmem>>) attributes {dimension_semantics = [#tpu.dimension_semantics<parallel>], iteration_bounds = array<i64: 4>, scalar_prefetch = 0 : i64, scratch_operands = 0 : i64, tpu.core_type = #tpu.core_type<tc>, window_params = [{transform_indices = @transform_0, window_bounds = array<i64: 256, 24>}, {pipeline_mode = #tpu.pipeline_mode<synchronous>, transform_indices = @transform_1, window_bounds = array<i64: 24, 8>}, {pipeline_mode = #tpu.pipeline_mode<synchronous>, transform_indices = @transform_2, window_bounds = array<i64: 8, 32>}, {pipeline_mode = #tpu.pipeline_mode<synchronous>, transform_indices = @transform_3, window_bounds = array<i64: 1, 32>}, {pipeline_mode = #tpu.pipeline_mode<synchronous>, transform_indices = @transform_4, window_bounds = array<i64: 32, 48>}, {pipeline_mode = #tpu.pipeline_mode<synchronous>, transform_indices = @transform_5, window_bounds = array<i64: 1, 48>}, {pipeline_mode = #tpu.pipeline_mode<synchronous>, transform_indices = @transform_6, window_bounds = array<i64: 24, 48>}, {transform_indices = @transform_7, window_bounds = array<i64: 256, 48>}]} {
    %c0 = arith.constant 0 : index
    %c0_0 = arith.constant 0 : index
    %0 = vector.load %arg1[%c0, %c0_0] : memref<256x24xf32, #tpu.memory_space<vmem>>, vector<256x24xf32>
    %1 = arith.mulf %0, %0 : vector<256x24xf32>
    %c0_1 = arith.constant 0 : index
    %c0_2 = arith.constant 0 : index
    %2 = vector.load %arg2[%c0_1, %c0_2] : memref<24x8xf32, #tpu.memory_space<vmem>>, vector<24x8xf32>
    %cst = arith.constant dense<0.000000e+00> : vector<256x8xf32>
    %3 = tpu.matmul %1, %2, %cst {dimension_numbers = #tpu.dot_dimension_numbers<[1], [0], [0], [1], [0, 0, 1, 1], [], []>, precision = #tpu.contract_precision<fp32>} : vector<256x24xf32>, vector<24x8xf32>, vector<256x8xf32> -> vector<256x8xf32>
    %c0_3 = arith.constant 0 : index
    %c0_4 = arith.constant 0 : index
    %4 = vector.load %arg3[%c0_3, %c0_4] : memref<8x32xf32, #tpu.memory_space<vmem>>, vector<8x32xf32>
    %cst_5 = arith.constant dense<0.000000e+00> : vector<256x32xf32>
    %5 = tpu.matmul %3, %4, %cst_5 {dimension_numbers = #tpu.dot_dimension_numbers<[1], [0], [0], [1], [0, 0, 1, 1], [], []>, precision = #tpu.contract_precision<fp32>} : vector<256x8xf32>, vector<8x32xf32>, vector<256x32xf32> -> vector<256x32xf32>
    %c0_6 = arith.constant 0 : index
    %c0_7 = arith.constant 0 : index
    %6 = vector.load %arg4[%c0_6, %c0_7] : memref<1x32xf32, #tpu.memory_space<vmem>>, vector<1x32xf32>
    %7 = vector.broadcast %6 : vector<1x32xf32> to vector<256x32xf32>
    %8 = arith.addf %5, %7 : vector<256x32xf32>
    %cst_8 = arith.constant 0.000000e+00 : f32
    %9 = vector.broadcast %cst_8 : f32 to vector<256x32xf32>
    %10 = arith.maximumf %8, %9 : vector<256x32xf32>
    %c0_9 = arith.constant 0 : index
    %c0_10 = arith.constant 0 : index
    %11 = vector.load %arg5[%c0_9, %c0_10] : memref<32x48xf32, #tpu.memory_space<vmem>>, vector<32x48xf32>
    %cst_11 = arith.constant dense<0.000000e+00> : vector<256x48xf32>
    %12 = tpu.matmul %10, %11, %cst_11 {dimension_numbers = #tpu.dot_dimension_numbers<[1], [0], [0], [1], [0, 0, 1, 1], [], []>, precision = #tpu.contract_precision<fp32>} : vector<256x32xf32>, vector<32x48xf32>, vector<256x48xf32> -> vector<256x48xf32>
    %c0_12 = arith.constant 0 : index
    %c0_13 = arith.constant 0 : index
    %13 = vector.load %arg6[%c0_12, %c0_13] : memref<1x48xf32, #tpu.memory_space<vmem>>, vector<1x48xf32>
    %14 = vector.broadcast %13 : vector<1x48xf32> to vector<256x48xf32>
    %15 = arith.addf %12, %14 : vector<256x48xf32>
    %c0_14 = arith.constant 0 : index
    %c0_15 = arith.constant 0 : index
    %16 = vector.load %arg7[%c0_14, %c0_15] : memref<24x48xf32, #tpu.memory_space<vmem>>, vector<24x48xf32>
    %cst_16 = arith.constant dense<0.000000e+00> : vector<256x48xf32>
    %17 = tpu.matmul %0, %16, %cst_16 {dimension_numbers = #tpu.dot_dimension_numbers<[1], [0], [0], [1], [0, 0, 1, 1], [], []>, precision = #tpu.contract_precision<fp32>} : vector<256x24xf32>, vector<24x48xf32>, vector<256x48xf32> -> vector<256x48xf32>
    %18 = arith.mulf %17, %15 : vector<256x48xf32>
    %c0_17 = arith.constant 0 : index
    %c0_18 = arith.constant 0 : index
    %19 = vector.load %arg8[%c0_17, %c0_18] : memref<256x48xf32, #tpu.memory_space<vmem>>, vector<256x48xf32>
    tpu.vector_store %arg8[%c0_17, %c0_18], %18 {strides = array<i32>} : memref<256x48xf32, #tpu.memory_space<vmem>>, vector<256x48xf32>,
    return
  }
  func.func @transform_0(%arg0: i32) -> (i32, i32) {
    %c0_i32 = arith.constant 0 : i32
    %c0_i32_0 = arith.constant 0 : i32
    return %arg0, %c0_i32 : i32, i32
  }
  func.func @transform_1(%arg0: i32) -> (i32, i32) {
    %c0_i32 = arith.constant 0 : i32
    %c0_i32_0 = arith.constant 0 : i32
    %c0_i32_1 = arith.constant 0 : i32
    return %c0_i32, %c0_i32_0 : i32, i32
  }
  func.func @transform_2(%arg0: i32) -> (i32, i32) {
    %c0_i32 = arith.constant 0 : i32
    %c0_i32_0 = arith.constant 0 : i32
    %c0_i32_1 = arith.constant 0 : i32
    return %c0_i32, %c0_i32_0 : i32, i32
  }
  func.func @transform_3(%arg0: i32) -> (i32, i32) {
    %c0_i32 = arith.constant 0 : i32
    %c0_i32_0 = arith.constant 0 : i32
    %c0_i32_1 = arith.constant 0 : i32
    return %c0_i32, %c0_i32_0 : i32, i32
  }
  func.func @transform_4(%arg0: i32) -> (i32, i32) {
    %c0_i32 = arith.constant 0 : i32
    %c0_i32_0 = arith.constant 0 : i32
    %c0_i32_1 = arith.constant 0 : i32
    return %c0_i32, %c0_i32_0 : i32, i32
  }
  func.func @transform_5(%arg0: i32) -> (i32, i32) {
    %c0_i32 = arith.constant 0 : i32
    %c0_i32_0 = arith.constant 0 : i32
    %c0_i32_1 = arith.constant 0 : i32
    return %c0_i32, %c0_i32_0 : i32, i32
  }
  func.func @transform_6(%arg0: i32) -> (i32, i32) {
    %c0_i32 = arith.constant 0 : i32
    %c0_i32_0 = arith.constant 0 : i32
    %c0_i32_1 = arith.constant 0 : i32
    return %c0_i32, %c0_i32_0 : i32, i32
  }
  func.func @transform_7(%arg0: i32) -> (i32, i32) {
    %c0_i32 = arith.constant 0 : i32
    %c0_i32_0 = arith.constant 0 : i32
    return %arg0, %c0_i32 : i32, i32
  }
}

</mosaic_0001>

<bundles_post_ra>
// kernel: tile.28
= control target key start
LH: loop header
LB: loop body
LE: loop exit
PB: predicated region body
PF: predicated region fallthrough
CT: control target
= control target key end

     0   :  { %s22_s0 = inlined_call_operand.vmem [shape: f32[16], index: 0, kind: input, shape index: {}]   ;;  %s23_s1 = inlined_call_operand.vmem [shape: f32[3,16], index: 1, kind: output, shape index: {}]  }
   0x1   :  { %v4_v0 = vld [vmem:[%s22_s0] ss:$0 sm:$0xff] }
   0x2   :  { %5 = vst [vmem:[%s23_s1] sm:$0xf] %v4_v0 }

// kernel: tile.29
= control target key start
LH: loop header
LB: loop body
LE: loop exit
PB: predicated region body
PF: predicated region fallthrough
CT: control target
= control target key end

     0   :  { %vm7_vm0 = vcmask 130048   ;;  %s30_s8 = smov 16   ;;  %vm13_vm1 = vcmask 392448   ;;  %vm19_vm2 = vcmask 261248   ;;  %s47_s0 = inlined_call_operand.vmem [shape: f32[3,16], index: 0, kind: input, shape index: {}]   ;;  %s48_s1 = inlined_call_operand.vmem [shape: f32[1,48], index: 1, kind: output, shape index: {}]  }
   0x1   :  { %v4_v0 = vld [vmem:[%s47_s0] sm:$0xf]  ;;  %s29_s0 = smov 32  }
   0x2   :  { %5 = vst [vmem:[#allocation1] sm:$0xf] %v4_v0 }
   0x9   :  { %v10_v1 = vld [vmem:[#allocation1 + $0x2] sm:$0x1]   ;;  %v6_v2 = vld [vmem:[#allocation1] sm:$0x1]   ;;  %v16_v3 = vld [vmem:[#allocation1 + $0x1] sm:$0x1]  }
   0xa   :  { %11 = vrot.lane.b32.xlu0 %v10_v1, %s29_s0  ;;  %8 = vst.msk [vmem:[#allocation0] sm:$0x1] %vm7_vm0, %v6_v2  }
   0xe   :  { %17 = vrot.lane.b32.xlu0 %v16_v3, %s30_s8 }
  0x7c   :  { %v12_v4 = vpop.permute.xlu0 %11  }
  0x7d   :  { %14 = vst.msk [vmem:[#allocation0] sm:$0x1] %vm13_vm1, %v12_v4  }
  0x80   :  { %v18_v5 = vpop.permute.xlu0 %17  }
  0x81   :  { %20 = vst.msk [vmem:[#allocation0] sm:$0x1] %vm19_vm2, %v18_v5  }
  0x88   :  { %v24_v6 = vld [vmem:[#allocation0] sm:$0x1] }
  0x89   :  { %26 = vst [vmem:[%s48_s1] sm:$0x1] %v24_v6 }

// kernel: en_equivariant_mlp.1
= control target key start
LH: loop header
LB: loop body
LE: loop exit
PB: predicated region body
PF: predicated region fallthrough
CT: control target
= control target key end

     0   :  { %s11614_s24 = smov 0   ;;  %s11616_s25 = smov 0   ;;  %s14409_s0 = inlined_call_operand.vmem [shape: f32[1000,24], index: 0, kind: input, shape index: {}]   ;;  %s14410_s1 = inlined_call_operand.vmem [shape: f32[24,8], index: 1, kind: input, shape index: {}]   ;;  %s14411_s2 = inlined_call_operand.vmem [shape: f32[8,32], index: 2, kind: input, shape index: {}]   ;;  %s14412_s3 = inlined_call_operand.vmem [shape: f32[1,32], index: 3, kind: input, shape index: {}]   ;;  %s14413_s4 = inlined_call_operand.vmem [shape: f32[32,48], index: 4, kind: input, shape index: {}]   ;;  %s14414_s5 = inlined_call_operand.vmem [shape: f32[1,48], index: 5, kind: input, shape index: {}]   ;;  %s14415_s6 = inlined_call_operand.vmem [shape: f32[24,48], index: 6, kind: input, shape index: {}]   ;;  %s14416_s7 = inlined_call_operand.vmem [shape: f32[1000,48], index: 7, kind: output, shape index: {}]  }
   0x1   :  { %s11618_s26 = smov 0  }
   0x2 LB: > { %s11627_s27 = sadd.s32 4294967295, %s11540_s26   ;;  %s11629_s28 = sadd.s32 1, %s11540_s26   ;;  %s11540_s26 = sphi %s11618_s26, %s15488_s26   ;;  %s11536_s25 = sphi %s11616_s25, %s15487_s25   ;;  %s11532_s24 = sphi %s11614_s24, %s15486_s24  }
   0x3   : > { %s173_s29 = ssub.s32 %s11540_s26, %s11629_s28  ;;  %s176_s30 = sadd.s32 1, %s11536_s25 }
   0x4   : > { %p174_p0 = scmp.eq.s32.totalorder %s173_s29, 0  ;;  %p186_p1 = scmp.ne.s32.totalorder %s11536_s25, %s11532_s24 }
   0x5   : > { %p187_p2 = scmp.eq.s32.totalorder %s11627_s27, 3  ;;  %p8422_p3 = scmp.ge.s32.totalorder %s11540_s26, 1 }
   0x6   : > { %s11637_s8 = scalar_select %p174_p0, %s11536_s25, %s176_s30  }
   0x7   : > { %p11639_p4 = por %p187_p2, %p186_p1  ;;  %p246_p5 = scmp.lt.s32.totalorder %s11540_s26, 5 }
   0x9   : > { %p247_p6 = pnand %p8422_p3, %p246_p5 }
   0xb   : > { %250 = sbr.rel (%p247_p6) target bundleno = 1788 (0x6fc), region = 48 }
  0x12   : > { %v364_v0 = vld [vmem:[%s14410_s1] sm:$0xff]  ;;  %v365_v1 = vld [vmem:[%s14410_s1 + $0x8] sm:$0xff]  ;;  %v366_v2 = vld [vmem:[%s14410_s1 + $0x10] sm:$0xff]  ;;  %s11653_s16 = sshll.u32 %s11627_s27, 5  ;;  %vm367_vm0 = vcmask 195584   ;;  %vm2277_vm1 = vcmask 64512  }
  0x13   : > { %v465_v3 = vand.u32 4294901760, %v364_v0  ;;  %v468_v4 = vand.u32 4294901760, %v365_v1  ;;  %v11655_v5 = vand.u32 4294901760, %v366_v2  ;;  %p286_p7 = scmp.lt.s32.totalorder %s11653_s16, 124  ;;  %vm4196_vm2 = vcmask 261120   ;;  %s278_s26 = sand.u32 1, %s11532_s24  }
  0x14   : > { %s8423_s10 = sshll.u32 %s278_s26, 8  ;;  %vm8047_vm3 = vcmask 392192   ;;  %s8088_s24 = ssub.s32 (%p11639_p4), 125, %s11653_s16 }
  0x15   : > { %v11658_v6 = vpack.c.bf16 %v468_v4, %v465_v3  ;;  %s287_s17 = scalar_select %p286_p7, %s11653_s16, 124  ;;  %v11661_v7 = vsub.f32 %v364_v0, %v465_v3  ;;  %v11663_v8 = vsub.f32 %v365_v1, %v468_v4  ;;  %v11666_v9 = vsub.f32 %v366_v2, %v11655_v5 }
  0x16   : > { %s14144_s11 = scalar_lea.vmem [#allocation2], %s8423_s10   ;;  %s8445_s12 = sshll.u32 (%p11639_p4), %s11627_s27, 8 }
  0x17   : > { %10567 = vmatprep.subr.bf16.mxu0 %v11658_v6  ;;  %s8425_s18 = sshll.u32 %s287_s17, 3  ;;  %v14433_v10 = vand.u32 4294901760, %v11661_v7  ;;  %v14432_v11 = vand.u32 4294901760, %v11663_v8  ;;  %v11688_v17 = vand.u32 4294901760, %v11666_v9  ;;  %p8089_p8 = scmp.lt.s32.totalorder (%p11639_p4), %s8088_s24, 32 }
  0x18   : > { %10569 = vmatpush3.bf16.msra.mxu0 %v11658_v6  ;;  %s11675_s21 = scalar_lea.vmem %s14409_s0, %s8425_s18  ;;  %s14277_s15 = scalar_lea.vmem (%p11639_p4), %s14416_s7, %s8445_s12  }
  0x19   : > { %9286 = vmatprep.subr.mxu0 %v11655_v5  ;;  %v300_v12 = vld [vmem:[%s11675_s21] sm:$0xff]  ;;  %v856_v13 = vsub.f32 %v11661_v7, %v14433_v10  ;;  %v863_v14 = vsub.f32 %v11663_v8, %v14432_v11  ;;  %v301_v15 = vld [vmem:[%s11675_s21 + $0x8] sm:$0xff]  ;;  %v302_v16 = vld [vmem:[%s11675_s21 + $0x10] sm:$0xff]  ;;  %14906 = vst [vmem:[#allocation3_spill] sm:$0xff] %v11688_v17  ;;  %v870_v36 = vsub.f32 %v11666_v9, %v11688_v17 }
  0x1a   : > { %v332_v18 = vmul.f32 %v300_v12, %v300_v12  ;;  %v333_v19 = vmul.f32 %v301_v15, %v301_v15  ;;  %v334_v20 = vmul.f32 %v302_v16, %v302_v16  ;;  %v303_v21 = vld [vmem:[%s11675_s21 + $0x18] sm:$0xff]  ;;  %v304_v22 = vld [vmem:[%s11675_s21 + $0x20] sm:$0xff]  ;;  %v305_v26 = vld [vmem:[%s11675_s21 + $0x28] sm:$0xff] }
  0x1b   : > { %v857_v23 = vand.u32 4294901760, %v856_v13  ;;  %v864_v24 = vand.u32 4294901760, %v863_v14  ;;  %v335_v25 = vmul.f32 %v303_v21, %v303_v21  ;;  %v336_v30 = vmul.f32 %v304_v22, %v304_v22  ;;  %v306_v34 = vld [vmem:[%s11675_s21 + $0x30] sm:$0xff]  ;;  %v307_v35 = vld [vmem:[%s11675_s21 + $0x38] sm:$0xff]  ;;  %v308_v1 = vld [vmem:[%s11675_s21 + $0x40] sm:$0xff] }
  0x1c   : > { %9287 = vmatpush3.msra.mxu0 %v11655_v5  ;;  %v369_v27 = vsel %vm367_vm0, %v332_v18, 0  ;;  %v372_v28 = vsel %vm367_vm0, %v333_v19, 0  ;;  %v375_v29 = vsel %vm367_vm0, %v334_v20, 0  ;;  %v337_v40 = vmul.f32 %v305_v26, %v305_v26  ;;  %v309_v2 = vld [vmem:[%s11675_s21 + $0x48] sm:$0xff]  ;;  %v310_v14 = vld [vmem:[%s11675_s21 + $0x50] sm:$0xff]  ;;  %v311_v20 = vld [vmem:[%s11675_s21 + $0x58] sm:$0xff] }
  0x1d   : > { %v11697_v31 = vand.u32 4294901760, %v369_v27  ;;  %v10570_v32 = vpack.c.bf16 %v864_v24, %v857_v23  ;;  %v11699_v33 = vand.u32 4294901760, %v372_v28  ;;  %v11705_v37 = vand.u32 4294901760, %v375_v29  ;;  %v312_v21 = vld [vmem:[%s11675_s21 + $0x60] sm:$0xff] }
  0x1e   : > { %v378_v38 = vsel %vm367_vm0, %v335_v25, 0  ;;  %v381_v39 = vsel %vm367_vm0, %v336_v30, 0  ;;  %v384_v46 = vsel %vm367_vm0, %v337_v40, 0  ;;  %v338_v47 = vmul.f32 %v306_v34, %v306_v34 }
  0x1f   : > { %v11710_v41 = vsub.f32 %v369_v27, %v11697_v31  ;;  %10571 = vmatprep.subr.bf16.mxu0 %v10570_v32  ;;  %v11713_v42 = vsub.f32 %v372_v28, %v11699_v33  ;;  %v11715_v43 = vand.u32 4294901760, %v378_v38  ;;  %v11717_v44 = vand.u32 4294901760, %v381_v39 }
  0x20   : > { %v11720_v45 = vsub.f32 %v375_v29, %v11705_v37  ;;  %v339_v48 = vmul.f32 %v307_v35, %v307_v35  ;;  %v11732_v54 = vand.u32 4294901760, %v384_v46  ;;  %v387_v55 = vsel %vm367_vm0, %v338_v47, 0 }
  0x21   : > { %v14431_v49 = vand.u32 4294901760, %v11710_v41  ;;  %v14429_v50 = vand.u32 4294901760, %v11713_v42  ;;  %v11726_v51 = vsub.f32 %v378_v38, %v11715_v43  ;;  %v11729_v52 = vsub.f32 %v381_v39, %v11717_v44 }
  0x22   : > { %v14427_v53 = vand.u32 4294901760, %v11720_v45  ;;  %v390_v56 = vsel %vm367_vm0, %v339_v48, 0  ;;  %v11748_v62 = vsub.f32 %v384_v46, %v11732_v54  ;;  %v11750_v63 = vand.u32 4294901760, %v387_v55 }
  0x23   : > { %14907 = vst [vmem:[#allocation4_spill] sm:$0xff] %v11729_v52  ;;  %v535_v57 = vsub.f32 %v11710_v41, %v14431_v49  ;;  %v545_v58 = vsub.f32 %v11713_v42, %v14429_v50  ;;  %v14426_v59 = vand.u32 4294901760, %v11726_v51  ;;  %v14425_v60 = vand.u32 4294901760, %v11729_v52 }
  0x24   : > { %v555_v61 = vsub.f32 %v11720_v45, %v14427_v53  ;;  %14908 = vst [vmem:[#allocation5_spill] sm:$0xff] %v11748_v62  ;;  %v11752_v0 = vand.u32 4294901760, %v390_v56  ;;  %v14423_v16 = vand.u32 4294901760, %v11748_v62  ;;  %v11765_v18 = vsub.f32 %v387_v55, %v11750_v63 }
  0x25   : > { %v536_v3 = vand.u32 4294901760, %v535_v57  ;;  %v546_v4 = vand.u32 4294901760, %v545_v58  ;;  %v565_v12 = vsub.f32 %v11726_v51, %v14426_v59  ;;  %v575_v13 = vsub.f32 %v11729_v52, %v14425_v60  ;;  %v314_v58 = vld [vmem:[%s11675_s21 + $0x70] sm:$0xff] }
  0x26   : > { %v556_v15 = vand.u32 4294901760, %v555_v61  ;;  %14909 = vst [vmem:[#allocation6_spill] sm:$0xff] %v11765_v18  ;;  %v11768_v19 = vsub.f32 %v390_v56, %v11752_v0  ;;  %v340_v24 = vmul.f32 %v308_v1, %v308_v1  ;;  %v341_v25 = vmul.f32 %v309_v2, %v309_v2  ;;  %v315_v61 = vld [vmem:[%s11675_s21 + $0x78] sm:$0xff] }
  0x27   : > { %9288 = vmatprep.mubr.f32.mxu0 %v536_v3  ;;  %v566_v22 = vand.u32 4294901760, %v565_v12  ;;  %v576_v23 = vand.u32 4294901760, %v575_v13  ;;  %v585_v26 = vsub.f32 %v11748_v62, %v14423_v16  ;;  %v14422_v27 = vand.u32 4294901760, %v11765_v18  ;;  %v320_v16 = vld [vmem:[%s11675_s21 + $0xa0] sm:$0xff] }
  0x28   : > { %14910 = vst [vmem:[#allocation7_spill] sm:$0xff] %v11768_v19  ;;  %9289 = vmatmul.mubr.f32.vlgmr.msra.gmra.mrb[0].mxu0 %v546_v4  ;;  %v14421_v28 = vand.u32 4294901760, %v11768_v19  ;;  %v342_v29 = vmul.f32 %v310_v14, %v310_v14  ;;  %v393_v30 = vsel %vm367_vm0, %v340_v24, 0  ;;  %v396_v34 = vsel %vm367_vm0, %v341_v25, 0 }
  0x29   : > { %10573 = vmatpush3.bf16.msra.mxu0 %v10570_v32  ;;  %9291 = vmatprep.mubr.f32.mxu0 %v556_v15  ;;  %v343_v35 = vmul.f32 %v311_v20, %v311_v20  ;;  %v344_v38 = vmul.f32 %v312_v21, %v312_v21  ;;  %v586_v39 = vand.u32 4294901760, %v585_v26  ;;  %v595_v40 = vsub.f32 %v11765_v18, %v14422_v27  ;;  %v313_v32 = vld [vmem:[%s11675_s21 + $0x68] sm:$0xff] }
  0x2a   : > { %v605_v46 = vsub.f32 %v11768_v19, %v14421_v28  ;;  %v11785_v47 = vand.u32 4294901760, %v393_v30  ;;  %v11788_v48 = vand.u32 4294901760, %v396_v34  ;;  %v399_v55 = vsel %vm367_vm0, %v342_v29, 0 }
  0x2b   : > { %v402_v56 = vsel %vm367_vm0, %v343_v35, 0  ;;  %v405_v57 = vsel %vm367_vm0, %v344_v38, 0  ;;  %v596_v1 = vand.u32 4294901760, %v595_v40  ;;  %v11798_v4 = vand.u32 4294901760, %v399_v55 }
  0x2c   : > { %9292 = vmatmul.mubr.f32.gmra.mrb[2].mxu0 %v566_v22  ;;  %v606_v2 = vand.u32 4294901760, %v605_v46  ;;  %v11796_v3 = vsub.f32 %v393_v30, %v11785_v47  ;;  %v11801_v12 = vsub.f32 %v396_v34, %v11788_v48  ;;  %v11803_v13 = vand.u32 4294901760, %v402_v56 }
  0x2d   : > { %9294 = vmatprep.mubr.f32.mxu0 %v576_v23  ;;  %v11805_v14 = vand.u32 4294901760, %v405_v57  ;;  %v345_v15 = vmul.f32 %v313_v32, %v313_v32  ;;  %v11809_v21 = vsub.f32 %v399_v55, %v11798_v4  ;;  %v346_v22 = vmul.f32 %v314_v58, %v314_v58  ;;  %v316_v55 = vld [vmem:[%s11675_s21 + $0x80] sm:$0xff] }
  0x2e   : > { %14911 = vst [vmem:[#allocation8_spill] sm:$0xff] %v11796_v3  ;;  %14912 = vst [vmem:[#allocation9_spill] sm:$0xff] %v11801_v12  ;;  %v14420_v20 = vand.u32 4294901760, %v11796_v3  ;;  %v347_v24 = vmul.f32 %v315_v61, %v315_v61  ;;  %v14417_v25 = vand.u32 4294901760, %v11801_v12  ;;  %v11813_v23 = vsub.f32 %v402_v56, %v11803_v13 }
  0x2f   : > { %14913 = vst [vmem:[#allocation10_spill] sm:$0xff] %v11809_v21  ;;  %v11816_v26 = vsub.f32 %v405_v57, %v11805_v14  ;;  %v408_v29 = vsel %vm367_vm0, %v345_v15, 0  ;;  %v14418_v34 = vand.u32 4294901760, %v11809_v21  ;;  %v411_v38 = vsel %vm367_vm0, %v346_v22, 0 }
  0x30   : > { %14914 = vst [vmem:[#allocation11_spill] sm:$0xff] %v11813_v23  ;;  %9295 = vmatmul.mubr.f32.gmra.mrb[4].mxu0 %v586_v39  ;;  %v615_v30 = vsub.f32 %v11796_v3, %v14420_v20  ;;  %v11823_v35 = vand.u32 4294901760, %v408_v29  ;;  %v625_v40 = vsub.f32 %v11801_v12, %v14417_v25  ;;  %v14419_v46 = vand.u32 4294901760, %v11813_v23  ;;  %v317_v25 = vld [vmem:[%s11675_s21 + $0x88] sm:$0xff]  ;;  %v319_v20 = vld [vmem:[%s11675_s21 + $0x98] sm:$0xff] }
  0x31   : > { %14915 = vst [vmem:[#allocation12_spill] sm:$0xff] %v11816_v26  ;;  %9297 = vmatprep.mubr.f32.mxu0 %v596_v1  ;;  %v14424_v39 = vand.u32 4294901760, %v11816_v26  ;;  %v11831_v32 = vand.u32 4294901760, %v411_v38  ;;  %v635_v57 = vsub.f32 %v11809_v21, %v14418_v34  ;;  %v414_v61 = vsel %vm367_vm0, %v347_v24, 0  ;;  %v329_v21 = vld [vmem:[%s11675_s21 + $0xe8] sm:$0xff]  ;;  %v331_v12 = vld [vmem:[%s11675_s21 + $0xf8] sm:$0xff] }
  0x32   : > { %v616_v56 = vand.u32 4294901760, %v615_v30  ;;  %v11838_v58 = vsub.f32 %v408_v29, %v11823_v35  ;;  %v626_v1 = vand.u32 4294901760, %v625_v40  ;;  %v645_v15 = vsub.f32 %v11813_v23, %v14419_v46  ;;  %v318_v46 = vld [vmem:[%s11675_s21 + $0x90] sm:$0xff] }
  0x33   : > { %v11845_v22 = vsub.f32 %v411_v38, %v11831_v32  ;;  %v11850_v30 = vpack.c.bf16 %v11663_v8, %v11661_v7  ;;  %v655_v29 = vsub.f32 %v11816_v26, %v14424_v39  ;;  %v11856_v40 = vand.u32 4294901760, %v414_v61  ;;  %v327_v26 = vld [vmem:[%s11675_s21 + $0xd8] sm:$0xff] }
  0x34   : > { %14916 = vst [vmem:[#allocation13_spill] sm:$0xff] %v11838_v58  ;;  %9298 = vmatmul.mubr.f32.gmra.mrb[6].mxu0 %v606_v2  ;;  %v14428_v24 = vand.u32 4294901760, %v11838_v58  ;;  %v348_v34 = vmul.f32 %v316_v55, %v316_v55  ;;  %v636_v38 = vand.u32 4294901760, %v635_v57  ;;  %v646_v28 = vand.u32 4294901760, %v645_v15 }
  0x35   : > { %14917 = vst [vmem:[#allocation14_spill] sm:$0xff] %v11845_v22  ;;  %9300 = vmatprep.mubr.f32.mxu0 %v616_v56  ;;  %v14430_v27 = vand.u32 4294901760, %v11845_v22  ;;  %v871_v2 = vand.u32 4294901760, %v870_v36  ;;  %v11869_v60 = vsub.f32 %v414_v61, %v11856_v40  ;;  %v349_v59 = vmul.f32 %v317_v25, %v317_v25 }
  0x36   : > { %v665_v39 = vsub.f32 %v11838_v58, %v14428_v24  ;;  %v417_v55 = vsel %vm367_vm0, %v348_v34, 0  ;;  %v350_v36 = vmul.f32 %v318_v46, %v318_v46  ;;  %v351_v15 = vmul.f32 %v319_v20, %v319_v20  ;;  %v321_v46 = vld [vmem:[%s11675_s21 + $0xa8] sm:$0xff]  ;;  %v322_v20 = vld [vmem:[%s11675_s21 + $0xb0] sm:$0xff] }
  0x37   : > { %14918 = vst [vmem:[#allocation15_spill] sm:$0xff] %v11869_v60  ;;  %v675_v56 = vsub.f32 %v11845_v22, %v14430_v27  ;;  %v11875_v57 = vand.u32 4294901760, %v417_v55  ;;  %9340 = vmatprep.subr.mxu0 %v871_v2  ;;  %v656_v53 = vand.u32 4294901760, %v655_v29  ;;  %v14436_v24 = vand.u32 4294901760, %v11869_v60 }
  0x38   : > { %9301 = vmatmul.mubr.f32.gmra.mrb[8].mxu0 %v626_v1  ;;  %v420_v61 = vsel %vm367_vm0, %v349_v59, 0  ;;  %v352_v50 = vmul.f32 %v320_v16, %v320_v16  ;;  %v666_v25 = vand.u32 4294901760, %v665_v39  ;;  %v423_v49 = vsel %vm367_vm0, %v350_v36, 0 }
  0x39   : > { %9303 = vmatprep.mubr.f32.mxu0 %v636_v38  ;;  %v11880_v34 = vsub.f32 %v417_v55, %v11875_v57  ;;  %v11882_v27 = vand.u32 4294901760, %v420_v61  ;;  %9341 = vmatpush3.msra.mxu0 %v871_v2  ;;  %v676_v1 = vand.u32 4294901760, %v675_v56  ;;  %v11887_v29 = vand.u32 4294901760, %v423_v49  ;;  %v323_v55 = vld [vmem:[%s11675_s21 + $0xb8] sm:$0xff] }
  0x3a   : > { %v426_v11 = vsel %vm367_vm0, %v351_v15, 0  ;;  %v429_v59 = vsel %vm367_vm0, %v352_v50, 0  ;;  %10575 = vmatprep.subr.bf16.mxu0 %v11850_v30  ;;  %v685_v56 = vsub.f32 %v11869_v60, %v14436_v24  ;;  %v353_v36 = vmul.f32 %v321_v46, %v321_v46 }
  0x3b   : > { %14919 = vst [vmem:[#allocation16_spill] sm:$0xff] %v11880_v34  ;;  %v14437_v16 = vand.u32 4294901760, %v11880_v34  ;;  %v11894_v39 = vsub.f32 %v420_v61, %v11882_v27  ;;  %v11896_v38 = vand.u32 4294901760, %v426_v11  ;;  %v11898_v2 = vand.u32 4294901760, %v429_v59 }
  0x3c   : > { %9304 = vmatmul.mubr.f32.gmra.mrb[10].mxu0 %v646_v28  ;;  %v11905_v50 = vsub.f32 %v423_v49, %v11887_v29  ;;  %v354_v15 = vmul.f32 %v322_v20, %v322_v20  ;;  %v432_v49 = vsel %vm367_vm0, %v353_v36, 0  ;;  %v363_v52 = vmul.f32 %v331_v12, %v331_v12 }
  0x3d   : > { %14920 = vst [vmem:[#allocation17_spill] sm:$0xff] %v11894_v39  ;;  %9306 = vmatprep.mubr.f32.mxu0 %v656_v53  ;;  %v695_v61 = vsub.f32 %v11880_v34, %v14437_v16  ;;  %v14444_v10 = vand.u32 4294901760, %v11894_v39  ;;  %v11912_v28 = vsub.f32 %v426_v11, %v11896_v38  ;;  %v11915_v17 = vsub.f32 %v429_v59, %v11898_v2  ;;  %v324_v34 = vld [vmem:[%s11675_s21 + $0xc0] sm:$0xff]  ;;  %v326_v11 = vld [vmem:[%s11675_s21 + $0xd0] sm:$0xff] }
  0x3e   : > { %14921 = vst [vmem:[#allocation18_spill] sm:$0xff] %v11905_v50  ;;  %v435_v46 = vsel %vm367_vm0, %v354_v15, 0  ;;  %v355_v53 = vmul.f32 %v323_v55, %v323_v55  ;;  %v686_v59 = vand.u32 4294901760, %v685_v56  ;;  %v11926_v60 = vand.u32 4294901760, %v432_v49  ;;  %v325_v15 = vld [vmem:[%s11675_s21 + $0xc8] sm:$0xff] }
  0x3f   : > { %14922 = vst [vmem:[#allocation19_spill] sm:$0xff] %v11912_v28  ;;  %14923 = vst [vmem:[#allocation20_spill] sm:$0xff] %v11915_v17  ;;  %v705_v20 = vsub.f32 %v11894_v39, %v14444_v10  ;;  %v11928_v24 = vand.u32 4294901760, %v435_v46  ;;  %v696_v55 = vand.u32 4294901760, %v695_v61  ;;  %v14924_v22 = vand.u32 4294901760, %v11905_v50 }
  0x40   : > { %9307 = vmatmul.mubr.f32.gmra.mrb[12].mxu0 %v666_v25  ;;  %v438_v36 = vsel %vm367_vm0, %v355_v53, 0  ;;  %v11939_v25 = vsub.f32 %v432_v49, %v11926_v60  ;;  %v356_v58 = vmul.f32 %v324_v34, %v324_v34  ;;  %v14928_v53 = vand.u32 4294901760, %v11912_v28 }
  0x41   : > { %9309 = vmatprep.mubr.f32.mxu0 %v676_v1  ;;  %v715_v10 = vsub.f32 %v11905_v50, %v14924_v22  ;;  %v11935_v16 = vand.u32 4294901760, %v438_v36  ;;  %v706_v39 = vand.u32 4294901760, %v705_v20  ;;  %v11942_v56 = vsub.f32 %v435_v46, %v11928_v24 }
  0x42   : > { %14926 = vst [vmem:[#allocation22_spill] sm:$0xff] %v11939_v25  ;;  %v725_v1 = vsub.f32 %v11912_v28, %v14928_v53  ;;  %v14929_v61 = vand.u32 4294901760, %v11915_v17  ;;  %v357_v20 = vmul.f32 %v325_v15, %v325_v15  ;;  %v14461_v49 = vand.u32 4294901760, %v11939_v25 }
  0x43   : > { %14925 = vst [vmem:[#allocation21_spill] sm:$0xff] %v11935_v16  ;;  %14927 = vst [vmem:[#allocation23_spill] sm:$0xff] %v11942_v56  ;;  %v11952_v50 = vsub.f32 %v438_v36, %v11935_v16  ;;  %v441_v34 = vsel %vm367_vm0, %v356_v58, 0  ;;  %v358_v23 = vmul.f32 %v326_v11, %v326_v11  ;;  %v716_v53 = vand.u32 4294901760, %v715_v10  ;;  %v328_v11 = vld [vmem:[%s11675_s21 + $0xe0] sm:$0xff] }
  0x44   : > { %v735_v22 = vsub.f32 %v11915_v17, %v14929_v61  ;;  %9310 = vmatmul.mubr.f32.gmra.mrb[14].mxu0 %v686_v59  ;;  %v11957_v28 = vand.u32 4294901760, %v441_v34  ;;  %v444_v61 = vsel %vm367_vm0, %v357_v20, 0  ;;  %v359_v36 = vmul.f32 %v327_v26, %v327_v26 }
  0x45   : > { %9312 = vmatprep.mubr.f32.mxu0 %v696_v55  ;;  %v745_v59 = vsub.f32 %v11939_v25, %v14461_v49  ;;  %v11964_v46 = vand.u32 4294901760, %v444_v61  ;;  %v447_v58 = vsel %vm367_vm0, %v358_v23, 0  ;;  %v14932_v55 = vand.u32 4294901760, %v11942_v56  ;;  %v330_v49 = vld [vmem:[%s11675_s21 + $0xf0] sm:$0xff] }
  0x46   : > { %14930 = vst [vmem:[#allocation24_spill] sm:$0xff] %v11957_v28  ;;  %v11972_v17 = vsub.f32 %v441_v34, %v11957_v28  ;;  %v11974_v26 = vand.u32 4294901760, %v447_v58  ;;  %v450_v20 = vsel %vm367_vm0, %v359_v36, 0  ;;  %v726_v15 = vand.u32 4294901760, %v725_v1 }
  0x47   : > { %14931 = vst [vmem:[#allocation25_spill] sm:$0xff] %v11964_v46  ;;  %v755_v10 = vsub.f32 %v11942_v56, %v14932_v55  ;;  %v11980_v25 = vsub.f32 %v444_v61, %v11964_v46  ;;  %v11982_v23 = vand.u32 4294901760, %v450_v20  ;;  %v736_v3 = vand.u32 4294901760, %v735_v22 }
  0x48   : > { %14933 = vst [vmem:[#allocation26_spill] sm:$0xff] %v11974_v26  ;;  %9313 = vmatmul.mubr.f32.gmra.mrb[16].mxu0 %v706_v39  ;;  %v14478_v55 = vand.u32 4294901760, %v11972_v17  ;;  %v11987_v34 = vsub.f32 %v447_v58, %v11974_v26  ;;  %v360_v56 = vmul.f32 %v328_v11, %v328_v11  ;;  %v14935_v36 = vand.u32 4294901760, %v11952_v50 }
  0x49   : > { %14934 = vst [vmem:[#allocation27_spill] sm:$0xff] %v11982_v23  ;;  %9315 = vmatprep.mubr.f32.mxu0 %v716_v53  ;;  %v361_v39 = vmul.f32 %v329_v21, %v329_v21  ;;  %v362_v1 = vmul.f32 %v330_v49, %v330_v49  ;;  %v746_v18 = vand.u32 4294901760, %v745_v59  ;;  %v756_v61 = vand.u32 4294901760, %v755_v10 }
  0x4a   : > { %v765_v19 = vsub.f32 %v11952_v50, %v14935_v36  ;;  %v453_v62 = vsel %vm367_vm0, %v360_v56, 0  ;;  %v14479_v22 = vand.u32 4294901760, %v11980_v25  ;;  %v11995_v53 = vsub.f32 %v450_v20, %v11982_v23 }
  0x4b   : > { %v11997_v58 = vand.u32 4294901760, %v453_v62  ;;  %v456_v11 = vsel %vm367_vm0, %v361_v39, 0  ;;  %v775_v21 = vsub.f32 %v11972_v17, %v14478_v55  ;;  %v14480_v49 = vand.u32 4294901760, %v11987_v34 }
  0x4c   : > { %9316 = vmatmul.mubr.f32.gmra.mrb[18].mxu0 %v726_v15  ;;  %14936 = vst [vmem:[#allocation28_spill] sm:$0xff] %v11995_v53  ;;  %v12004_v59 = vand.u32 4294901760, %v456_v11  ;;  %v459_v12 = vsel %vm367_vm0, %v362_v1, 0  ;;  %v766_v10 = vand.u32 4294901760, %v765_v19  ;;  %v462_v20 = vsel %vm367_vm0, %v363_v52, 0 }
  0x4d   : > { %14937 = vst [vmem:[#allocation29_spill] sm:$0xff] %v11997_v58  ;;  %9318 = vmatprep.mubr.f32.mxu0 %v736_v3  ;;  %v12008_v56 = vsub.f32 %v453_v62, %v11997_v58  ;;  %v12010_v15 = vand.u32 4294901760, %v459_v12  ;;  %v785_v3 = vsub.f32 %v11980_v25, %v14479_v22  ;;  %v14481_v36 = vand.u32 4294901760, %v11995_v53 }
  0x4e   : > { %14938 = vst [vmem:[#allocation30_spill] sm:$0xff] %v12004_v59  ;;  %v12018_v39 = vsub.f32 %v456_v11, %v12004_v59  ;;  %v12020_v55 = vand.u32 4294901760, %v462_v20  ;;  %v776_v62 = vand.u32 4294901760, %v775_v21  ;;  %v795_v19 = vsub.f32 %v11987_v34, %v14480_v49 }
  0x4f   : > { %14939 = vst [vmem:[#allocation31_spill] sm:$0xff] %v12010_v15  ;;  %v14487_v52 = vand.u32 4294901760, %v12008_v56  ;;  %v786_v1 = vand.u32 4294901760, %v785_v3  ;;  %v805_v11 = vsub.f32 %v11995_v53, %v14481_v36 }
  0x50   : > { %9319 = vmatmul.mubr.f32.gmra.mrb[20].mxu0 %v746_v18  ;;  %14940 = vst [vmem:[#allocation32_spill] sm:$0xff] %v12020_v55  ;;  %v12027_v18 = vsub.f32 %v459_v12, %v12010_v15  ;;  %v14486_v22 = vand.u32 4294901760, %v12018_v39  ;;  %v796_v21 = vand.u32 4294901760, %v795_v19 }
  0x51   : > { %9321 = vmatprep.mubr.f32.mxu0 %v756_v61  ;;  %v12034_v61 = vsub.f32 %v462_v20, %v12020_v55  ;;  %v815_v49 = vsub.f32 %v12008_v56, %v14487_v52  ;;  %v14959_v52 = vld [vmem:[#allocation20_spill] sm:$0xff] }
  0x52   : > { %v14485_v12 = vand.u32 4294901760, %v12027_v18  ;;  %v825_v3 = vsub.f32 %v12018_v39, %v14486_v22  ;;  %v14958_v22 = vld [vmem:[#allocation19_spill] sm:$0xff] }
  0x53   : > { %v14484_v36 = vand.u32 4294901760, %v12034_v61  ;;  %v816_v53 = vand.u32 4294901760, %v815_v49  ;;  %v14943_v49 = vld [vmem:[#allocation4_spill] sm:$0xff] }
  0x54   : > { %9322 = vmatmul.mubr.f32.gmra.mrb[22].mxu0 %v766_v10  ;;  %v806_v10 = vand.u32 4294901760, %v805_v11  ;;  %v835_v20 = vsub.f32 %v12027_v18, %v14485_v12  ;;  %v14957_v12 = vld [vmem:[#allocation18_spill] sm:$0xff] }
  0x55   : > { %9324 = vmatprep.mubr.f32.mxu0 %v776_v62  ;;  %v826_v62 = vand.u32 4294901760, %v825_v3  ;;  %v845_v19 = vsub.f32 %v12034_v61, %v14484_v36  ;;  %v14946_v3 = vld [vmem:[#allocation7_spill] sm:$0xff]  ;;  %v14956_v36 = vld [vmem:[#allocation17_spill] sm:$0xff] }
  0x57   : > { %v846_v11 = vand.u32 4294901760, %v845_v19  ;;  %v14951_v19 = vld [vmem:[#allocation12_spill] sm:$0xff] }
  0x58   : > { %9325 = vmatmul.mubr.f32.gmra.mrb[24].mxu0 %v786_v1  ;;  %v836_v1 = vand.u32 4294901760, %v835_v20  ;;  %v14947_v20 = vld [vmem:[#allocation8_spill] sm:$0xff] }
  0x59   : > { %9327 = vmatprep.mubr.f32.mxu0 %v796_v21  ;;  %v14944_v21 = vld [vmem:[#allocation5_spill] sm:$0xff] }
  0x5c   : > { %9328 = vmatmul.mubr.f32.gmra.mrb[26].mxu0 %v806_v10  ;;  %v14945_v10 = vld [vmem:[#allocation6_spill] sm:$0xff] }
  0x5d   : > { %9330 = vmatprep.mubr.f32.mxu0 %v816_v53 }
  0x60   : > { %9331 = vmatmul.mubr.f32.gmra.mrb[28].mxu0 %v826_v62  ;;  %v14948_v62 = vld [vmem:[#allocation9_spill] sm:$0xff] }
  0x61   : > { %9333 = vmatprep.mubr.f32.mxu0 %v836_v1  ;;  %v14952_v1 = vld [vmem:[#allocation13_spill] sm:$0xff] }
  0x64   : > { %9334 = vmatmul.mubr.f32.gmra.mrb[30].mxu0 %v846_v11  ;;  %v14953_v11 = vld [vmem:[#allocation14_spill] sm:$0xff] }
  0x65   : > { %9342 = vmatprep.mubr.f32.mxu0 %v11697_v31 }
  0x68   : > { %9343 = vmatmul.mubr.f32.vlgmr.msra.gmra.mrb[0].mxu0 %v11699_v33 }
  0x69   : > { %10577 = vmatpush3.bf16.msra.mxu0 %v11850_v30  ;;  %9345 = vmatprep.mubr.f32.mxu0 %v11705_v37  ;;  %v14942_v30 = vand.u32 4294901760, %v11663_v8  ;;  %v14950_v8 = vld [vmem:[#allocation11_spill] sm:$0xff] }
  0x6a   : > { %9394 = vmatprep.subr.mxu0 %v11666_v9 }
  0x6c   : > { %9346 = vmatmul.mubr.f32.gmra.mrb[2].mxu0 %v11715_v43 }
  0x6d   : > { %9348 = vmatprep.mubr.f32.mxu0 %v11717_v44  ;;  %9395 = vmatpush3.msra.mxu0 %v11666_v9  ;;  %v14941_v9 = vand.u32 4294901760, %v11661_v7  ;;  %v14949_v7 = vld [vmem:[#allocation10_spill] sm:$0xff] }
  0x6e   : > { %10579 = vmatprep.subr.bf16.mxu0 %v11658_v6 }
  0x6f   : > { %v10582_v53 = vpack.c.bf16 %v14942_v30, %v14941_v9  ;;  %v14954_v9 = vld [vmem:[#allocation15_spill] sm:$0xff]  ;;  %v14955_v30 = vld [vmem:[#allocation16_spill] sm:$0xff] }
  0x70   : > { %9349 = vmatmul.mubr.f32.gmra.mrb[4].mxu0 %v11732_v54 }
  0x71   : > { %9351 = vmatprep.mubr.f32.mxu0 %v11750_v63 }
  0x74   : > { %9352 = vmatmul.mubr.f32.gmra.mrb[6].mxu0 %v11752_v0 }
  0x75   : > { %9354 = vmatprep.mubr.f32.mxu0 %v11785_v47 }
  0x78   : > { %9355 = vmatmul.mubr.f32.gmra.mrb[8].mxu0 %v11788_v48 }
  0x79   : > { %9357 = vmatprep.mubr.f32.mxu0 %v11798_v4 }
  0x7c   : > { %9358 = vmatmul.mubr.f32.gmra.mrb[10].mxu0 %v11803_v13 }
  0x7d   : > { %9360 = vmatprep.mubr.f32.mxu0 %v11805_v14 }
  0x80   : > { %9361 = vmatmul.mubr.f32.gmra.mrb[12].mxu0 %v11823_v35 }
  0x81   : > { %9363 = vmatprep.mubr.f32.mxu0 %v11831_v32 }
  0x84   : > { %9364 = vmatmul.mubr.f32.gmra.mrb[14].mxu0 %v11856_v40 }
  0x85   : > { %9366 = vmatprep.mubr.f32.mxu0 %v11875_v57 }
  0x88   : > { %9367 = vmatmul.mubr.f32.gmra.mrb[16].mxu0 %v11882_v27 }
  0x89   : > { %9369 = vmatprep.mubr.f32.mxu0 %v11887_v29 }
  0x8c   : > { %9370 = vmatmul.mubr.f32.gmra.mrb[18].mxu0 %v11896_v38 }
  0x8d   : > { %9372 = vmatprep.mubr.f32.mxu0 %v11898_v2 }
  0x90   : > { %9373 = vmatmul.mubr.f32.gmra.mrb[20].mxu0 %v11926_v60 }
  0x91   : > { %9375 = vmatprep.mubr.f32.mxu0 %v11928_v24 }
  0x94   : > { %9376 = vmatmul.mubr.f32.gmra.mrb[22].mxu0 %v11935_v16  ;;  %v14968_v16 = vand.u32 4294901760, %v14943_v49 }
  0x95   : > { %9378 = vmatprep.mubr.f32.mxu0 %v11957_v28  ;;  %v14967_v28 = vand.u32 4294901760, %v11726_v51 }
  0x98   : > { %9379 = vmatmul.mubr.f32.gmra.mrb[24].mxu0 %v11964_v46  ;;  %v14966_v46 = vld [vmem:[#allocation3_spill] sm:$0xff] }
  0x99   : > { %9381 = vmatprep.mubr.f32.mxu0 %v11974_v26  ;;  %v14965_v26 = vand.u32 4294901760, %v11720_v45 }
  0x9c   : > { %9382 = vmatmul.mubr.f32.gmra.mrb[26].mxu0 %v11982_v23  ;;  %v14964_v23 = vand.u32 4294901760, %v11713_v42 }
  0x9d   : > { %9384 = vmatprep.mubr.f32.mxu0 %v11997_v58  ;;  %v14963_v58 = vand.u32 4294901760, %v11710_v41 }
  0xa0   : > { %9385 = vmatmul.mubr.f32.gmra.mrb[28].mxu0 %v12004_v59  ;;  %v14962_v59 = vld [vmem:[#allocation28_spill] sm:$0xff] }
  0xa1   : > { %9387 = vmatprep.mubr.f32.mxu0 %v12010_v15  ;;  %v14961_v15 = vld [vmem:[#allocation23_spill] sm:$0xff] }
  0xa4   : > { %9388 = vmatmul.mubr.f32.gmra.mrb[30].mxu0 %v12020_v55  ;;  %v14960_v55 = vld [vmem:[#allocation22_spill] sm:$0xff] }
  0xa5   : > { %9396 = vmatprep.mubr.f32.mxu0 %v11710_v41  ;;  %v14969_v41 = vand.u32 4294901760, %v14944_v21 }
  0xa8   : > { %9397 = vmatmul.mubr.f32.vlgmr.msra.gmra.mrb[0].mxu0 %v11713_v42  ;;  %v14970_v42 = vand.u32 4294901760, %v14945_v10 }
  0xa9   : > { %10581 = vmatpush3.bf16.msra.mxu0 %v11658_v6  ;;  %9399 = vmatprep.mubr.f32.mxu0 %v11720_v45  ;;  %v14971_v45 = vand.u32 4294901760, %v14946_v3 }
  0xaa   : > { %9448 = vmatprep.subr.mxu0 %v11655_v5 }
  0xac   : > { %9400 = vmatmul.mubr.f32.gmra.mrb[2].mxu0 %v11726_v51  ;;  %v14973_v51 = vand.u32 4294901760, %v14948_v62 }
  0xad   : > { %9402 = vmatprep.mubr.f32.mxu0 %v14943_v49  ;;  %9449 = vmatpush3.msra.mxu0 %v11655_v5  ;;  %v14980_v49 = vand.u32 4294901760, %v14955_v30 }
  0xae   : > { %10583 = vmatprep.subr.bf16.mxu0 %v10582_v53 }
  0xb0   : > { %9403 = vmatmul.mubr.f32.gmra.mrb[4].mxu0 %v14944_v21  ;;  %v14981_v21 = vand.u32 4294901760, %v14956_v36 }
  0xb1   : > { %9405 = vmatprep.mubr.f32.mxu0 %v14945_v10  ;;  %v14982_v10 = vand.u32 4294901760, %v14957_v12 }
  0xb4   : > { %9406 = vmatmul.mubr.f32.gmra.mrb[6].mxu0 %v14946_v3  ;;  %v14983_v3 = vand.u32 4294901760, %v14958_v22 }
  0xb5   : > { %9408 = vmatprep.mubr.f32.mxu0 %v14947_v20 }
  0xb8   : > { %9409 = vmatmul.mubr.f32.gmra.mrb[8].mxu0 %v14948_v62  ;;  %v14985_v62 = vand.u32 4294901760, %v14960_v55 }
  0xb9   : > { %9411 = vmatprep.mubr.f32.mxu0 %v14949_v7 }
  0xbc   : > { %9412 = vmatmul.mubr.f32.gmra.mrb[10].mxu0 %v14950_v8 }
  0xbd   : > { %9414 = vmatprep.mubr.f32.mxu0 %v14951_v19 }
  0xc0   : > { %9415 = vmatmul.mubr.f32.gmra.mrb[12].mxu0 %v14952_v1 }
  0xc1   : > { %9417 = vmatprep.mubr.f32.mxu0 %v14953_v11 }
  0xc4   : > { %9418 = vmatmul.mubr.f32.gmra.mrb[14].mxu0 %v14954_v9 }
  0xc5   : > { %9420 = vmatprep.mubr.f32.mxu0 %v14955_v30 }
  0xc8   : > { %9421 = vmatmul.mubr.f32.gmra.mrb[16].mxu0 %v14956_v36  ;;  %v14988_v36 = vand.u32 4294901760, %v11972_v17 }
  0xc9   : > { %9423 = vmatprep.mubr.f32.mxu0 %v14957_v12  ;;  %v14989_v12 = vand.u32 4294901760, %v11980_v25 }
  0xcc   : > { %9424 = vmatmul.mubr.f32.gmra.mrb[18].mxu0 %v14958_v22  ;;  %v14990_v22 = vand.u32 4294901760, %v11987_v34 }
  0xcd   : > { %9426 = vmatprep.mubr.f32.mxu0 %v14959_v52 }
  0xd0   : > { %9427 = vmatmul.mubr.f32.gmra.mrb[20].mxu0 %v14960_v55  ;;  %v14992_v55 = vand.u32 4294901760, %v12008_v56 }
  0xd1   : > { %9429 = vmatprep.mubr.f32.mxu0 %v14961_v15 }
  0xd4   : > { %9430 = vmatmul.mubr.f32.gmra.mrb[22].mxu0 %v11952_v50 }
  0xd5   : > { %9432 = vmatprep.mubr.f32.mxu0 %v11972_v17  ;;  %v14995_v17 = vand.u32 4294901760, %v12034_v61 }
  0xd8   : > { %9433 = vmatmul.mubr.f32.gmra.mrb[24].mxu0 %v11980_v25  ;;  %v14998_v25 = vld [vmem:[#allocation25_spill] sm:$0xff] }
  0xd9   : > { %9435 = vmatprep.mubr.f32.mxu0 %v11987_v34  ;;  %v14999_v34 = vld [vmem:[#allocation26_spill] sm:$0xff] }
  0xdc   : > { %9436 = vmatmul.mubr.f32.gmra.mrb[26].mxu0 %v14962_v59 }
  0xdd   : > { %9438 = vmatprep.mubr.f32.mxu0 %v12008_v56  ;;  %v15001_v56 = vld [vmem:[#allocation29_spill] sm:$0xff] }
  0xe0   : > { %9439 = vmatmul.mubr.f32.gmra.mrb[28].mxu0 %v12018_v39 }
  0xe1   : > { %9441 = vmatprep.mubr.f32.mxu0 %v12027_v18 }
  0xe4   : > { %9442 = vmatmul.mubr.f32.gmra.mrb[30].mxu0 %v12034_v61  ;;  %v15004_v61 = vld [vmem:[#allocation32_spill] sm:$0xff] }
  0xe5   : > { %9450 = vmatprep.mubr.f32.mxu0 %v14963_v58  ;;  %v14978_v58 = vand.u32 4294901760, %v14953_v11 }
  0xe8   : > { %9451 = vmatmul.mubr.f32.vlgmr.msra.gmra.mrb[0].mxu0 %v14964_v23  ;;  %v14977_v23 = vand.u32 4294901760, %v14952_v1 }
  0xe9   : > { %10585 = vmatpush3.bf16.msra.mxu0 %v10582_v53  ;;  %9453 = vmatprep.mubr.f32.mxu0 %v14965_v26  ;;  %v14972_v26 = vand.u32 4294901760, %v14947_v20  ;;  %v14979_v53 = vand.u32 4294901760, %v14954_v9  ;;  %v14984_v20 = vand.u32 4294901760, %v14959_v52  ;;  %v14991_v52 = vand.u32 4294901760, %v14962_v59  ;;  %v15000_v59 = vld [vmem:[#allocation27_spill] sm:$0xff] }
  0xea   : > { %9502 = vmatprep.subr.mxu0 %v14966_v46 }
  0xec   : > { %9454 = vmatmul.mubr.f32.gmra.mrb[2].mxu0 %v14967_v28  ;;  %v14975_v28 = vand.u32 4294901760, %v14950_v8  ;;  %v14987_v8 = vand.u32 4294901760, %v11952_v50  ;;  %v14994_v50 = vand.u32 4294901760, %v12027_v18  ;;  %v15003_v18 = vld [vmem:[#allocation31_spill] sm:$0xff] }
  0xed   : > { %9456 = vmatprep.mubr.f32.mxu0 %v14968_v16  ;;  %9503 = vmatpush3.msra.mxu0 %v14966_v46  ;;  %v14974_v16 = vand.u32 4294901760, %v14949_v7  ;;  %v14976_v46 = vand.u32 4294901760, %v14951_v19  ;;  %v14986_v7 = vand.u32 4294901760, %v14961_v15  ;;  %v14993_v15 = vand.u32 4294901760, %v12018_v39  ;;  %v15002_v39 = vld [vmem:[#allocation30_spill] sm:$0xff] }
  0xee   : > { %10587 = vmatprep.subr.bf16.mxu0 %v11658_v6 }
  0xf0   : > { %9457 = vmatmul.mubr.f32.gmra.mrb[4].mxu0 %v14969_v41 }
  0xf1   : > { %9459 = vmatprep.mubr.f32.mxu0 %v14970_v42 }
  0xf4   : > { %9460 = vmatmul.mubr.f32.gmra.mrb[6].mxu0 %v14971_v45 }
  0xf5   : > { %9462 = vmatprep.mubr.f32.mxu0 %v14972_v26 }
  0xf8   : > { %9463 = vmatmul.mubr.f32.gmra.mrb[8].mxu0 %v14973_v51 }
  0xf9   : > { %9465 = vmatprep.mubr.f32.mxu0 %v14974_v16 }
  0xfc   : > { %9466 = vmatmul.mubr.f32.gmra.mrb[10].mxu0 %v14975_v28 }
  0xfd   : > { %9468 = vmatprep.mubr.f32.mxu0 %v14976_v46 }
 0x100   : > { %9469 = vmatmul.mubr.f32.gmra.mrb[12].mxu0 %v14977_v23 }
 0x101   : > { %9471 = vmatprep.mubr.f32.mxu0 %v14978_v58 }
 0x104   : > { %9472 = vmatmul.mubr.f32.gmra.mrb[14].mxu0 %v14979_v53 }
 0x105   : > { %9474 = vmatprep.mubr.f32.mxu0 %v14980_v49 }
 0x108   : > { %9475 = vmatmul.mubr.f32.gmra.mrb[16].mxu0 %v14981_v21 }
 0x109   : > { %9477 = vmatprep.mubr.f32.mxu0 %v14982_v10 }
 0x10c   : > { %9478 = vmatmul.mubr.f32.gmra.mrb[18].mxu0 %v14983_v3 }
 0x10d   : > { %9480 = vmatprep.mubr.f32.mxu0 %v14984_v20 }
 0x110   : > { %9481 = vmatmul.mubr.f32.gmra.mrb[20].mxu0 %v14985_v62 }
 0x111   : > { %9483 = vmatprep.mubr.f32.mxu0 %v14986_v7 }
 0x114   : > { %9484 = vmatmul.mubr.f32.gmra.mrb[22].mxu0 %v14987_v8 }
 0x115   : > { %9486 = vmatprep.mubr.f32.mxu0 %v14988_v36 }
 0x118   : > { %9487 = vmatmul.mubr.f32.gmra.mrb[24].mxu0 %v14989_v12 }
 0x119   : > { %9489 = vmatprep.mubr.f32.mxu0 %v14990_v22 }
 0x11c   : > { %9490 = vmatmul.mubr.f32.gmra.mrb[26].mxu0 %v14991_v52 }
 0x11d   : > { %9492 = vmatprep.mubr.f32.mxu0 %v14992_v55 }
 0x120   : > { %9493 = vmatmul.mubr.f32.gmra.mrb[28].mxu0 %v14993_v15 }
 0x121   : > { %9495 = vmatprep.mubr.f32.mxu0 %v14994_v50 }
 0x124   : > { %9496 = vmatmul.mubr.f32.gmra.mrb[30].mxu0 %v14995_v17 }
 0x125   : > { %9504 = vmatprep.mubr.f32.mxu0 %v11697_v31 }
 0x128   : > { %9505 = vmatmul.mubr.f32.vlgmr.msra.gmra.mrb[0].mxu0 %v11699_v33 }
 0x129   : > { %10589 = vmatpush3.bf16.msra.mxu0 %v11658_v6  ;;  %9507 = vmatprep.mubr.f32.mxu0 %v11705_v37  ;;  %v14997_v6 = vld [vmem:[#allocation24_spill] sm:$0xff] }
 0x12a   : > { %9556 = vmatprep.subr.mxu0 %v11655_v5 }
 0x12c   : > { %9508 = vmatmul.mubr.f32.gmra.mrb[2].mxu0 %v11715_v43 }
 0x12d   : > { %9510 = vmatprep.mubr.f32.mxu0 %v11717_v44  ;;  %9557 = vmatpush3.msra.mxu0 %v11655_v5  ;;  %v14996_v5 = vld [vmem:[#allocation21_spill] sm:$0xff] }
 0x130   : > { %9511 = vmatmul.mubr.f32.gmra.mrb[4].mxu0 %v11732_v54 }
 0x131   : > { %9513 = vmatprep.mubr.f32.mxu0 %v11750_v63 }
 0x134   : > { %9514 = vmatmul.mubr.f32.gmra.mrb[6].mxu0 %v11752_v0 }
 0x135   : > { %9516 = vmatprep.mubr.f32.mxu0 %v11785_v47 }
 0x138   : > { %9517 = vmatmul.mubr.f32.gmra.mrb[8].mxu0 %v11788_v48 }
 0x139   : > { %9519 = vmatprep.mubr.f32.mxu0 %v11798_v4 }
 0x13c   : > { %9520 = vmatmul.mubr.f32.gmra.mrb[10].mxu0 %v11803_v13 }
 0x13d   : > { %9522 = vmatprep.mubr.f32.mxu0 %v11805_v14 }
 0x140   : > { %9523 = vmatmul.mubr.f32.gmra.mrb[12].mxu0 %v11823_v35 }
 0x141   : > { %9525 = vmatprep.mubr.f32.mxu0 %v11831_v32 }
 0x144   : > { %9526 = vmatmul.mubr.f32.gmra.mrb[14].mxu0 %v11856_v40 }
 0x145   : > { %9528 = vmatprep.mubr.f32.mxu0 %v11875_v57 }
 0x148   : > { %9529 = vmatmul.mubr.f32.gmra.mrb[16].mxu0 %v11882_v27 }
 0x149   : > { %9531 = vmatprep.mubr.f32.mxu0 %v11887_v29 }
 0x14c   : > { %9532 = vmatmul.mubr.f32.gmra.mrb[18].mxu0 %v11896_v38 }
 0x14d   : > { %9534 = vmatprep.mubr.f32.mxu0 %v11898_v2 }
 0x150   : > { %9535 = vmatmul.mubr.f32.gmra.mrb[20].mxu0 %v11926_v60 }
 0x151   : > { %9537 = vmatprep.mubr.f32.mxu0 %v11928_v24 }
 0x154   : > { %9538 = vmatmul.mubr.f32.gmra.mrb[22].mxu0 %v14996_v5 }
 0x155   : > { %9540 = vmatprep.mubr.f32.mxu0 %v14997_v6 }
 0x158   : > { %9541 = vmatmul.mubr.f32.gmra.mrb[24].mxu0 %v14998_v25 }
 0x159   : > { %9543 = vmatprep.mubr.f32.mxu0 %v14999_v34 }
 0x15c   : > { %9544 = vmatmul.mubr.f32.gmra.mrb[26].mxu0 %v15000_v59 }
 0x15d   : > { %9546 = vmatprep.mubr.f32.mxu0 %v15001_v56 }
 0x160   : > { %9547 = vmatmul.mubr.f32.gmra.mrb[28].mxu0 %v15002_v39 }
 0x161   : > { %9549 = vmatprep.mubr.f32.mxu0 %v15003_v18 }
 0x164   : > { %9550 = vmatmul.mubr.f32.gmra.mrb[30].mxu0 %v15004_v61 }
 0x165   : > { %9558 = vmatprep.mubr.f32.mxu0 %v11697_v31  ;;  %v2269_v31 = vld [vmem:[%s14411_s2] sm:$0xff] }
 0x168   : > { %9559 = vmatmul.mubr.f32.vlgmr.msra.gmra.mrb[0].mxu0 %v11699_v33  ;;  %v12262_v33 = vand.u32 4294901760, %v2269_v31 }
 0x169   : > { %9561 = vmatprep.mubr.f32.mxu0 %v11705_v37 }
 0x16a   : > { %9606 = vmatprep.subr.mxu1 %v12262_v33  ;;  %v12267_v37 = vsub.f32 %v2269_v31, %v12262_v33 }
 0x16b   : > { %9607 = vmatpush3.msra.mxu1 %v12262_v33 }
 0x16c   : > { %9562 = vmatmul.mubr.f32.gmra.mrb[2].mxu0 %v11715_v43  ;;  %v12270_v43 = vand.u32 4294901760, %v12267_v37 }
 0x16d   : > { %9564 = vmatprep.mubr.f32.mxu0 %v11717_v44 }
 0x16e   : > { %v2764_v44 = vsub.f32 %v12267_v37, %v12270_v43 }
 0x170   : > { %9565 = vmatmul.mubr.f32.gmra.mrb[4].mxu0 %v11732_v54  ;;  %v2765_v54 = vand.u32 4294901760, %v2764_v44 }
 0x171   : > { %9567 = vmatprep.mubr.f32.mxu0 %v11750_v63 }
 0x172   : > { %9656 = vmatprep.subr.mxu1 %v2765_v54 }
 0x174   : > { %9568 = vmatmul.mubr.f32.gmra.mrb[6].mxu0 %v11752_v0 }
 0x175   : > { %9570 = vmatprep.mubr.f32.mxu0 %v11785_v47 }
 0x178   : > { %9571 = vmatmul.mubr.f32.gmra.mrb[8].mxu0 %v11788_v48 }
 0x179   : > { %9573 = vmatprep.mubr.f32.mxu0 %v11798_v4 }
 0x17c   : > { %9574 = vmatmul.mubr.f32.gmra.mrb[10].mxu0 %v11803_v13 }
 0x17d   : > { %9576 = vmatprep.mubr.f32.mxu0 %v11805_v14 }
 0x180   : > { %9577 = vmatmul.mubr.f32.gmra.mrb[12].mxu0 %v11823_v35 }
 0x181   : > { %9579 = vmatprep.mubr.f32.mxu0 %v11831_v32 }
 0x184   : > { %9580 = vmatmul.mubr.f32.gmra.mrb[14].mxu0 %v11856_v40 }
 0x185   : > { %9582 = vmatprep.mubr.f32.mxu0 %v11875_v57 }
 0x188   : > { %9583 = vmatmul.mubr.f32.gmra.mrb[16].mxu0 %v11882_v27 }
 0x189   : > { %9585 = vmatprep.mubr.f32.mxu0 %v11887_v29 }
 0x18c   : > { %9586 = vmatmul.mubr.f32.gmra.mrb[18].mxu0 %v11896_v38 }
 0x18d   : > { %9588 = vmatprep.mubr.f32.mxu0 %v11898_v2 }
 0x190   : > { %9589 = vmatmul.mubr.f32.gmra.mrb[20].mxu0 %v11926_v60 }
 0x191   : > { %9591 = vmatprep.mubr.f32.mxu0 %v11928_v24 }
 0x194   : > { %9592 = vmatmul.mubr.f32.gmra.mrb[22].mxu0 %v14996_v5 }
 0x195   : > { %9594 = vmatprep.mubr.f32.mxu0 %v14997_v6 }
 0x198   : > { %9595 = vmatmul.mubr.f32.gmra.mrb[24].mxu0 %v14998_v25 }
 0x199   : > { %9597 = vmatprep.mubr.f32.mxu0 %v14999_v34 }
 0x19c   : > { %9598 = vmatmul.mubr.f32.gmra.mrb[26].mxu0 %v15000_v59 }
 0x19d   : > { %9600 = vmatprep.mubr.f32.mxu0 %v15001_v56 }
 0x1a0   : > { %9601 = vmatmul.mubr.f32.gmra.mrb[28].mxu0 %v15002_v39 }
 0x1a1   : > { %9603 = vmatprep.mubr.f32.mxu0 %v15003_v18 }
 0x1a4   : > { %9604 = vmatmul.mubr.f32.gmra.mrb[30].mxu0 %v15004_v61 }
 0x23b   : > { %v9560_v60 = vpop.f32.mrb[0].mxu0 }
 0x23c   : > { %v2282_v63 = vsel %vm2277_vm1, %v9560_v60, 0  ;;  %v2079_v0 = vpop.f32.mrb[1].mxu0 }
 0x23d   : > { %v12275_v27 = vand.u32 4294901760, %v2282_v63  ;;  %v2279_v47 = vsel %vm2277_vm1, %v2079_v0, 0 }
 0x23e   : > { %v12278_v48 = vand.u32 4294901760, %v2279_v47 }
 0x23f   : > { %15005 = vst [vmem:[#allocation4_spill] sm:$0xff] %v12275_v27  ;;  %v12281_v4 = vsub.f32 %v2282_v63, %v12275_v27  ;;  %v9563_v13 = vpop.f32.mrb[2].mxu0 }
 0x240   : > { %15006 = vst [vmem:[#allocation5_spill] sm:$0xff] %v12278_v48  ;;  %v12284_v14 = vsub.f32 %v2279_v47, %v12278_v48  ;;  %v2288_v35 = vsel %vm2277_vm1, %v9563_v13, 0  ;;  %v2091_v32 = vpop.f32.mrb[3].mxu0 }
 0x241   : > { %v14524_v24 = vand.u32 4294901760, %v12281_v4  ;;  %v12288_v40 = vand.u32 4294901760, %v2288_v35  ;;  %v2285_v57 = vsel %vm2277_vm1, %v2091_v32, 0 }
 0x242   : > { %v12291_v29 = vand.u32 4294901760, %v2285_v57  ;;  %v14525_v38 = vand.u32 4294901760, %v12284_v14 }
 0x243   : > { %15007 = vst [vmem:[#allocation6_spill] sm:$0xff] %v12288_v40  ;;  %v12295_v2 = vsub.f32 %v2288_v35, %v12288_v40  ;;  %v9566_v19 = vpop.f32.mrb[4].mxu0  ;;  %v2453_v1 = vsub.f32 %v12281_v4, %v14524_v24 }
 0x244   : > { %15008 = vst [vmem:[#allocation7_spill] sm:$0xff] %v12291_v29  ;;  %v12301_v11 = vsub.f32 %v2285_v57, %v12291_v29  ;;  %v2294_v9 = vsel %vm2277_vm1, %v9566_v19, 0  ;;  %v2103_v30 = vpop.f32.mrb[5].mxu0  ;;  %v2443_v41 = vsub.f32 %v12284_v14, %v14525_v38 }
 0x245   : > { %v14521_v42 = vand.u32 4294901760, %v12295_v2  ;;  %v12308_v45 = vand.u32 4294901760, %v2294_v9  ;;  %v2291_v26 = vsel %vm2277_vm1, %v2103_v30, 0  ;;  %v2454_v58 = vand.u32 4294901760, %v2453_v1 }
 0x246   : > { %v14522_v51 = vand.u32 4294901760, %v12301_v11  ;;  %v12312_v16 = vand.u32 4294901760, %v2291_v26  ;;  %v2444_v28 = vand.u32 4294901760, %v2443_v41 }
 0x247   : > { %15009 = vst [vmem:[#allocation8_spill] sm:$0xff] %v12308_v45  ;;  %v12315_v46 = vsub.f32 %v2294_v9, %v12308_v45  ;;  %v9569_v23 = vpop.f32.mrb[6].mxu0  ;;  %v2473_v53 = vsub.f32 %v12295_v2, %v14521_v42 }
 0x248   : > { %15010 = vst [vmem:[#allocation9_spill] sm:$0xff] %v12312_v16  ;;  %v12321_v49 = vsub.f32 %v2291_v26, %v12312_v16  ;;  %v2300_v21 = vsel %vm2277_vm1, %v9569_v23, 0  ;;  %v2115_v10 = vpop.f32.mrb[7].mxu0  ;;  %9608 = vmatprep.mubr.f32.mxu1 %v2444_v28  ;;  %v2463_v3 = vsub.f32 %v12301_v11, %v14522_v51 }
 0x249   : > { %v14518_v20 = vand.u32 4294901760, %v12315_v46  ;;  %v12328_v62 = vand.u32 4294901760, %v2300_v21  ;;  %v2297_v7 = vsel %vm2277_vm1, %v2115_v10, 0  ;;  %9609 = vmatmul.mubr.f32.vlgmr.msra.gmra.mrb[0].mxu1 %v2454_v58  ;;  %v2474_v55 = vand.u32 4294901760, %v2473_v53 }
 0x24a   : > { %v14519_v8 = vand.u32 4294901760, %v12321_v49  ;;  %v12332_v36 = vand.u32 4294901760, %v2297_v7  ;;  %9657 = vmatpush3.msra.mxu1 %v2765_v54  ;;  %v2464_v12 = vand.u32 4294901760, %v2463_v3 }
 0x24b   : > { %15011 = vst [vmem:[#allocation10_spill] sm:$0xff] %v12328_v62  ;;  %v12335_v22 = vsub.f32 %v2300_v21, %v12328_v62  ;;  %v9572_v52 = vpop.f32.mrb[8].mxu0  ;;  %v2493_v15 = vsub.f32 %v12315_v46, %v14518_v20  ;;  %9706 = vmatprep.subr.mxu1 %v12267_v37 }
 0x24c   : > { %15012 = vst [vmem:[#allocation11_spill] sm:$0xff] %v12332_v36  ;;  %v12342_v50 = vsub.f32 %v2297_v7, %v12332_v36  ;;  %v2306_v17 = vsel %vm2277_vm1, %v9572_v52, 0  ;;  %v2127_v5 = vpop.f32.mrb[9].mxu0  ;;  %9611 = vmatprep.mubr.f32.mxu1 %v2464_v12  ;;  %v2483_v6 = vsub.f32 %v12321_v49, %v14519_v8 }
 0x24d   : > { %v14515_v25 = vand.u32 4294901760, %v12335_v22  ;;  %v12349_v34 = vand.u32 4294901760, %v2306_v17  ;;  %v2303_v59 = vsel %vm2277_vm1, %v2127_v5, 0  ;;  %9612 = vmatmul.mubr.f32.gmra.mrb[2].mxu1 %v2474_v55  ;;  %v2494_v44 = vand.u32 4294901760, %v2493_v15 }
 0x24e   : > { %v14516_v56 = vand.u32 4294901760, %v12342_v50  ;;  %v12353_v39 = vand.u32 4294901760, %v2303_v59  ;;  %v2484_v18 = vand.u32 4294901760, %v2483_v6 }
 0x24f   : > { %15013 = vst [vmem:[#allocation12_spill] sm:$0xff] %v12349_v34  ;;  %v12356_v61 = vsub.f32 %v2306_v17, %v12349_v34  ;;  %v9575_v31 = vpop.f32.mrb[10].mxu0  ;;  %v2513_v54 = vsub.f32 %v12335_v22, %v14515_v25 }
 0x250   : > { %15014 = vst [vmem:[#allocation13_spill] sm:$0xff] %v12353_v39  ;;  %v12362_v60 = vsub.f32 %v2303_v59, %v12353_v39  ;;  %v2312_v63 = vsel %vm2277_vm1, %v9575_v31, 0  ;;  %v2139_v0 = vpop.f32.mrb[11].mxu0  ;;  %9614 = vmatprep.mubr.f32.mxu1 %v2484_v18  ;;  %v2503_v47 = vsub.f32 %v12342_v50, %v14516_v56 }
 0x251   : > { %v14512_v13 = vand.u32 4294901760, %v12356_v61  ;;  %v12369_v35 = vand.u32 4294901760, %v2312_v63  ;;  %v2309_v32 = vsel %vm2277_vm1, %v2139_v0, 0  ;;  %9615 = vmatmul.mubr.f32.gmra.mrb[4].mxu1 %v2494_v44  ;;  %v2514_v41 = vand.u32 4294901760, %v2513_v54 }
 0x252   : > { %v14513_v57 = vand.u32 4294901760, %v12362_v60  ;;  %v12373_v19 = vand.u32 4294901760, %v2309_v32  ;;  %v2504_v1 = vand.u32 4294901760, %v2503_v47 }
 0x253   : > { %15015 = vst [vmem:[#allocation14_spill] sm:$0xff] %v12369_v35  ;;  %v12376_v9 = vsub.f32 %v2312_v63, %v12369_v35  ;;  %v9578_v30 = vpop.f32.mrb[12].mxu0  ;;  %v2533_v26 = vsub.f32 %v12356_v61, %v14512_v13 }
 0x254   : > { %15016 = vst [vmem:[#allocation15_spill] sm:$0xff] %v12373_v19  ;;  %v12382_v28 = vsub.f32 %v2309_v32, %v12373_v19  ;;  %v2318_v23 = vsel %vm2277_vm1, %v9578_v30, 0  ;;  %v2151_v58 = vpop.f32.mrb[13].mxu0  ;;  %9617 = vmatprep.mubr.f32.mxu1 %v2504_v1  ;;  %v2523_v53 = vsub.f32 %v12362_v60, %v14513_v57 }
 0x255   : > { %v14509_v21 = vand.u32 4294901760, %v12376_v9  ;;  %v12389_v10 = vand.u32 4294901760, %v2318_v23  ;;  %v2315_v3 = vsel %vm2277_vm1, %v2151_v58, 0  ;;  %9618 = vmatmul.mubr.f32.gmra.mrb[6].mxu1 %v2514_v41  ;;  %v2534_v17 = vand.u32 4294901760, %v2533_v26 }
 0x256   : > { %v14510_v7 = vand.u32 4294901760, %v12382_v28  ;;  %v12393_v12 = vand.u32 4294901760, %v2315_v3  ;;  %v2524_v52 = vand.u32 4294901760, %v2523_v53 }
 0x257   : > { %15017 = vst [vmem:[#allocation16_spill] sm:$0xff] %v12389_v10  ;;  %v12396_v55 = vsub.f32 %v2318_v23, %v12389_v10  ;;  %v9581_v15 = vpop.f32.mrb[14].mxu0  ;;  %v2553_v5 = vsub.f32 %v12376_v9, %v14509_v21 }
 0x258   : > { %15018 = vst [vmem:[#allocation17_spill] sm:$0xff] %v12393_v12  ;;  %v12402_v6 = vsub.f32 %v2315_v3, %v12393_v12  ;;  %v2324_v59 = vsel %vm2277_vm1, %v9581_v15, 0  ;;  %v2163_v18 = vpop.f32.mrb[15].mxu0  ;;  %9620 = vmatprep.mubr.f32.mxu1 %v2524_v52  ;;  %v2543_v31 = vsub.f32 %v12382_v28, %v14510_v7 }
 0x259   : > { %15019 = vst [vmem:[#allocation18_spill] sm:$0xff] %v12396_v55  ;;  %v14506_v44 = vand.u32 4294901760, %v12396_v55  ;;  %v12409_v54 = vand.u32 4294901760, %v2324_v59  ;;  %v2321_v63 = vsel %vm2277_vm1, %v2163_v18, 0  ;;  %9621 = vmatmul.mubr.f32.gmra.mrb[8].mxu1 %v2534_v17  ;;  %v2554_v41 = vand.u32 4294901760, %v2553_v5 }
 0x25a   : > { %v14507_v0 = vand.u32 4294901760, %v12402_v6  ;;  %v12413_v47 = vand.u32 4294901760, %v2321_v63  ;;  %v2544_v32 = vand.u32 4294901760, %v2543_v31 }
 0x25b   : > { %15020 = vst [vmem:[#allocation19_spill] sm:$0xff] %v12409_v54  ;;  %v12416_v1 = vsub.f32 %v2324_v59, %v12409_v54  ;;  %v9584_v30 = vpop.f32.mrb[16].mxu0  ;;  %v2573_v26 = vsub.f32 %v12396_v55, %v14506_v44 }
 0x25c   : > { %15021 = vst [vmem:[#allocation20_spill] sm:$0xff] %v12413_v47  ;;  %v12422_v23 = vsub.f32 %v2321_v63, %v12413_v47  ;;  %v2330_v58 = vsel %vm2277_vm1, %v9584_v30, 0  ;;  %v2175_v53 = vpop.f32.mrb[17].mxu0  ;;  %9623 = vmatprep.mubr.f32.mxu1 %v2544_v32  ;;  %v2563_v3 = vsub.f32 %v12402_v6, %v14507_v0 }
 0x25d   : > { %15022 = vst [vmem:[#allocation22_spill] sm:$0xff] %v12416_v1  ;;  %v14508_v52 = vand.u32 4294901760, %v12416_v1  ;;  %v12429_v15 = vand.u32 4294901760, %v2330_v58  ;;  %v2327_v17 = vsel %vm2277_vm1, %v2175_v53, 0  ;;  %9624 = vmatmul.mubr.f32.gmra.mrb[10].mxu1 %v2554_v41  ;;  %v2574_v32 = vand.u32 4294901760, %v2573_v26 }
 0x25e   : > { %15023 = vst [vmem:[#allocation23_spill] sm:$0xff] %v12422_v23  ;;  %v14511_v5 = vand.u32 4294901760, %v12422_v23  ;;  %v12433_v59 = vand.u32 4294901760, %v2327_v17  ;;  %v2564_v18 = vand.u32 4294901760, %v2563_v3 }
 0x25f   : > { %15024 = vst [vmem:[#allocation28_spill] sm:$0xff] %v12429_v15  ;;  %v12436_v31 = vsub.f32 %v2330_v58, %v12429_v15  ;;  %v9587_v63 = vpop.f32.mrb[18].mxu0  ;;  %v2593_v30 = vsub.f32 %v12416_v1, %v14508_v52 }
 0x260   : > { %15025 = vst [vmem:[#allocation3_spill] sm:$0xff] %v12433_v59  ;;  %v12442_v44 = vsub.f32 %v2327_v17, %v12433_v59  ;;  %v2336_v53 = vsel %vm2277_vm1, %v9587_v63, 0  ;;  %v2187_v41 = vpop.f32.mrb[19].mxu0  ;;  %9626 = vmatprep.mubr.f32.mxu1 %v2564_v18  ;;  %v2583_v3 = vsub.f32 %v12422_v23, %v14511_v5 }
 0x261   : > { %15026 = vst [vmem:[#allocation21_spill] sm:$0xff] %v12436_v31  ;;  %v14514_v58 = vand.u32 4294901760, %v12436_v31  ;;  %v12449_v0 = vand.u32 4294901760, %v2336_v53  ;;  %v2333_v26 = vsel %vm2277_vm1, %v2187_v41, 0  ;;  %9627 = vmatmul.mubr.f32.gmra.mrb[12].mxu1 %v2574_v32  ;;  %v2594_v7 = vand.u32 4294901760, %v2593_v30 }
 0x262   : > { %15027 = vst [vmem:[#allocation24_spill] sm:$0xff] %v12442_v44  ;;  %v14517_v52 = vand.u32 4294901760, %v12442_v44  ;;  %v12453_v21 = vand.u32 4294901760, %v2333_v26  ;;  %v2584_v17 = vand.u32 4294901760, %v2583_v3 }
 0x263   : > { %15028 = vst [vmem:[#allocation25_spill] sm:$0xff] %v12449_v0  ;;  %v12456_v63 = vsub.f32 %v2336_v53, %v12449_v0  ;;  %v9590_v18 = vpop.f32.mrb[20].mxu0  ;;  %v2613_v5 = vsub.f32 %v12436_v31, %v14514_v58 }
 0x264   : > { %15029 = vst [vmem:[#allocation26_spill] sm:$0xff] %v12453_v21  ;;  %v12462_v13 = vsub.f32 %v2333_v26, %v12453_v21  ;;  %v2342_v41 = vsel %vm2277_vm1, %v9590_v18, 0  ;;  %v2199_v32 = vpop.f32.mrb[21].mxu0  ;;  %9629 = vmatprep.mubr.f32.mxu1 %v2584_v17  ;;  %v2603_v3 = vsub.f32 %v12442_v44, %v14517_v52 }
 0x265   : > { %15030 = vst [vmem:[#allocation27_spill] sm:$0xff] %v12456_v63  ;;  %v14520_v53 = vand.u32 4294901760, %v12456_v63  ;;  %v12469_v57 = vand.u32 4294901760, %v2342_v41  ;;  %v2339_v30 = vsel %vm2277_vm1, %v2199_v32, 0  ;;  %9630 = vmatmul.mubr.f32.gmra.mrb[14].mxu1 %v2594_v7  ;;  %v2614_v56 = vand.u32 4294901760, %v2613_v5 }
 0x266   : > { %15031 = vst [vmem:[#allocation29_spill] sm:$0xff] %v12462_v13  ;;  %v14523_v58 = vand.u32 4294901760, %v12462_v13  ;;  %v12473_v25 = vand.u32 4294901760, %v2339_v30  ;;  %v2604_v26 = vand.u32 4294901760, %v2603_v3 }
 0x267   : > { %15032 = vst [vmem:[#allocation30_spill] sm:$0xff] %v12469_v57  ;;  %v12476_v18 = vsub.f32 %v2342_v41, %v12469_v57  ;;  %v9593_v17 = vpop.f32.mrb[22].mxu0  ;;  %v2633_v52 = vsub.f32 %v12456_v63, %v14520_v53 }
 0x268   : > { %15033 = vst [vmem:[#allocation31_spill] sm:$0xff] %v12473_v25  ;;  %v12482_v20 = vsub.f32 %v2339_v30, %v12473_v25  ;;  %v2348_v32 = vsel %vm2277_vm1, %v9593_v17, 0  ;;  %v2211_v7 = vpop.f32.mrb[23].mxu0  ;;  %9632 = vmatprep.mubr.f32.mxu1 %v2604_v26  ;;  %v2623_v3 = vsub.f32 %v12462_v13, %v14523_v58 }
 0x269   : > { %15034 = vst [vmem:[#allocation32_spill] sm:$0xff] %v12476_v18  ;;  %v14526_v41 = vand.u32 4294901760, %v12476_v18  ;;  %v12489_v8 = vand.u32 4294901760, %v2348_v32  ;;  %v2345_v5 = vsel %vm2277_vm1, %v2211_v7, 0  ;;  %9633 = vmatmul.mubr.f32.gmra.mrb[16].mxu1 %v2614_v56  ;;  %v2634_v51 = vand.u32 4294901760, %v2633_v52 }
 0x26a   : > { %15035 = vst [vmem:[#allocation33_spill] sm:$0xff] %v12482_v20  ;;  %v14531_v53 = vand.u32 4294901760, %v12482_v20  ;;  %v12493_v42 = vand.u32 4294901760, %v2345_v5  ;;  %v2624_v30 = vand.u32 4294901760, %v2623_v3 }
 0x26b   : > { %15036 = vst [vmem:[#allocation34_spill] sm:$0xff] %v12489_v8  ;;  %v12496_v17 = vsub.f32 %v2348_v32, %v12489_v8  ;;  %v9596_v26 = vpop.f32.mrb[24].mxu0  ;;  %v2653_v58 = vsub.f32 %v12476_v18, %v14526_v41 }
 0x26c   : > { %15037 = vst [vmem:[#allocation35_spill] sm:$0xff] %v12493_v42  ;;  %v12502_v24 = vsub.f32 %v2345_v5, %v12493_v42  ;;  %v2354_v7 = vsel %vm2277_vm1, %v9596_v26, 0  ;;  %v2223_v56 = vpop.f32.mrb[25].mxu0  ;;  %9635 = vmatprep.mubr.f32.mxu1 %v2624_v30  ;;  %v2643_v3 = vsub.f32 %v12482_v20, %v14531_v53 }
 0x26d   : > { %15038 = vst [vmem:[#allocation36_spill] sm:$0xff] %v12496_v17  ;;  %v14536_v32 = vand.u32 4294901760, %v12496_v17  ;;  %v12509_v38 = vand.u32 4294901760, %v2354_v7  ;;  %v2351_v52 = vsel %vm2277_vm1, %v2223_v56, 0  ;;  %9636 = vmatmul.mubr.f32.gmra.mrb[18].mxu1 %v2634_v51  ;;  %v2654_v63 = vand.u32 4294901760, %v2653_v58 }
 0x26e   : > { %15039 = vst [vmem:[#allocation37_spill] sm:$0xff] %v12502_v24  ;;  %v14541_v41 = vand.u32 4294901760, %v12502_v24  ;;  %v12513_v18 = vand.u32 4294901760, %v2351_v52  ;;  %v2644_v5 = vand.u32 4294901760, %v2643_v3 }
 0x26f   : > { %15040 = vst [vmem:[#allocation38_spill] sm:$0xff] %v12509_v38  ;;  %v12516_v26 = vsub.f32 %v2354_v7, %v12509_v38  ;;  %v9599_v30 = vpop.f32.mrb[26].mxu0  ;;  %v2673_v53 = vsub.f32 %v12496_v17, %v14536_v32 }
 0x270   : > { %15041 = vst [vmem:[#allocation39_spill] sm:$0xff] %v12513_v18  ;;  %v12522_v20 = vsub.f32 %v2351_v52, %v12513_v18  ;;  %v2360_v56 = vsel %vm2277_vm1, %v9599_v30, 0  ;;  %v2235_v51 = vpop.f32.mrb[27].mxu0  ;;  %9638 = vmatprep.mubr.f32.mxu1 %v2644_v5  ;;  %v2663_v3 = vsub.f32 %v12502_v24, %v14541_v41 }
 0x271   : > { %15042 = vst [vmem:[#allocation40_spill] sm:$0xff] %v12516_v26  ;;  %v14546_v7 = vand.u32 4294901760, %v12516_v26  ;;  %v12529_v13 = vand.u32 4294901760, %v2360_v56  ;;  %v2357_v58 = vsel %vm2277_vm1, %v2235_v51, 0  ;;  %9639 = vmatmul.mubr.f32.gmra.mrb[20].mxu1 %v2654_v63  ;;  %v2674_v31 = vand.u32 4294901760, %v2673_v53 }
 0x272   : > { %15043 = vst [vmem:[#allocation41_spill] sm:$0xff] %v12522_v20  ;;  %v14551_v32 = vand.u32 4294901760, %v12522_v20  ;;  %v12533_v17 = vand.u32 4294901760, %v2357_v58  ;;  %v2664_v52 = vand.u32 4294901760, %v2663_v3 }
 0x273   : > { %15044 = vst [vmem:[#allocation42_spill] sm:$0xff] %v12529_v13  ;;  %v12536_v30 = vsub.f32 %v2360_v56, %v12529_v13  ;;  %v9602_v5 = vpop.f32.mrb[28].mxu0  ;;  %v2693_v41 = vsub.f32 %v12516_v26, %v14546_v7 }
 0x274   : > { %15045 = vst [vmem:[#allocation43_spill] sm:$0xff] %v12533_v17  ;;  %v12542_v24 = vsub.f32 %v2357_v58, %v12533_v17  ;;  %v2366_v51 = vsel %vm2277_vm1, %v9602_v5, 0  ;;  %v2247_v63 = vpop.f32.mrb[29].mxu0  ;;  %9641 = vmatprep.mubr.f32.mxu1 %v2664_v52  ;;  %v2683_v3 = vsub.f32 %v12522_v20, %v14551_v32 }
 0x275   : > { %15046 = vst [vmem:[#allocation44_spill] sm:$0xff] %v12536_v30  ;;  %v14556_v56 = vand.u32 4294901760, %v12536_v30  ;;  %v12549_v44 = vand.u32 4294901760, %v2366_v51  ;;  %v2363_v53 = vsel %vm2277_vm1, %v2247_v63, 0  ;;  %9642 = vmatmul.mubr.f32.gmra.mrb[22].mxu1 %v2674_v31  ;;  %v2694_v1 = vand.u32 4294901760, %v2693_v41 }
 0x276   : > { %15047 = vst [vmem:[#allocation45_spill] sm:$0xff] %v12542_v24  ;;  %v14559_v7 = vand.u32 4294901760, %v12542_v24  ;;  %v12553_v26 = vand.u32 4294901760, %v2363_v53  ;;  %v2684_v58 = vand.u32 4294901760, %v2683_v3 }
 0x277   : > { %15048 = vst [vmem:[#allocation46_spill] sm:$0xff] %v12549_v44  ;;  %v12556_v5 = vsub.f32 %v2366_v51, %v12549_v44  ;;  %v9605_v52 = vpop.f32.mrb[30].mxu0  ;;  %v2713_v32 = vsub.f32 %v12536_v30, %v14556_v56 }
 0x278   : > { %15049 = vst [vmem:[#allocation47_spill] sm:$0xff] %v12553_v26  ;;  %v12562_v20 = vsub.f32 %v2363_v53, %v12553_v26  ;;  %v2372_v63 = vsel %vm2277_vm1, %v9605_v52, 0  ;;  %v2259_v31 = vpop.f32.mrb[31].mxu0  ;;  %9644 = vmatprep.mubr.f32.mxu1 %v2684_v58  ;;  %v2703_v3 = vsub.f32 %v12542_v24, %v14559_v7 }
 0x279   : > { %v14564_v51 = vand.u32 4294901760, %v12556_v5  ;;  %v12569_v23 = vand.u32 4294901760, %v2372_v63  ;;  %v2369_v41 = vsel %vm2277_vm1, %v2259_v31, 0  ;;  %9645 = vmatmul.mubr.f32.gmra.mrb[24].mxu1 %v2694_v1  ;;  %v2714_v58 = vand.u32 4294901760, %v2713_v32 }
 0x27a   : > { %v14567_v56 = vand.u32 4294901760, %v12562_v20  ;;  %v12573_v30 = vand.u32 4294901760, %v2369_v41  ;;  %v2704_v53 = vand.u32 4294901760, %v2703_v3 }
 0x27b   : > { %15050 = vst [vmem:[#allocation48_spill] sm:$0xff] %v12569_v23  ;;  %v12576_v52 = vsub.f32 %v2372_v63, %v12569_v23  ;;  %v2733_v7 = vsub.f32 %v12556_v5, %v14564_v51 }
 0x27c   : > { %15051 = vst [vmem:[#allocation49_spill] sm:$0xff] %v12573_v30  ;;  %v12582_v24 = vsub.f32 %v2369_v41, %v12573_v30  ;;  %9647 = vmatprep.mubr.f32.mxu1 %v2704_v53  ;;  %v2723_v1 = vsub.f32 %v12562_v20, %v14567_v56 }
 0x27d   : > { %v14565_v31 = vand.u32 4294901760, %v12576_v52  ;;  %9648 = vmatmul.mubr.f32.gmra.mrb[26].mxu1 %v2714_v58  ;;  %v2734_v55 = vand.u32 4294901760, %v2733_v7 }
 0x27e   : > { %v14566_v3 = vand.u32 4294901760, %v12582_v24  ;;  %v2724_v63 = vand.u32 4294901760, %v2723_v1  ;;  %v12621_v1 = vld [vmem:[%s14415_s6] sm:$0xff] }
 0x27f   : > { %v2753_v32 = vsub.f32 %v12576_v52, %v14565_v31 }
 0x280   : > { %9650 = vmatprep.mubr.f32.mxu1 %v2724_v63  ;;  %v2743_v41 = vsub.f32 %v12582_v24, %v14566_v3  ;;  %v12626_v63 = vld [vmem:[%s14415_s6 + $0x8] sm:$0xff]  ;;  %v11456_v3 = vld [vmem:[%s11675_s21 + $0x10] sm:$0xff] }
 0x281   : > { %9651 = vmatmul.mubr.f32.gmra.mrb[28].mxu1 %v2734_v55  ;;  %v2754_v51 = vand.u32 4294901760, %v2753_v32 }
 0x282   : > { %v2744_v53 = vand.u32 4294901760, %v2743_v41 }
 0x284   : > { %9653 = vmatprep.mubr.f32.mxu1 %v2744_v53  ;;  %v14575_v53 = vand.u32 4294901760, %v12621_v1 }
 0x285   : > { %9654 = vmatmul.mubr.f32.gmra.mrb[30].mxu1 %v2754_v51  ;;  %v11455_v51 = vld [vmem:[%s11675_s21] sm:$0xff] }
 0x286   : > { %9658 = vmatprep.mubr.f32.mxu1 %v12278_v48  ;;  %v6115_v58 = vsel %vm367_vm0, %v11455_v51, 0 }
 0x287   : > { %v12628_v32 = vand.u32 4294901760, %v6115_v58 }
 0x289   : > { %9659 = vmatmul.mubr.f32.vlgmr.msra.gmra.mrb[0].mxu1 %v12275_v27  ;;  %15053 = vst [vmem:[#allocation51_spill] sm:$0xff] %v12628_v32  ;;  %v12638_v51 = vsub.f32 %v6115_v58, %v12628_v32 }
 0x28a   : > { %9707 = vmatpush3.msra.mxu1 %v12267_v37  ;;  %9661 = vmatprep.mubr.f32.mxu1 %v12291_v29  ;;  %v11454_v37 = vld [vmem:[%s11675_s21 + $0x8] sm:$0xff] }
 0x28b   : > { %9756 = vmatprep.subr.mxu1 %v12262_v33  ;;  %v6118_v55 = vsel %vm367_vm0, %v11454_v37, 0  ;;  %v14574_v37 = vand.u32 4294901760, %v12626_v63  ;;  %15055 = vst [vmem:[#allocation53_spill] sm:$0xff] %v12638_v51  ;;  %v14590_v56 = vand.u32 4294901760, %v12638_v51 }
 0x28c   : > { %v12612_v7 = vand.u32 4294901760, %v6118_v55 }
 0x28d   : > { %9662 = vmatmul.mubr.f32.gmra.mrb[2].mxu1 %v12288_v40  ;;  %v12644_v31 = vpack.c.bf16 %v14574_v37, %v14575_v53 }
 0x28e   : > { %9664 = vmatprep.mubr.f32.mxu1 %v12312_v16  ;;  %15052 = vst [vmem:[#allocation50_spill] sm:$0xff] %v12612_v7  ;;  %v12631_v41 = vsub.f32 %v6118_v55, %v12612_v7  ;;  %v6121_v55 = vsel %vm367_vm0, %v11456_v3, 0  ;;  %v12663_v3 = vld [vmem:[%s14415_s6 + $0x10] sm:$0xff] }
 0x28f   : > { %15056 = vst [vmem:[#allocation54_spill] sm:$0xff] %v12644_v31  ;;  %10639 = vmatprep.subr.bf16.mxu0 %v12644_v31  ;;  %v12672_v58 = vand.u32 4294901760, %v12663_v3 }
 0x290   : > { %15054 = vst [vmem:[#allocation52_spill] sm:$0xff] %v12631_v41  ;;  %10641 = vmatpush3.bf16.msra.mxu0 %v12644_v31 }
 0x291   : > { %9665 = vmatmul.mubr.f32.gmra.mrb[4].mxu1 %v12308_v45  ;;  %15060 = vst [vmem:[#allocation58_spill] sm:$0xff] %v12672_v58  ;;  %10246 = vmatprep.subr.mxu0 %v12672_v58 }
 0x292   : > { %9667 = vmatprep.mubr.f32.mxu1 %v12332_v36 }
 0x294   : > { %10247 = vmatpush3.msra.mxu0 %v12672_v58 }
 0x295   : > { %9668 = vmatmul.mubr.f32.gmra.mrb[6].mxu1 %v12328_v62 }
 0x296   : > { %9670 = vmatprep.mubr.f32.mxu1 %v12353_v39 }
 0x299   : > { %9671 = vmatmul.mubr.f32.gmra.mrb[8].mxu1 %v12349_v34 }
 0x29a   : > { %9673 = vmatprep.mubr.f32.mxu1 %v12373_v19 }
 0x29d   : > { %9674 = vmatmul.mubr.f32.gmra.mrb[10].mxu1 %v12369_v35 }
 0x29e   : > { %9676 = vmatprep.mubr.f32.mxu1 %v12393_v12  ;;  %v11458_v12 = vld [vmem:[%s11675_s21 + $0x20] sm:$0xff] }
 0x29f   : > { %v6127_v35 = vsel %vm367_vm0, %v11458_v12, 0 }
 0x2a1   : > { %9677 = vmatmul.mubr.f32.gmra.mrb[12].mxu1 %v12389_v10 }
 0x2a2   : > { %9679 = vmatprep.mubr.f32.mxu1 %v12413_v47  ;;  %v11457_v47 = vld [vmem:[%s11675_s21 + $0x18] sm:$0xff] }
 0x2a5   : > { %9680 = vmatmul.mubr.f32.gmra.mrb[14].mxu1 %v12409_v54  ;;  %v12649_v54 = vand.u32 4294901760, %v6121_v55 }
 0x2a6   : > { %9682 = vmatprep.mubr.f32.mxu1 %v12433_v59  ;;  %v6124_v59 = vsel %vm367_vm0, %v11457_v47, 0  ;;  %v6281_v47 = vsub.f32 %v12638_v51, %v14590_v56  ;;  %v12683_v56 = vand.u32 4294901760, %v6127_v35 }
 0x2a7   : > { %15057 = vst [vmem:[#allocation55_spill] sm:$0xff] %v12649_v54  ;;  %v12656_v37 = vand.u32 4294901760, %v6124_v59  ;;  %v12669_v53 = vsub.f32 %v6121_v55, %v12649_v54  ;;  %v11459_v55 = vld [vmem:[%s11675_s21 + $0x28] sm:$0xff] }
 0x2a8   : > { %v6282_v19 = vand.u32 4294901760, %v6281_v47  ;;  %15063 = vst [vmem:[#allocation60_spill] sm:$0xff] %v12683_v56  ;;  %v6130_v39 = vsel %vm367_vm0, %v11459_v55, 0  ;;  %v12698_v47 = vsub.f32 %v6127_v35, %v12683_v56  ;;  %v11461_v35 = vld [vmem:[%s11675_s21 + $0x38] sm:$0xff] }
 0x2a9   : > { %9683 = vmatmul.mubr.f32.gmra.mrb[16].mxu1 %v12429_v15  ;;  %15058 = vst [vmem:[#allocation56_spill] sm:$0xff] %v12656_v37  ;;  %15059 = vst [vmem:[#allocation57_spill] sm:$0xff] %v12669_v53  ;;  %v15061_v15 = vand.u32 4294901760, %v12631_v41  ;;  %v12678_v10 = vsub.f32 %v6124_v59, %v12656_v37  ;;  %v14603_v34 = vand.u32 4294901760, %v12669_v53  ;;  %v12690_v62 = vand.u32 4294901760, %v6130_v39 }
 0x2aa   : > { %9685 = vmatprep.mubr.f32.mxu1 %v12453_v21  ;;  %15065 = vst [vmem:[#allocation62_spill] sm:$0xff] %v12698_v47  ;;  %10248 = vmatprep.mubr.f32.mxu0 %v6282_v19  ;;  %v14613_v45 = vand.u32 4294901760, %v12698_v47  ;;  %v6136_v19 = vsel %vm367_vm0, %v11461_v35, 0  ;;  %v11462_v35 = vld [vmem:[%s11675_s21 + $0x40] sm:$0xff] }
 0x2ab   : > { %v6291_v21 = vsub.f32 %v12631_v41, %v15061_v15  ;;  %15062 = vst [vmem:[#allocation59_spill] sm:$0xff] %v12678_v10  ;;  %v14604_v59 = vand.u32 4294901760, %v12678_v10  ;;  %15064 = vst [vmem:[#allocation61_spill] sm:$0xff] %v12690_v62  ;;  %v6301_v12 = vsub.f32 %v12669_v53, %v14603_v34  ;;  %v12704_v55 = vsub.f32 %v6130_v39, %v12690_v62 }
 0x2ac   : > { %v12715_v16 = vand.u32 4294901760, %v6136_v19 }
 0x2ad   : > { %9686 = vmatmul.mubr.f32.gmra.mrb[18].mxu1 %v12449_v0  ;;  %v6292_v15 = vand.u32 4294901760, %v6291_v21  ;;  %v6311_v21 = vsub.f32 %v12678_v10, %v14604_v59  ;;  %15066 = vst [vmem:[#allocation63_spill] sm:$0xff] %v12704_v55  ;;  %v11460_v0 = vld [vmem:[%s11675_s21 + $0x30] sm:$0xff]  ;;  %v6302_v36 = vand.u32 4294901760, %v6301_v12  ;;  %v14614_v39 = vand.u32 4294901760, %v12704_v55 }
 0x2ae   : > { %9688 = vmatprep.mubr.f32.mxu1 %v12473_v25  ;;  %v6133_v25 = vsel %vm367_vm0, %v11460_v0, 0  ;;  %15068 = vst [vmem:[#allocation65_spill] sm:$0xff] %v12715_v16  ;;  %v6321_v0 = vsub.f32 %v12698_v47, %v14613_v45  ;;  %v11463_v45 = vld [vmem:[%s11675_s21 + $0x48] sm:$0xff] }
 0x2af   : > { %10249 = vmatmul.mubr.f32.vlgmr.msra.gmra.mrb[32].mxu0 %v6292_v15  ;;  %v12709_v34 = vand.u32 4294901760, %v6133_v25  ;;  %v6312_v59 = vand.u32 4294901760, %v6311_v21  ;;  %v6331_v12 = vsub.f32 %v12704_v55, %v14614_v39  ;;  %v12728_v21 = vsub.f32 %v6136_v19, %v12715_v16 }
 0x2b0   : > { %10251 = vmatprep.mubr.f32.mxu0 %v6302_v36  ;;  %v6322_v36 = vand.u32 4294901760, %v6321_v0 }
 0x2b1   : > { %15067 = vst [vmem:[#allocation64_spill] sm:$0xff] %v12709_v34  ;;  %9689 = vmatmul.mubr.f32.gmra.mrb[20].mxu1 %v12469_v57  ;;  %v12722_v15 = vsub.f32 %v6133_v25, %v12709_v34  ;;  %15070 = vst [vmem:[#allocation67_spill] sm:$0xff] %v12728_v21  ;;  %v6139_v57 = vsel %vm367_vm0, %v11462_v35, 0  ;;  %v6142_v25 = vsel %vm367_vm0, %v11463_v45, 0  ;;  %v6332_v39 = vand.u32 4294901760, %v6331_v12  ;;  %v11464_v35 = vld [vmem:[%s11675_s21 + $0x50] sm:$0xff] }
 0x2b2   : > { %9691 = vmatprep.mubr.f32.mxu1 %v12493_v42  ;;  %v12733_v40 = vand.u32 4294901760, %v6139_v57  ;;  %v14624_v19 = vand.u32 4294901760, %v12728_v21  ;;  %v12739_v29 = vand.u32 4294901760, %v6142_v25 }
 0x2b3   : > { %15069 = vst [vmem:[#allocation66_spill] sm:$0xff] %v12722_v15  ;;  %10252 = vmatmul.mubr.f32.gmra.mrb[34].mxu0 %v6312_v59  ;;  %v14623_v42 = vand.u32 4294901760, %v12722_v15 }
 0x2b4   : > { %15071 = vst [vmem:[#allocation68_spill] sm:$0xff] %v12733_v40  ;;  %15072 = vst [vmem:[#allocation69_spill] sm:$0xff] %v12739_v29  ;;  %10254 = vmatprep.mubr.f32.mxu0 %v6322_v36  ;;  %v12746_v0 = vsub.f32 %v6139_v57, %v12733_v40  ;;  %v6351_v45 = vsub.f32 %v12728_v21, %v14624_v19  ;;  %v12752_v12 = vsub.f32 %v6142_v25, %v12739_v29 }
 0x2b5   : > { %9692 = vmatmul.mubr.f32.gmra.mrb[22].mxu1 %v12489_v8  ;;  %v6341_v59 = vsub.f32 %v12722_v15, %v14623_v42  ;;  %v6145_v8 = vsel %vm367_vm0, %v11464_v35, 0  ;;  %v11465_v42 = vld [vmem:[%s11675_s21 + $0x58] sm:$0xff]  ;;  %v11466_v35 = vld [vmem:[%s11675_s21 + $0x60] sm:$0xff] }
 0x2b6   : > { %9694 = vmatprep.mubr.f32.mxu1 %v12513_v18  ;;  %15073 = vst [vmem:[#allocation70_spill] sm:$0xff] %v12746_v0  ;;  %15074 = vst [vmem:[#allocation71_spill] sm:$0xff] %v12752_v12  ;;  %v14633_v18 = vand.u32 4294901760, %v12746_v0  ;;  %v12757_v27 = vand.u32 4294901760, %v6145_v8  ;;  %v6148_v57 = vsel %vm367_vm0, %v11465_v42, 0  ;;  %v6352_v19 = vand.u32 4294901760, %v6351_v45 }
 0x2b7   : > { %10255 = vmatmul.mubr.f32.gmra.mrb[36].mxu0 %v6332_v39  ;;  %v6342_v36 = vand.u32 4294901760, %v6341_v59  ;;  %v14634_v25 = vand.u32 4294901760, %v12752_v12  ;;  %v12763_v48 = vand.u32 4294901760, %v6148_v57 }
 0x2b8   : > { %15075 = vst [vmem:[#allocation72_spill] sm:$0xff] %v12757_v27  ;;  %v6361_v39 = vsub.f32 %v12746_v0, %v14633_v18  ;;  %v12770_v59 = vsub.f32 %v6145_v8, %v12757_v27  ;;  %v11467_v18 = vld [vmem:[%s11675_s21 + $0x68] sm:$0xff] }
 0x2b9   : > { %9695 = vmatmul.mubr.f32.gmra.mrb[24].mxu1 %v12509_v38  ;;  %15076 = vst [vmem:[#allocation73_spill] sm:$0xff] %v12763_v48  ;;  %10257 = vmatprep.mubr.f32.mxu0 %v6342_v36  ;;  %v6371_v42 = vsub.f32 %v12752_v12, %v14634_v25  ;;  %v12776_v45 = vsub.f32 %v6148_v57, %v12763_v48  ;;  %v6151_v38 = vsel %vm367_vm0, %v11466_v35, 0  ;;  %v6154_v8 = vsel %vm367_vm0, %v11467_v18, 0  ;;  %v11468_v35 = vld [vmem:[%s11675_s21 + $0x70] sm:$0xff] }
 0x2ba   : > { %9697 = vmatprep.mubr.f32.mxu1 %v12533_v17  ;;  %15077 = vst [vmem:[#allocation74_spill] sm:$0xff] %v12770_v59  ;;  %v6362_v36 = vand.u32 4294901760, %v6361_v39  ;;  %v14643_v17 = vand.u32 4294901760, %v12770_v59  ;;  %v12781_v21 = vand.u32 4294901760, %v6151_v38  ;;  %v12787_v12 = vand.u32 4294901760, %v6154_v8 }
 0x2bb   : > { %15078 = vst [vmem:[#allocation75_spill] sm:$0xff] %v12776_v45  ;;  %10258 = vmatmul.mubr.f32.gmra.mrb[38].mxu0 %v6352_v19  ;;  %v6372_v25 = vand.u32 4294901760, %v6371_v42  ;;  %v14644_v57 = vand.u32 4294901760, %v12776_v45 }
 0x2bc   : > { %15079 = vst [vmem:[#allocation76_spill] sm:$0xff] %v12781_v21  ;;  %15080 = vst [vmem:[#allocation77_spill] sm:$0xff] %v12787_v12  ;;  %10260 = vmatprep.mubr.f32.mxu0 %v6362_v36  ;;  %v6381_v19 = vsub.f32 %v12770_v59, %v14643_v17  ;;  %v12794_v39 = vsub.f32 %v6151_v38, %v12781_v21  ;;  %v12800_v42 = vsub.f32 %v6154_v8, %v12787_v12  ;;  %v11469_v17 = vld [vmem:[%s11675_s21 + $0x78] sm:$0xff] }
 0x2bd   : > { %9698 = vmatmul.mubr.f32.gmra.mrb[26].mxu1 %v12529_v13  ;;  %v6391_v18 = vsub.f32 %v12776_v45, %v14644_v57  ;;  %v6157_v13 = vsel %vm367_vm0, %v11468_v35, 0  ;;  %v6160_v38 = vsel %vm367_vm0, %v11469_v17, 0  ;;  %v11470_v35 = vld [vmem:[%s11675_s21 + $0x80] sm:$0xff] }
 0x2be   : > { %9700 = vmatprep.mubr.f32.mxu1 %v12553_v26  ;;  %15081 = vst [vmem:[#allocation78_spill] sm:$0xff] %v12794_v39  ;;  %15082 = vst [vmem:[#allocation79_spill] sm:$0xff] %v12800_v42  ;;  %v6382_v36 = vand.u32 4294901760, %v6381_v19  ;;  %v14653_v26 = vand.u32 4294901760, %v12794_v39  ;;  %v12805_v0 = vand.u32 4294901760, %v6157_v13  ;;  %v14654_v8 = vand.u32 4294901760, %v12800_v42 }
 0x2bf   : > { %10261 = vmatmul.mubr.f32.gmra.mrb[40].mxu0 %v6372_v25  ;;  %v6392_v57 = vand.u32 4294901760, %v6391_v18  ;;  %v12811_v45 = vand.u32 4294901760, %v6160_v38 }
 0x2c0   : > { %15083 = vst [vmem:[#allocation80_spill] sm:$0xff] %v12805_v0  ;;  %10263 = vmatprep.mubr.f32.mxu0 %v6382_v36  ;;  %v6401_v25 = vsub.f32 %v12794_v39, %v14653_v26  ;;  %v12818_v19 = vsub.f32 %v6157_v13, %v12805_v0  ;;  %v6411_v17 = vsub.f32 %v12800_v42, %v14654_v8  ;;  %v11471_v26 = vld [vmem:[%s11675_s21 + $0x88] sm:$0xff] }
 0x2c1   : > { %9701 = vmatmul.mubr.f32.gmra.mrb[28].mxu1 %v12549_v44  ;;  %15084 = vst [vmem:[#allocation81_spill] sm:$0xff] %v12811_v45  ;;  %v12824_v18 = vsub.f32 %v6160_v38, %v12811_v45  ;;  %v6163_v44 = vsel %vm367_vm0, %v11470_v35, 0  ;;  %v6166_v13 = vsel %vm367_vm0, %v11471_v26, 0  ;;  %v11472_v35 = vld [vmem:[%s11675_s21 + $0x90] sm:$0xff] }
 0x2c2   : > { %9703 = vmatprep.mubr.f32.mxu1 %v12573_v30  ;;  %15085 = vst [vmem:[#allocation82_spill] sm:$0xff] %v12818_v19  ;;  %v6402_v36 = vand.u32 4294901760, %v6401_v25  ;;  %v14663_v30 = vand.u32 4294901760, %v12818_v19  ;;  %v12829_v59 = vand.u32 4294901760, %v6163_v44  ;;  %v6412_v8 = vand.u32 4294901760, %v6411_v17 }
 0x2c3   : > { %15086 = vst [vmem:[#allocation83_spill] sm:$0xff] %v12824_v18  ;;  %10264 = vmatmul.mubr.f32.gmra.mrb[42].mxu0 %v6392_v57  ;;  %v14666_v38 = vand.u32 4294901760, %v12824_v18  ;;  %v12835_v42 = vand.u32 4294901760, %v6166_v13 }
 0x2c4   : > { %15087 = vst [vmem:[#allocation84_spill] sm:$0xff] %v12829_v59  ;;  %10266 = vmatprep.mubr.f32.mxu0 %v6402_v36  ;;  %v6421_v57 = vsub.f32 %v12818_v19, %v14663_v30  ;;  %v12842_v25 = vsub.f32 %v6163_v44, %v12829_v59  ;;  %v11473_v30 = vld [vmem:[%s11675_s21 + $0x98] sm:$0xff] }
 0x2c5   : > { %9704 = vmatmul.mubr.f32.gmra.mrb[30].mxu1 %v12569_v23  ;;  %15088 = vst [vmem:[#allocation85_spill] sm:$0xff] %v12835_v42  ;;  %v6431_v26 = vsub.f32 %v12824_v18, %v14666_v38  ;;  %v12848_v17 = vsub.f32 %v6166_v13, %v12835_v42  ;;  %v6169_v23 = vsel %vm367_vm0, %v11472_v35, 0  ;;  %v6172_v44 = vsel %vm367_vm0, %v11473_v30, 0  ;;  %v11474_v35 = vld [vmem:[%s11675_s21 + $0xa0] sm:$0xff] }
 0x2c6   : > { %9708 = vmatprep.mubr.f32.mxu1 %v12284_v14  ;;  %15089 = vst [vmem:[#allocation86_spill] sm:$0xff] %v12842_v25  ;;  %v6422_v39 = vand.u32 4294901760, %v6421_v57  ;;  %v14671_v36 = vand.u32 4294901760, %v12842_v25  ;;  %v12853_v15 = vand.u32 4294901760, %v6169_v23  ;;  %v12859_v13 = vand.u32 4294901760, %v6172_v44 }
 0x2c7   : > { %15090 = vst [vmem:[#allocation87_spill] sm:$0xff] %v12848_v17  ;;  %10267 = vmatmul.mubr.f32.gmra.mrb[44].mxu0 %v6412_v8  ;;  %v6432_v19 = vand.u32 4294901760, %v6431_v26  ;;  %v14674_v38 = vand.u32 4294901760, %v12848_v17  ;;  %v6175_v18 = vsel %vm367_vm0, %v11474_v35, 0  ;;  %v11476_v35 = vld [vmem:[%s11675_s21 + $0xb0] sm:$0xff] }
 0x2c8   : > { %15091 = vst [vmem:[#allocation88_spill] sm:$0xff] %v12853_v15  ;;  %15092 = vst [vmem:[#allocation89_spill] sm:$0xff] %v12859_v13  ;;  %v6441_v8 = vsub.f32 %v12842_v25, %v14671_v36  ;;  %v12867_v57 = vsub.f32 %v6169_v23, %v12853_v15  ;;  %10269 = vmatprep.mubr.f32.mxu0 %v6422_v39  ;;  %v12874_v26 = vsub.f32 %v6172_v44, %v12859_v13  ;;  %v11475_v25 = vld [vmem:[%s11675_s21 + $0xa8] sm:$0xff] }
 0x2c9   : > { %9709 = vmatmul.mubr.f32.vlgmr.msra.gmra.mrb[0].mxu1 %v12281_v4  ;;  %v6451_v30 = vsub.f32 %v12848_v17, %v14674_v38  ;;  %v12879_v23 = vand.u32 4294901760, %v6175_v18  ;;  %v6178_v39 = vsel %vm367_vm0, %v11475_v25, 0  ;;  %v6181_v47 = vsel %vm367_vm0, %v11476_v35, 0  ;;  %v11478_v35 = vld [vmem:[%s11675_s21 + $0xc0] sm:$0xff] }
 0x2ca   : > { %9757 = vmatpush3.msra.mxu1 %v12262_v33  ;;  %9711 = vmatprep.mubr.f32.mxu1 %v12301_v11  ;;  %15093 = vst [vmem:[#allocation90_spill] sm:$0xff] %v12867_v57  ;;  %15094 = vst [vmem:[#allocation91_spill] sm:$0xff] %v12874_v26  ;;  %v6442_v55 = vand.u32 4294901760, %v6441_v8  ;;  %v14683_v36 = vand.u32 4294901760, %v12867_v57  ;;  %v14684_v44 = vand.u32 4294901760, %v12874_v26  ;;  %v12885_v17 = vand.u32 4294901760, %v6178_v39 }
 0x2cb   : > { %9806 = vmatprep.subr.mxu1 %v12270_v43  ;;  %10270 = vmatmul.mubr.f32.gmra.mrb[46].mxu0 %v6432_v19  ;;  %15095 = vst [vmem:[#allocation92_spill] sm:$0xff] %v12879_v23  ;;  %v6452_v38 = vand.u32 4294901760, %v6451_v30  ;;  %v12892_v8 = vsub.f32 %v6175_v18, %v12879_v23  ;;  %v12903_v53 = vand.u32 4294901760, %v6181_v47 }
 0x2cc   : > { %15096 = vst [vmem:[#allocation93_spill] sm:$0xff] %v12885_v17  ;;  %10272 = vmatprep.mubr.f32.mxu0 %v6442_v55  ;;  %v6461_v19 = vsub.f32 %v12867_v57, %v14683_v36  ;;  %v6471_v25 = vsub.f32 %v12874_v26, %v14684_v44  ;;  %v12898_v30 = vsub.f32 %v6178_v39, %v12885_v17  ;;  %v11477_v36 = vld [vmem:[%s11675_s21 + $0xb8] sm:$0xff]  ;;  %v6187_v57 = vsel %vm367_vm0, %v11478_v35, 0  ;;  %v11480_v35 = vld [vmem:[%s11675_s21 + $0xd0] sm:$0xff] }
 0x2cd   : > { %9712 = vmatmul.mubr.f32.gmra.mrb[2].mxu1 %v12295_v2  ;;  %15097 = vst [vmem:[#allocation94_spill] sm:$0xff] %v12892_v8  ;;  %v14693_v10 = vand.u32 4294901760, %v12892_v8  ;;  %15099 = vst [vmem:[#allocation96_spill] sm:$0xff] %v12903_v53  ;;  %v6184_v18 = vsel %vm367_vm0, %v11477_v36, 0  ;;  %v12927_v31 = vand.u32 4294901760, %v6187_v57 }
 0x2ce   : > { %9714 = vmatprep.mubr.f32.mxu1 %v12321_v49  ;;  %15098 = vst [vmem:[#allocation95_spill] sm:$0xff] %v12898_v30  ;;  %v6462_v55 = vand.u32 4294901760, %v6461_v19  ;;  %v6472_v44 = vand.u32 4294901760, %v6471_v25  ;;  %v14694_v39 = vand.u32 4294901760, %v12898_v30  ;;  %v12909_v26 = vand.u32 4294901760, %v6184_v18 }
 0x2cf   : > { %10273 = vmatmul.mubr.f32.gmra.mrb[48].mxu0 %v6452_v38  ;;  %v6481_v38 = vsub.f32 %v12892_v8, %v14693_v10  ;;  %v12916_v19 = vsub.f32 %v6181_v47, %v12903_v53  ;;  %15103 = vst [vmem:[#allocation100_spill] sm:$0xff] %v12927_v31  ;;  %v11479_v10 = vld [vmem:[%s11675_s21 + $0xc8] sm:$0xff]  ;;  %v6193_v8 = vsel %vm367_vm0, %v11480_v35, 0  ;;  %v11482_v35 = vld [vmem:[%s11675_s21 + $0xe0] sm:$0xff] }
 0x2d0   : > { %15100 = vst [vmem:[#allocation97_spill] sm:$0xff] %v12909_v26  ;;  %10275 = vmatprep.mubr.f32.mxu0 %v6462_v55  ;;  %v6491_v36 = vsub.f32 %v12898_v30, %v14694_v39  ;;  %v12922_v25 = vsub.f32 %v6184_v18, %v12909_v26  ;;  %v6190_v47 = vsel %vm367_vm0, %v11479_v10, 0  ;;  %v12951_v26 = vand.u32 4294901760, %v6193_v8 }
 0x2d1   : > { %9715 = vmatmul.mubr.f32.gmra.mrb[4].mxu1 %v12315_v46  ;;  %15101 = vst [vmem:[#allocation98_spill] sm:$0xff] %v12916_v19  ;;  %v6482_v55 = vand.u32 4294901760, %v6481_v38  ;;  %v14703_v41 = vand.u32 4294901760, %v12916_v19  ;;  %v12933_v30 = vand.u32 4294901760, %v6190_v47  ;;  %v12940_v38 = vsub.f32 %v6187_v57, %v12927_v31 }
 0x2d2   : > { %9717 = vmatprep.mubr.f32.mxu1 %v12342_v50  ;;  %15102 = vst [vmem:[#allocation99_spill] sm:$0xff] %v12922_v25  ;;  %v6492_v39 = vand.u32 4294901760, %v6491_v36  ;;  %v14704_v18 = vand.u32 4294901760, %v12922_v25  ;;  %15107 = vst [vmem:[#allocation104_spill] sm:$0xff] %v12951_v26 }
 0x2d3   : > { %10276 = vmatmul.mubr.f32.gmra.mrb[50].mxu0 %v6472_v44  ;;  %15104 = vst [vmem:[#allocation101_spill] sm:$0xff] %v12933_v30  ;;  %v6501_v44 = vsub.f32 %v12916_v19, %v14703_v41  ;;  %15105 = vst [vmem:[#allocation102_spill] sm:$0xff] %v12940_v38  ;;  %v12946_v36 = vsub.f32 %v6190_v47, %v12933_v30  ;;  %v14713_v51 = vand.u32 4294901760, %v12940_v38  ;;  %v11481_v41 = vld [vmem:[%s11675_s21 + $0xd8] sm:$0xff]  ;;  %v6199_v19 = vsel %vm367_vm0, %v11482_v35, 0 }
 0x2d4   : > { %10278 = vmatprep.mubr.f32.mxu0 %v6482_v55  ;;  %v6511_v10 = vsub.f32 %v12922_v25, %v14704_v18  ;;  %v6196_v57 = vsel %vm367_vm0, %v11481_v41, 0  ;;  %v12975_v31 = vand.u32 4294901760, %v6199_v19  ;;  %v15115_v35 = vand.u32 4294901760, %v12621_v1 }
 0x2d5   : > { %9718 = vmatmul.mubr.f32.gmra.mrb[6].mxu1 %v12335_v22  ;;  %15106 = vst [vmem:[#allocation103_spill] sm:$0xff] %v12946_v36  ;;  %v6502_v55 = vand.u32 4294901760, %v6501_v44  ;;  %v14716_v47 = vand.u32 4294901760, %v12946_v36  ;;  %v12957_v25 = vand.u32 4294901760, %v6196_v57  ;;  %v12964_v44 = vsub.f32 %v6193_v8, %v12951_v26 }
 0x2d6   : > { %9720 = vmatprep.mubr.f32.mxu1 %v12362_v60  ;;  %v6512_v18 = vand.u32 4294901760, %v6511_v10  ;;  %15111 = vst [vmem:[#allocation108_spill] sm:$0xff] %v12975_v31 }
 0x2d7   : > { %10279 = vmatmul.mubr.f32.gmra.mrb[52].mxu0 %v6492_v39  ;;  %15108 = vst [vmem:[#allocation105_spill] sm:$0xff] %v12957_v25  ;;  %v6521_v39 = vsub.f32 %v12940_v38, %v14713_v51  ;;  %15109 = vst [vmem:[#allocation106_spill] sm:$0xff] %v12964_v44  ;;  %v6531_v41 = vsub.f32 %v12946_v36, %v14716_v47  ;;  %v12970_v10 = vsub.f32 %v6196_v57, %v12957_v25  ;;  %v11483_v51 = vld [vmem:[%s11675_s21 + $0xe8] sm:$0xff] }
 0x2d8   : > { %10281 = vmatprep.mubr.f32.mxu0 %v6502_v55  ;;  %v14721_v55 = vand.u32 4294901760, %v12964_v44  ;;  %v6202_v8 = vsel %vm367_vm0, %v11483_v51, 0  ;;  %v12999_v36 = vsub.f32 %v12621_v1, %v15115_v35 }
 0x2d9   : > { %9721 = vmatmul.mubr.f32.gmra.mrb[8].mxu1 %v12356_v61  ;;  %15110 = vst [vmem:[#allocation107_spill] sm:$0xff] %v12970_v10  ;;  %v6522_v30 = vand.u32 4294901760, %v6521_v39  ;;  %v6532_v38 = vand.u32 4294901760, %v6531_v41  ;;  %v14724_v57 = vand.u32 4294901760, %v12970_v10  ;;  %v12981_v47 = vand.u32 4294901760, %v6202_v8 }
 0x2da   : > { %9723 = vmatprep.mubr.f32.mxu1 %v12382_v28  ;;  %v12988_v39 = vsub.f32 %v6199_v19, %v12975_v31  ;;  %15116 = vst [vmem:[#allocation112_spill] sm:$0xff] %v12999_v36  ;;  %v14739_v35 = vand.u32 4294901760, %v12999_v36 }
 0x2db   : > { %10282 = vmatmul.mubr.f32.gmra.mrb[54].mxu0 %v6512_v18  ;;  %15112 = vst [vmem:[#allocation109_spill] sm:$0xff] %v12981_v47  ;;  %v6541_v18 = vsub.f32 %v12964_v44, %v14721_v55  ;;  %v6551_v51 = vsub.f32 %v12970_v10, %v14724_v57  ;;  %v12994_v41 = vsub.f32 %v6202_v8, %v12981_v47  ;;  %v11484_v44 = vld [vmem:[%s11675_s21 + $0xf0] sm:$0xff]  ;;  %v11485_v10 = vld [vmem:[%s11675_s21 + $0xf8] sm:$0xff] }
 0x2dc   : > { %10284 = vmatprep.mubr.f32.mxu0 %v6522_v30  ;;  %15113 = vst [vmem:[#allocation110_spill] sm:$0xff] %v12988_v39  ;;  %v15117_v30 = vand.u32 4294901760, %v12626_v63  ;;  %v14733_v55 = vand.u32 4294901760, %v12988_v39  ;;  %v6205_v57 = vsel %vm367_vm0, %v11484_v44, 0  ;;  %v6208_v8 = vsel %vm367_vm0, %v11485_v10, 0  ;;  %v15118_v47 = vld [vmem:[#allocation18_spill] sm:$0xff] }
 0x2dd   : > { %9724 = vmatmul.mubr.f32.gmra.mrb[10].mxu1 %v12376_v9  ;;  %15114 = vst [vmem:[#allocation111_spill] sm:$0xff] %v12994_v41  ;;  %v6542_v19 = vand.u32 4294901760, %v6541_v18  ;;  %v6552_v31 = vand.u32 4294901760, %v6551_v51  ;;  %v14736_v1 = vand.u32 4294901760, %v12994_v41  ;;  %v13019_v44 = vand.u32 4294901760, %v6205_v57 }
 0x2de   : > { %9726 = vmatprep.mubr.f32.mxu1 %v12402_v6  ;;  %v13004_v25 = vsub.f32 %v12626_v63, %v15117_v30  ;;  %v15119_v30 = vld [vmem:[#allocation23_spill] sm:$0xff]  ;;  %v13021_v18 = vand.u32 4294901760, %v6208_v8  ;;  %v6602_v51 = vsub.f32 %v12999_v36, %v14739_v35  ;;  %v13041_v35 = vsub.f32 %v12663_v3, %v12672_v58  ;;  %v15123_v36 = vld [vmem:[#allocation24_spill] sm:$0xff] }
 0x2df   : > { %10285 = vmatmul.mubr.f32.gmra.mrb[56].mxu0 %v6532_v38  ;;  %v6561_v38 = vsub.f32 %v12988_v39, %v14733_v55  ;;  %15120 = vst [vmem:[#allocation113_spill] sm:$0xff] %v13019_v44  ;;  %v6571_v10 = vsub.f32 %v12994_v41, %v14736_v1  ;;  %v13033_v55 = vsub.f32 %v6205_v57, %v13019_v44 }
 0x2e0   : > { %v14742_v63 = vand.u32 4294901760, %v13004_v25  ;;  %10287 = vmatprep.mubr.f32.mxu0 %v6542_v19  ;;  %15121 = vst [vmem:[#allocation114_spill] sm:$0xff] %v13021_v18  ;;  %v13036_v39 = vsub.f32 %v6208_v8, %v13021_v18  ;;  %v6603_v1 = vand.u32 4294901760, %v6602_v51  ;;  %v13047_v8 = vand.u32 4294901760, %v13041_v35  ;;  %v15125_v51 = vld [vmem:[#allocation21_spill] sm:$0xff] }
 0x2e1   : > { %9727 = vmatmul.mubr.f32.gmra.mrb[12].mxu1 %v15118_v47  ;;  %v6562_v26 = vand.u32 4294901760, %v6561_v38  ;;  %v6572_v47 = vand.u32 4294901760, %v6571_v10 }
 0x2e2   : > { %9729 = vmatprep.mubr.f32.mxu1 %v15119_v30  ;;  %v6609_v19 = vsub.f32 %v13004_v25, %v14742_v63  ;;  %v15122_v30 = vld [vmem:[#allocation22_spill] sm:$0xff]  ;;  %v14744_v57 = vand.u32 4294901760, %v13036_v39  ;;  %v15127_v63 = vld [vmem:[#allocation27_spill] sm:$0xff] }
 0x2e3   : > { %10288 = vmatmul.mubr.f32.gmra.mrb[58].mxu0 %v6552_v31  ;;  %v14743_v31 = vand.u32 4294901760, %v13033_v55  ;;  %15124 = vst [vmem:[#allocation22_spill] sm:$0xff] %v13047_v8 }
 0x2e4   : > { %v6610_v41 = vand.u32 4294901760, %v6609_v19  ;;  %10290 = vmatprep.mubr.f32.mxu0 %v6562_v26  ;;  %v6591_v3 = vsub.f32 %v13036_v39, %v14744_v57  ;;  %v6616_v26 = vsub.f32 %v13041_v35, %v13047_v8  ;;  %v15126_v19 = vld [vmem:[#allocation29_spill] sm:$0xff]  ;;  %v15129_v57 = vld [vmem:[#allocation32_spill] sm:$0xff] }
 0x2e5   : > { %9730 = vmatmul.mubr.f32.gmra.mrb[14].mxu1 %v15122_v30  ;;  %v6581_v10 = vsub.f32 %v13033_v55, %v14743_v31  ;;  %v15128_v31 = vld [vmem:[#allocation33_spill] sm:$0xff] }
 0x2e6   : > { %9732 = vmatprep.mubr.f32.mxu1 %v15123_v36  ;;  %v10642_v38 = vpack.c.bf16 %v6610_v41, %v6603_v1  ;;  %v6592_v1 = vand.u32 4294901760, %v6591_v3  ;;  %v15130_v8 = vld [vmem:[#allocation37_spill] sm:$0xff]  ;;  %v15133_v3 = vld [vmem:[#allocation40_spill] sm:$0xff] }
 0x2e7   : > { %10291 = vmatmul.mubr.f32.gmra.mrb[60].mxu0 %v6572_v47  ;;  %v6582_v41 = vand.u32 4294901760, %v6581_v10  ;;  %v6617_v47 = vand.u32 4294901760, %v6616_v26  ;;  %v15132_v10 = vld [vmem:[#allocation41_spill] sm:$0xff] }
 0x2e8   : > { %10643 = vmatprep.subr.bf16.mxu0 %v10642_v38  ;;  %v15134_v26 = vld [vmem:[#allocation45_spill] sm:$0xff] }
 0x2e9   : > { %9733 = vmatmul.mubr.f32.gmra.mrb[16].mxu1 %v15125_v51  ;;  %10645 = vmatpush3.bf16.msra.mxu0 %v10642_v38  ;;  %v15131_v38 = vld [vmem:[#allocation36_spill] sm:$0xff] }
 0x2ea   : > { %9735 = vmatprep.mubr.f32.mxu1 %v15126_v19  ;;  %10293 = vmatprep.mubr.f32.mxu0 %v6582_v41  ;;  %v15135_v41 = vld [vmem:[#allocation44_spill] sm:$0xff] }
 0x2eb   : > { %10294 = vmatmul.mubr.f32.gmra.mrb[62].mxu0 %v6592_v1  ;;  %10300 = vmatprep.subr.mxu0 %v6617_v47  ;;  %v15136_v1 = vand.u32 4294901760, %v12284_v14  ;;  %v15140_v14 = vand.u32 4294901760, %v12321_v49  ;;  %v15148_v49 = vld [vmem:[#allocation97_spill] sm:$0xff] }
 0x2ec   : > { %10302 = vmatprep.mubr.f32.mxu0 %v12628_v32 }
 0x2ed   : > { %9736 = vmatmul.mubr.f32.gmra.mrb[18].mxu1 %v15127_v63  ;;  %10301 = vmatpush3.msra.mxu0 %v6617_v47  ;;  %v15137_v47 = vand.u32 4294901760, %v12281_v4  ;;  %v15141_v4 = vand.u32 4294901760, %v12315_v46  ;;  %v15147_v46 = vand.u32 4294901760, %v12376_v9  ;;  %v15157_v9 = vand.u32 4294901760, %v15122_v30 }
 0x2ee   : > { %9738 = vmatprep.mubr.f32.mxu1 %v15128_v31  ;;  %v15166_v30 = vand.u32 4294901760, %v15128_v31  ;;  %v15173_v31 = vand.u32 4294901760, %v15131_v38 }
 0x2ef   : > { %10303 = vmatmul.mubr.f32.vlgmr.msra.gmra.mrb[32].mxu0 %v12612_v7  ;;  %v15240_v7 = vld [vmem:[#allocation34_spill] sm:$0xff] }
 0x2f0   : > { %10305 = vmatprep.mubr.f32.mxu0 %v12649_v54  ;;  %v15239_v54 = vld [vmem:[#allocation22_spill] sm:$0xff] }
 0x2f1   : > { %9739 = vmatmul.mubr.f32.gmra.mrb[20].mxu1 %v15129_v57 }
 0x2f2   : > { %9741 = vmatprep.mubr.f32.mxu1 %v15130_v8 }
 0x2f3   : > { %10306 = vmatmul.mubr.f32.gmra.mrb[34].mxu0 %v12656_v37  ;;  %v15237_v37 = vld [vmem:[#allocation35_spill] sm:$0xff] }
 0x2f4   : > { %10308 = vmatprep.mubr.f32.mxu0 %v12683_v56 }
 0x2f5   : > { %9742 = vmatmul.mubr.f32.gmra.mrb[22].mxu1 %v15131_v38  ;;  %v15181_v38 = vand.u32 4294901760, %v15135_v41 }
 0x2f6   : > { %9744 = vmatprep.mubr.f32.mxu1 %v15132_v10 }
 0x2f7   : > { %10309 = vmatmul.mubr.f32.gmra.mrb[36].mxu0 %v12690_v62  ;;  %v15235_v62 = vld [vmem:[#allocation30_spill] sm:$0xff] }
 0x2f8   : > { %10311 = vmatprep.mubr.f32.mxu0 %v12709_v34 }
 0x2f9   : > { %9745 = vmatmul.mubr.f32.gmra.mrb[24].mxu1 %v15133_v3 }
 0x2fa   : > { %9747 = vmatprep.mubr.f32.mxu1 %v15134_v26 }
 0x2fb   : > { %10312 = vmatmul.mubr.f32.gmra.mrb[38].mxu0 %v12715_v16  ;;  %v15233_v16 = vld [vmem:[#allocation31_spill] sm:$0xff] }
 0x2fc   : > { %10314 = vmatprep.mubr.f32.mxu0 %v12733_v40  ;;  %v15232_v40 = vld [vmem:[#allocation25_spill] sm:$0xff] }
 0x2fd   : > { %9748 = vmatmul.mubr.f32.gmra.mrb[26].mxu1 %v15135_v41  ;;  %v15189_v41 = vand.u32 4294901760, %v12576_v52 }
 0x2fe   : > { %9750 = vmatprep.mubr.f32.mxu1 %v12562_v20 }
 0x2ff   : > { %10315 = vmatmul.mubr.f32.gmra.mrb[40].mxu0 %v12739_v29  ;;  %v15138_v29 = vand.u32 4294901760, %v12301_v11  ;;  %v15146_v11 = vand.u32 4294901760, %v12382_v28 }
 0x300   : > { %10317 = vmatprep.mubr.f32.mxu0 %v12757_v27  ;;  %v15231_v27 = vld [vmem:[#allocation26_spill] sm:$0xff] }
 0x301   : > { %9751 = vmatmul.mubr.f32.gmra.mrb[28].mxu1 %v12556_v5 }
 0x302   : > { %9753 = vmatprep.mubr.f32.mxu1 %v12582_v24 }
 0x303   : > { %10318 = vmatmul.mubr.f32.gmra.mrb[42].mxu0 %v12763_v48  ;;  %v15139_v48 = vand.u32 4294901760, %v12295_v2  ;;  %v15145_v2 = vand.u32 4294901760, %v12356_v61 }
 0x304   : > { %10320 = vmatprep.mubr.f32.mxu0 %v12781_v21  ;;  %v15230_v21 = vld [vmem:[#allocation111_spill] sm:$0xff] }
 0x305   : > { %9754 = vmatmul.mubr.f32.gmra.mrb[30].mxu1 %v12576_v52  ;;  %v15196_v52 = vld [vmem:[#allocation78_spill] sm:$0xff] }
 0x306   : > { %9758 = vmatprep.mubr.f32.mxu1 %v15136_v1  ;;  %v15153_v1 = vld [vmem:[#allocation101_spill] sm:$0xff] }
 0x307   : > { %10321 = vmatmul.mubr.f32.gmra.mrb[44].mxu0 %v12787_v12  ;;  %v15229_v12 = vld [vmem:[#allocation28_spill] sm:$0xff] }
 0x308   : > { %10323 = vmatprep.mubr.f32.mxu0 %v12805_v0  ;;  %v15228_v0 = vld [vmem:[#allocation110_spill] sm:$0xff] }
 0x309   : > { %9759 = vmatmul.mubr.f32.vlgmr.msra.gmra.mrb[0].mxu1 %v15137_v47  ;;  %v15154_v47 = vld [vmem:[#allocation23_spill] sm:$0xff] }
 0x30a   : > { %9807 = vmatpush3.msra.mxu1 %v12270_v43  ;;  %9761 = vmatprep.mubr.f32.mxu1 %v15138_v29  ;;  %v15142_v43 = vand.u32 4294901760, %v12342_v50  ;;  %v15143_v29 = vand.u32 4294901760, %v12335_v22  ;;  %v15149_v22 = vand.u32 4294901760, %v12402_v6  ;;  %v15150_v50 = vld [vmem:[#allocation100_spill] sm:$0xff]  ;;  %v15155_v28 = vand.u32 4294901760, %v15154_v47 }
 0x30b   : > { %9856 = vmatprep.subr.mxu1 %v12262_v33  ;;  %10324 = vmatmul.mubr.f32.gmra.mrb[46].mxu0 %v12811_v45  ;;  %v15159_v6 = vand.u32 4294901760, %v15123_v36  ;;  %v15165_v36 = vand.u32 4294901760, %v15127_v63  ;;  %v15172_v63 = vld [vmem:[#allocation57_spill] sm:$0xff]  ;;  %v15175_v47 = vand.u32 4294901760, %v15132_v10  ;;  %v15183_v10 = vand.u32 4294901760, %v12562_v20  ;;  %v15227_v45 = vld [vmem:[#allocation3_spill] sm:$0xff] }
 0x30c   : > { %10326 = vmatprep.mubr.f32.mxu0 %v12829_v59  ;;  %v15226_v59 = vld [vmem:[#allocation107_spill] sm:$0xff] }
 0x30d   : > { %9762 = vmatmul.mubr.f32.gmra.mrb[2].mxu1 %v15139_v48  ;;  %v15144_v48 = vand.u32 4294901760, %v12362_v60  ;;  %v15151_v60 = vld [vmem:[#allocation18_spill] sm:$0xff] }
 0x30e   : > { %9764 = vmatprep.mubr.f32.mxu1 %v15140_v14  ;;  %v15152_v61 = vand.u32 4294901760, %v15151_v60  ;;  %v15156_v14 = vld [vmem:[#allocation104_spill] sm:$0xff] }
 0x30f   : > { %10327 = vmatmul.mubr.f32.gmra.mrb[48].mxu0 %v12835_v42  ;;  %v15170_v60 = vld [vmem:[#allocation52_spill] sm:$0xff]  ;;  %v15225_v42 = vld [vmem:[#allocation19_spill] sm:$0xff] }
 0x310   : > { %10329 = vmatprep.mubr.f32.mxu0 %v12853_v15  ;;  %v15224_v15 = vld [vmem:[#allocation106_spill] sm:$0xff]  ;;  %v15236_v56 = vand.u32 4294901760, %v15170_v60 }
 0x311   : > { %9765 = vmatmul.mubr.f32.gmra.mrb[4].mxu1 %v15141_v4  ;;  %v15158_v4 = vld [vmem:[#allocation105_spill] sm:$0xff] }
 0x312   : > { %9767 = vmatprep.mubr.f32.mxu1 %v15142_v43  ;;  %v15160_v43 = vld [vmem:[#allocation108_spill] sm:$0xff] }
 0x313   : > { %10330 = vmatmul.mubr.f32.gmra.mrb[50].mxu0 %v12859_v13  ;;  %v15223_v13 = vld [vmem:[#allocation20_spill] sm:$0xff] }
 0x314   : > { %10332 = vmatprep.mubr.f32.mxu0 %v12879_v23  ;;  %v15222_v23 = vld [vmem:[#allocation103_spill] sm:$0xff] }
 0x315   : > { %9768 = vmatmul.mubr.f32.gmra.mrb[6].mxu1 %v15143_v29  ;;  %v15161_v29 = vld [vmem:[#allocation112_spill] sm:$0xff] }
 0x316   : > { %9770 = vmatprep.mubr.f32.mxu1 %v15144_v48  ;;  %v10646_v48 = vpack.c.bf16 %v13004_v25, %v15161_v29  ;;  %v15191_v20 = vand.u32 4294901760, %v15161_v29 }
 0x317   : > { %10333 = vmatmul.mubr.f32.gmra.mrb[52].mxu0 %v12885_v17  ;;  %v15221_v17 = vld [vmem:[#allocation16_spill] sm:$0xff] }
 0x318   : > { %10335 = vmatprep.mubr.f32.mxu0 %v12903_v53  ;;  %10647 = vmatprep.subr.bf16.mxu0 %v10646_v48  ;;  %v15220_v53 = vld [vmem:[#allocation102_spill] sm:$0xff] }
 0x319   : > { %9771 = vmatmul.mubr.f32.gmra.mrb[8].mxu1 %v15145_v2  ;;  %v15162_v2 = vand.u32 4294901760, %v15125_v51  ;;  %10649 = vmatpush3.bf16.msra.mxu0 %v10646_v48  ;;  %v15167_v51 = vld [vmem:[#allocation53_spill] sm:$0xff]  ;;  %v15182_v48 = vld [vmem:[#allocation67_spill] sm:$0xff] }
 0x31a   : > { %9773 = vmatprep.mubr.f32.mxu1 %v15146_v11  ;;  %v15163_v11 = vld [vmem:[#allocation109_spill] sm:$0xff]  ;;  %10354 = vmatprep.subr.mxu0 %v13041_v35  ;;  %v15234_v34 = vand.u32 4294901760, %v15167_v51 }
 0x31b   : > { %10336 = vmatmul.mubr.f32.gmra.mrb[54].mxu0 %v15148_v49  ;;  %v15219_v49 = vld [vmem:[#allocation17_spill] sm:$0xff] }
 0x31c   : > { %10338 = vmatprep.mubr.f32.mxu0 %v15150_v50  ;;  %v15218_v50 = vld [vmem:[#allocation99_spill] sm:$0xff] }
 0x31d   : > { %9774 = vmatmul.mubr.f32.gmra.mrb[10].mxu1 %v15147_v46  ;;  %v15164_v46 = vand.u32 4294901760, %v15126_v19  ;;  %10355 = vmatpush3.msra.mxu0 %v13041_v35  ;;  %v15168_v19 = vld [vmem:[#allocation54_spill] sm:$0xff]  ;;  %v15174_v35 = vld [vmem:[#allocation59_spill] sm:$0xff] }
 0x31e   : > { %9776 = vmatprep.mubr.f32.mxu1 %v15149_v22  ;;  %10651 = vmatprep.subr.bf16.mxu0 %v15168_v19  ;;  %v15169_v22 = vand.u32 4294901760, %v15129_v57  ;;  %v15176_v57 = vld [vmem:[#allocation62_spill] sm:$0xff]  ;;  %v15241_v32 = vand.u32 4294901760, %v15174_v35 }
 0x31f   : > { %10339 = vmatmul.mubr.f32.gmra.mrb[56].mxu0 %v15153_v1  ;;  %v15217_v1 = vld [vmem:[#allocation14_spill] sm:$0xff] }
 0x320   : > { %10341 = vmatprep.mubr.f32.mxu0 %v15156_v14  ;;  %v15216_v14 = vld [vmem:[#allocation98_spill] sm:$0xff] }
 0x321   : > { %9777 = vmatmul.mubr.f32.gmra.mrb[12].mxu1 %v15152_v61  ;;  %v15171_v61 = vand.u32 4294901760, %v15130_v8  ;;  %v15177_v8 = vand.u32 4294901760, %v15133_v3  ;;  %v15185_v3 = vand.u32 4294901760, %v12556_v5  ;;  %v13197_v5 = vld [vmem:[%s14413_s4] sm:$0xff] }
 0x322   : > { %9779 = vmatprep.mubr.f32.mxu1 %v15155_v28  ;;  %v15178_v28 = vld [vmem:[#allocation63_spill] sm:$0xff]  ;;  %15193 = vst [vmem:[#allocation24_spill] sm:$0xff] %v13197_v5 }
 0x323   : > { %10342 = vmatmul.mubr.f32.gmra.mrb[58].mxu0 %v15158_v4  ;;  %v15215_v4 = vld [vmem:[#allocation15_spill] sm:$0xff] }
 0x324   : > { %10344 = vmatprep.mubr.f32.mxu0 %v15160_v43  ;;  %v15214_v43 = vld [vmem:[#allocation95_spill] sm:$0xff] }
 0x325   : > { %9780 = vmatmul.mubr.f32.gmra.mrb[14].mxu1 %v15157_v9  ;;  %v15179_v9 = vand.u32 4294901760, %v15134_v26  ;;  %v15187_v26 = vand.u32 4294901760, %v12582_v24  ;;  %v13202_v24 = vld [vmem:[%s14413_s4 + $0x8] sm:$0xff] }
 0x326   : > { %9782 = vmatprep.mubr.f32.mxu1 %v15159_v6  ;;  %v15180_v6 = vld [vmem:[#allocation66_spill] sm:$0xff]  ;;  %15194 = vst [vmem:[#allocation21_spill] sm:$0xff] %v13202_v24  ;;  %v14751_v29 = vand.u32 4294901760, %v13202_v24 }
 0x327   : > { %10345 = vmatmul.mubr.f32.gmra.mrb[60].mxu0 %v15163_v11  ;;  %v15209_v24 = vld [vmem:[#allocation10_spill] sm:$0xff]  ;;  %v15213_v11 = vld [vmem:[#allocation12_spill] sm:$0xff] }
 0x328   : > { %10347 = vmatprep.mubr.f32.mxu0 %v13019_v44  ;;  %v15212_v44 = vld [vmem:[#allocation94_spill] sm:$0xff] }
 0x329   : > { %9783 = vmatmul.mubr.f32.gmra.mrb[16].mxu1 %v15162_v2  ;;  %v15184_v2 = vld [vmem:[#allocation70_spill] sm:$0xff] }
 0x32a   : > { %9785 = vmatprep.mubr.f32.mxu1 %v15164_v46  ;;  %v15186_v46 = vld [vmem:[#allocation71_spill] sm:$0xff] }
 0x32b   : > { %10348 = vmatmul.mubr.f32.gmra.mrb[62].mxu0 %v13021_v18  ;;  %v15211_v18 = vld [vmem:[#allocation13_spill] sm:$0xff] }
 0x32c   : > { %10356 = vmatprep.mubr.f32.mxu0 %v15167_v51  ;;  %v15242_v51 = vld [vmem:[#allocation39_spill] sm:$0xff] }
 0x32d   : > { %9786 = vmatmul.mubr.f32.gmra.mrb[18].mxu1 %v15165_v36  ;;  %v15188_v36 = vld [vmem:[#allocation74_spill] sm:$0xff] }
 0x32e   : > { %9788 = vmatprep.mubr.f32.mxu1 %v15166_v30  ;;  %v15190_v30 = vld [vmem:[#allocation75_spill] sm:$0xff] }
 0x32f   : > { %10357 = vmatmul.mubr.f32.vlgmr.msra.gmra.mrb[32].mxu0 %v15170_v60  ;;  %v15246_v60 = vld [vmem:[#allocation43_spill] sm:$0xff] }
 0x330   : > { %10359 = vmatprep.mubr.f32.mxu0 %v15172_v63  ;;  %10653 = vmatpush3.bf16.msra.mxu0 %v15168_v19 }
 0x331   : > { %9789 = vmatmul.mubr.f32.gmra.mrb[20].mxu1 %v15169_v22  ;;  %10408 = vmatprep.subr.mxu0 %v12672_v58  ;;  %v15192_v22 = vand.u32 4294901760, %v13004_v25 }
 0x332   : > { %9791 = vmatprep.mubr.f32.mxu1 %v15171_v61 }
 0x333   : > { %10360 = vmatmul.mubr.f32.gmra.mrb[34].mxu0 %v15174_v35  ;;  %v10654_v61 = vpack.c.bf16 %v15192_v22, %v15191_v20  ;;  %v15204_v20 = vld [vmem:[#allocation86_spill] sm:$0xff]  ;;  %v15205_v22 = vld [vmem:[#allocation8_spill] sm:$0xff]  ;;  %v15249_v35 = vand.u32 4294901760, %v15182_v48 }
 0x334   : > { %10362 = vmatprep.mubr.f32.mxu0 %v15176_v57  ;;  %10409 = vmatpush3.msra.mxu0 %v12672_v58  ;;  %v15238_v58 = vand.u32 4294901760, %v15172_v63  ;;  %v15247_v63 = vand.u32 4294901760, %v15180_v6 }
 0x335   : > { %9792 = vmatmul.mubr.f32.gmra.mrb[22].mxu1 %v15173_v31  ;;  %v15195_v31 = vld [vmem:[#allocation5_spill] sm:$0xff]  ;;  %10655 = vmatprep.subr.bf16.mxu0 %v10654_v61 }
 0x336   : > { %9794 = vmatprep.mubr.f32.mxu1 %v15175_v47  ;;  %v14752_v47 = vand.u32 4294901760, %v13197_v5  ;;  %v15210_v5 = vld [vmem:[#allocation91_spill] sm:$0xff] }
 0x337   : > { %10363 = vmatmul.mubr.f32.gmra.mrb[36].mxu0 %v15178_v28 }
 0x338   : > { %10365 = vmatprep.mubr.f32.mxu0 %v15180_v6  ;;  %v13212_v25 = vpack.c.bf16 %v14751_v29, %v14752_v47  ;;  %v15206_v29 = vld [vmem:[#allocation87_spill] sm:$0xff]  ;;  %v13290_v6 = vld [vmem:[%s14413_s4 + $0x10] sm:$0xff] }
 0x339   : > { %9795 = vmatmul.mubr.f32.gmra.mrb[24].mxu1 %v15177_v8  ;;  %v15197_v8 = vld [vmem:[#allocation4_spill] sm:$0xff]  ;;  %v15207_v47 = vld [vmem:[#allocation11_spill] sm:$0xff] }
 0x33a   : > { %9797 = vmatprep.mubr.f32.mxu1 %v15179_v9  ;;  %v15198_v9 = vld [vmem:[#allocation79_spill] sm:$0xff] }
 0x33b   : > { %10366 = vmatmul.mubr.f32.gmra.mrb[38].mxu0 %v15182_v48  ;;  %v13295_v48 = vld [vmem:[%s14413_s4 + $0x18] sm:$0xff] }
 0x33c   : > { %10368 = vmatprep.mubr.f32.mxu0 %v15184_v2 }
 0x33d   : > { %9798 = vmatmul.mubr.f32.gmra.mrb[26].mxu1 %v15181_v38  ;;  %v15199_v38 = vld [vmem:[#allocation7_spill] sm:$0xff] }
 0x33e   : > { %9800 = vmatprep.mubr.f32.mxu1 %v15183_v10  ;;  %v15200_v10 = vld [vmem:[#allocation82_spill] sm:$0xff] }
 0x33f   : > { %10369 = vmatmul.mubr.f32.gmra.mrb[40].mxu0 %v15186_v46 }
 0x340   : > { %10371 = vmatprep.mubr.f32.mxu0 %v15188_v36 }
 0x341   : > { %9801 = vmatmul.mubr.f32.gmra.mrb[28].mxu1 %v15185_v3  ;;  %v15201_v3 = vld [vmem:[#allocation6_spill] sm:$0xff] }
 0x342   : > { %9803 = vmatprep.mubr.f32.mxu1 %v15187_v26  ;;  %v15202_v26 = vld [vmem:[#allocation83_spill] sm:$0xff] }
 0x343   : > { %10372 = vmatmul.mubr.f32.gmra.mrb[42].mxu0 %v15190_v30 }
 0x344   : > { %10374 = vmatprep.mubr.f32.mxu0 %v15196_v52 }
 0x345   : > { %9804 = vmatmul.mubr.f32.gmra.mrb[30].mxu1 %v15189_v41  ;;  %v15203_v41 = vld [vmem:[#allocation9_spill] sm:$0xff] }
 0x346   : > { %9808 = vmatprep.mubr.f32.mxu1 %v15195_v31 }
 0x347   : > { %10375 = vmatmul.mubr.f32.gmra.mrb[44].mxu0 %v15198_v9 }
 0x348   : > { %10377 = vmatprep.mubr.f32.mxu0 %v15200_v10 }
 0x349   : > { %9809 = vmatmul.mubr.f32.vlgmr.msra.gmra.mrb[0].mxu1 %v15197_v8 }
 0x34a   : > { %9857 = vmatpush3.msra.mxu1 %v12262_v33  ;;  %9811 = vmatprep.mubr.f32.mxu1 %v15199_v38  ;;  %v15208_v33 = vld [vmem:[#allocation90_spill] sm:$0xff] }
 0x34b   : > { %10591 = vmatprep.subr.bf16.mxu1 %v13212_v25  ;;  %10378 = vmatmul.mubr.f32.gmra.mrb[46].mxu0 %v15202_v26 }
 0x34c   : > { %10380 = vmatprep.mubr.f32.mxu0 %v15204_v20 }
 0x34d   : > { %9812 = vmatmul.mubr.f32.gmra.mrb[2].mxu1 %v15201_v3 }
 0x34e   : > { %9814 = vmatprep.mubr.f32.mxu1 %v15203_v41 }
 0x34f   : > { %10381 = vmatmul.mubr.f32.gmra.mrb[48].mxu0 %v15206_v29 }
 0x350   : > { %10383 = vmatprep.mubr.f32.mxu0 %v15208_v33 }
 0x351   : > { %9815 = vmatmul.mubr.f32.gmra.mrb[4].mxu1 %v15205_v22 }
 0x352   : > { %9817 = vmatprep.mubr.f32.mxu1 %v15207_v47 }
 0x353   : > { %10384 = vmatmul.mubr.f32.gmra.mrb[50].mxu0 %v15210_v5 }
 0x354   : > { %10386 = vmatprep.mubr.f32.mxu0 %v15212_v44 }
 0x355   : > { %9818 = vmatmul.mubr.f32.gmra.mrb[6].mxu1 %v15209_v24 }
 0x356   : > { %9820 = vmatprep.mubr.f32.mxu1 %v15211_v18 }
 0x357   : > { %10387 = vmatmul.mubr.f32.gmra.mrb[52].mxu0 %v15214_v43 }
 0x358   : > { %10389 = vmatprep.mubr.f32.mxu0 %v15216_v14 }
 0x359   : > { %9821 = vmatmul.mubr.f32.gmra.mrb[8].mxu1 %v15213_v11 }
 0x35a   : > { %9823 = vmatprep.mubr.f32.mxu1 %v15215_v4 }
 0x35b   : > { %10390 = vmatmul.mubr.f32.gmra.mrb[54].mxu0 %v15218_v50 }
 0x35c   : > { %10392 = vmatprep.mubr.f32.mxu0 %v15220_v53 }
 0x35d   : > { %9824 = vmatmul.mubr.f32.gmra.mrb[10].mxu1 %v15217_v1 }
 0x35e   : > { %9826 = vmatprep.mubr.f32.mxu1 %v15219_v49 }
 0x35f   : > { %10393 = vmatmul.mubr.f32.gmra.mrb[56].mxu0 %v15222_v23 }
 0x360   : > { %10395 = vmatprep.mubr.f32.mxu0 %v15224_v15 }
 0x361   : > { %9827 = vmatmul.mubr.f32.gmra.mrb[12].mxu1 %v15221_v17 }
 0x362   : > { %9829 = vmatprep.mubr.f32.mxu1 %v15223_v13 }
 0x363   : > { %10396 = vmatmul.mubr.f32.gmra.mrb[58].mxu0 %v15226_v59 }
 0x364   : > { %10398 = vmatprep.mubr.f32.mxu0 %v15228_v0 }
 0x365   : > { %9830 = vmatmul.mubr.f32.gmra.mrb[14].mxu1 %v15225_v42 }
 0x366   : > { %9832 = vmatprep.mubr.f32.mxu1 %v15227_v45 }
 0x367   : > { %10399 = vmatmul.mubr.f32.gmra.mrb[60].mxu0 %v15230_v21 }
 0x368   : > { %10401 = vmatprep.mubr.f32.mxu0 %v13033_v55 }
 0x369   : > { %9833 = vmatmul.mubr.f32.gmra.mrb[16].mxu1 %v15229_v12 }
 0x36a   : > { %9835 = vmatprep.mubr.f32.mxu1 %v15231_v27 }
 0x36b   : > { %10402 = vmatmul.mubr.f32.gmra.mrb[62].mxu0 %v13036_v39 }
 0x36c   : > { %10410 = vmatprep.mubr.f32.mxu0 %v15234_v34  ;;  %v15243_v34 = vand.u32 4294901760, %v15176_v57  ;;  %v15250_v57 = vld [vmem:[#allocation47_spill] sm:$0xff] }
 0x36d   : > { %9836 = vmatmul.mubr.f32.gmra.mrb[18].mxu1 %v15232_v40 }
 0x36e   : > { %9838 = vmatprep.mubr.f32.mxu1 %v15233_v16 }
 0x36f   : > { %10411 = vmatmul.mubr.f32.vlgmr.msra.gmra.mrb[32].mxu0 %v15236_v56  ;;  %v15244_v56 = vld [vmem:[#allocation38_spill] sm:$0xff] }
 0x370   : > { %10413 = vmatprep.mubr.f32.mxu0 %v15238_v58  ;;  %10657 = vmatpush3.bf16.msra.mxu0 %v10654_v61  ;;  %v15245_v58 = vand.u32 4294901760, %v15178_v28  ;;  %v15252_v61 = vld [vmem:[#allocation46_spill] sm:$0xff]  ;;  %v15253_v28 = vand.u32 4294901760, %v15186_v46  ;;  %v4303_v46 = vand.u32 4294901760, %v13295_v48 }
 0x371   : > { %9839 = vmatmul.mubr.f32.gmra.mrb[20].mxu1 %v15235_v62  ;;  %10462 = vmatprep.subr.mxu0 %v15239_v54 }
 0x372   : > { %9841 = vmatprep.mubr.f32.mxu1 %v15237_v37 }
 0x373   : > { %10414 = vmatmul.mubr.f32.gmra.mrb[34].mxu0 %v15241_v32  ;;  %v15248_v32 = vld [vmem:[#allocation42_spill] sm:$0xff] }
 0x374   : > { %10416 = vmatprep.mubr.f32.mxu0 %v15243_v34  ;;  %10463 = vmatpush3.msra.mxu0 %v15239_v54  ;;  %v15251_v54 = vand.u32 4294901760, %v15184_v2  ;;  %v15254_v34 = vld [vmem:[#allocation49_spill] sm:$0xff]  ;;  %v15255_v2 = vand.u32 4294901760, %v15188_v36 }
 0x375   : > { %9842 = vmatmul.mubr.f32.gmra.mrb[22].mxu1 %v15240_v7  ;;  %10659 = vmatprep.subr.bf16.mxu0 %v15168_v19 }
 0x376   : > { %9844 = vmatprep.mubr.f32.mxu1 %v15242_v51 }
 0x377   : > { %10417 = vmatmul.mubr.f32.gmra.mrb[36].mxu0 %v15245_v58  ;;  %v4300_v58 = vand.u32 4294901760, %v13290_v6 }
 0x378   : > { %10419 = vmatprep.mubr.f32.mxu0 %v15247_v63  ;;  %v15256_v63 = vld [vmem:[#allocation48_spill] sm:$0xff] }
 0x379   : > { %9845 = vmatmul.mubr.f32.gmra.mrb[24].mxu1 %v15244_v56  ;;  %v13312_v36 = vpack.c.bf16 %v4303_v46, %v4300_v58 }
 0x37a   : > { %9847 = vmatprep.mubr.f32.mxu1 %v15246_v60 }
 0x37b   : > { %10420 = vmatmul.mubr.f32.gmra.mrb[38].mxu0 %v15249_v35  ;;  %v15257_v35 = vand.u32 4294901760, %v15190_v30  ;;  %v15260_v30 = vand.u32 4294901760, %v15200_v10  ;;  %v15266_v10 = vand.u32 4294901760, %v15212_v44  ;;  %v15270_v44 = vand.u32 4294901760, %v15220_v53 }
 0x37c   : > { %10422 = vmatprep.mubr.f32.mxu0 %v15251_v54  ;;  %v15258_v54 = vand.u32 4294901760, %v15196_v52  ;;  %v15262_v52 = vand.u32 4294901760, %v15204_v20  ;;  %v15274_v53 = vand.u32 4294901760, %v15228_v0  ;;  %v15279_v0 = vld [vmem:[#allocation50_spill] sm:$0xff]  ;;  %v15303_v20 = vld [vmem:[#allocation100_spill] sm:$0xff] }
 0x37d   : > { %9848 = vmatmul.mubr.f32.gmra.mrb[26].mxu1 %v15248_v32 }
 0x37e   : > { %9850 = vmatprep.mubr.f32.mxu1 %v15250_v57 }
 0x37f   : > { %10423 = vmatmul.mubr.f32.gmra.mrb[40].mxu0 %v15253_v28  ;;  %v15259_v28 = vand.u32 4294901760, %v15198_v9  ;;  %v15264_v9 = vand.u32 4294901760, %v15208_v33  ;;  %v15305_v33 = vld [vmem:[#allocation104_spill] sm:$0xff] }
 0x380   : > { %10425 = vmatprep.mubr.f32.mxu0 %v15255_v2 }
 0x381   : > { %9851 = vmatmul.mubr.f32.gmra.mrb[28].mxu1 %v15252_v61 }
 0x382   : > { %9853 = vmatprep.mubr.f32.mxu1 %v15254_v34 }
 0x383   : > { %10426 = vmatmul.mubr.f32.gmra.mrb[42].mxu0 %v15257_v35 }
 0x384   : > { %10428 = vmatprep.mubr.f32.mxu0 %v15258_v54 }
 0x385   : > { %9854 = vmatmul.mubr.f32.gmra.mrb[30].mxu1 %v15256_v63 }
 0x386   : > { %9858 = vmatprep.mubr.f32.mxu1 %v15195_v31  ;;  %v15261_v31 = vand.u32 4294901760, %v15202_v26  ;;  %v15301_v26 = vld [vmem:[#allocation96_spill] sm:$0xff] }
 0x387   : > { %10429 = vmatmul.mubr.f32.gmra.mrb[44].mxu0 %v15259_v28 }
 0x388   : > { %10431 = vmatprep.mubr.f32.mxu0 %v15260_v30 }
 0x389   : > { %9859 = vmatmul.mubr.f32.vlgmr.msra.gmra.mrb[0].mxu1 %v15197_v8  ;;  %v15263_v8 = vand.u32 4294901760, %v15206_v29  ;;  %v15267_v29 = vand.u32 4294901760, %v15214_v43  ;;  %v15296_v43 = vld [vmem:[#allocation85_spill] sm:$0xff] }
 0x38a   : > { %9861 = vmatprep.mubr.f32.mxu1 %v15199_v38  ;;  %10593 = vmatpush3.bf16.msra.mxu1 %v13212_v25  ;;  %v15265_v38 = vand.u32 4294901760, %v15210_v5  ;;  %v15269_v5 = vand.u32 4294901760, %v15218_v50  ;;  %v15273_v50 = vand.u32 4294901760, %v15226_v59  ;;  %v15277_v59 = vand.u32 4294901760, %v13036_v39  ;;  %v15292_v39 = vld [vmem:[#allocation77_spill] sm:$0xff] }
 0x38b   : > { %10595 = vmatprep.subr.bf16.mxu1 %v13312_v36  ;;  %10432 = vmatmul.mubr.f32.gmra.mrb[46].mxu0 %v15261_v31 }
 0x38c   : > { %10434 = vmatprep.mubr.f32.mxu0 %v15262_v52 }
 0x38d   : > { %9862 = vmatmul.mubr.f32.gmra.mrb[2].mxu1 %v15201_v3  ;;  %v15300_v3 = vld [vmem:[#allocation93_spill] sm:$0xff] }
 0x38e   : > { %9864 = vmatprep.mubr.f32.mxu1 %v15203_v41  ;;  %10597 = vmatpush3.bf16.msra.mxu1 %v13312_v36  ;;  %v15302_v41 = vld [vmem:[#allocation97_spill] sm:$0xff] }
 0x38f   : > { %10435 = vmatmul.mubr.f32.gmra.mrb[48].mxu0 %v15263_v8 }
 0x390   : > { %10437 = vmatprep.mubr.f32.mxu0 %v15264_v9 }
 0x391   : > { %9865 = vmatmul.mubr.f32.gmra.mrb[4].mxu1 %v15205_v22  ;;  %v15304_v22 = vld [vmem:[#allocation101_spill] sm:$0xff] }
 0x392   : > { %9867 = vmatprep.mubr.f32.mxu1 %v15207_v47  ;;  %v15268_v47 = vand.u32 4294901760, %v15216_v14  ;;  %v15272_v14 = vand.u32 4294901760, %v15224_v15  ;;  %v15276_v15 = vand.u32 4294901760, %v13033_v55  ;;  %v15291_v55 = vld [vmem:[#allocation76_spill] sm:$0xff] }
 0x393   : > { %10438 = vmatmul.mubr.f32.gmra.mrb[50].mxu0 %v15265_v38 }
 0x394   : > { %10440 = vmatprep.mubr.f32.mxu0 %v15266_v10 }
 0x395   : > { %9868 = vmatmul.mubr.f32.gmra.mrb[6].mxu1 %v15209_v24  ;;  %v15299_v24 = vld [vmem:[#allocation92_spill] sm:$0xff] }
 0x396   : > { %9870 = vmatprep.mubr.f32.mxu1 %v15211_v18  ;;  %v15271_v18 = vand.u32 4294901760, %v15222_v23  ;;  %v15290_v23 = vld [vmem:[#allocation73_spill] sm:$0xff] }
 0x397   : > { %10441 = vmatmul.mubr.f32.gmra.mrb[52].mxu0 %v15267_v29  ;;  %v13481_v29 = vsub.f32 %v13290_v6, %v4300_v58 }
 0x398   : > { %10443 = vmatprep.mubr.f32.mxu0 %v15268_v47  ;;  %v13486_v47 = vsub.f32 %v13295_v48, %v4303_v46 }
 0x399   : > { %9871 = vmatmul.mubr.f32.gmra.mrb[8].mxu1 %v15213_v11  ;;  %v15297_v11 = vld [vmem:[#allocation88_spill] sm:$0xff]  ;;  %15315 = vst [vmem:[#allocation29_spill] sm:$0xff] %v13481_v29 }
 0x39a   : > { %9873 = vmatprep.mubr.f32.mxu1 %v15215_v4  ;;  %v15295_v4 = vld [vmem:[#allocation84_spill] sm:$0xff]  ;;  %15316 = vst [vmem:[#allocation27_spill] sm:$0xff] %v13486_v47 }
 0x39b   : > { %10444 = vmatmul.mubr.f32.gmra.mrb[54].mxu0 %v15269_v5  ;;  %v13490_v5 = vpack.c.bf16 %v13486_v47, %v13481_v29 }
 0x39c   : > { %10446 = vmatprep.mubr.f32.mxu0 %v15270_v44  ;;  %v13495_v44 = vld [vmem:[%s14412_s3] ss:$0 sm:$0xff] }
 0x39d   : > { %9874 = vmatmul.mubr.f32.gmra.mrb[10].mxu1 %v15217_v1  ;;  %v15294_v1 = vld [vmem:[#allocation81_spill] sm:$0xff] }
 0x39e   : > { %9876 = vmatprep.mubr.f32.mxu1 %v15219_v49  ;;  %v15293_v49 = vld [vmem:[#allocation80_spill] sm:$0xff] }
 0x39f   : > { %10447 = vmatmul.mubr.f32.gmra.mrb[56].mxu0 %v15271_v18 }
 0x3a0   : > { %10449 = vmatprep.mubr.f32.mxu0 %v15272_v14  ;;  %v14819_v14 = vand.u32 4294901760, %v13481_v29 }
 0x3a1   : > { %9877 = vmatmul.mubr.f32.gmra.mrb[12].mxu1 %v15221_v17  ;;  %v15275_v17 = vand.u32 4294901760, %v15230_v21  ;;  %v15280_v21 = vld [vmem:[#allocation55_spill] sm:$0xff] }
 0x3a2   : > { %9879 = vmatprep.mubr.f32.mxu1 %v15223_v13  ;;  %v15289_v13 = vld [vmem:[#allocation72_spill] sm:$0xff] }
 0x3a3   : > { %10450 = vmatmul.mubr.f32.gmra.mrb[58].mxu0 %v15273_v50  ;;  %v14817_v50 = vand.u32 4294901760, %v13486_v47 }
 0x3a4   : > { %10452 = vmatprep.mubr.f32.mxu0 %v15274_v53 }
 0x3a5   : > { %9880 = vmatmul.mubr.f32.gmra.mrb[14].mxu1 %v15225_v42  ;;  %v15288_v42 = vld [vmem:[#allocation69_spill] sm:$0xff] }
 0x3a6   : > { %9882 = vmatprep.mubr.f32.mxu1 %v15227_v45  ;;  %v15278_v45 = vld [vmem:[#allocation51_spill] sm:$0xff] }
 0x3a7   : > { %10453 = vmatmul.mubr.f32.gmra.mrb[60].mxu0 %v15275_v17 }
 0x3a8   : > { %10455 = vmatprep.mubr.f32.mxu0 %v15276_v15  ;;  %v4700_v15 = vsub.f32 %v13481_v29, %v14819_v14 }
 0x3a9   : > { %9883 = vmatmul.mubr.f32.gmra.mrb[16].mxu1 %v15229_v12  ;;  %v15286_v12 = vld [vmem:[#allocation65_spill] sm:$0xff] }
 0x3aa   : > { %9885 = vmatprep.mubr.f32.mxu1 %v15231_v27  ;;  %v15281_v27 = vld [vmem:[#allocation58_spill] sm:$0xff] }
 0x3ab   : > { %10456 = vmatmul.mubr.f32.gmra.mrb[62].mxu0 %v15277_v59 }
 0x3ac   : > { %10464 = vmatprep.mubr.f32.mxu0 %v15278_v45 }
 0x3ad   : > { %9886 = vmatmul.mubr.f32.gmra.mrb[18].mxu1 %v15232_v40  ;;  %v15282_v40 = vld [vmem:[#allocation56_spill] sm:$0xff] }
 0x3ae   : > { %9888 = vmatprep.mubr.f32.mxu1 %v15233_v16  ;;  %v15283_v16 = vld [vmem:[#allocation60_spill] sm:$0xff] }
 0x3af   : > { %10465 = vmatmul.mubr.f32.vlgmr.msra.gmra.mrb[32].mxu0 %v15279_v0 }
 0x3b0   : > { %10467 = vmatprep.mubr.f32.mxu0 %v15280_v21  ;;  %10661 = vmatpush3.bf16.msra.mxu0 %v15168_v19  ;;  %v15298_v19 = vld [vmem:[#allocation89_spill] sm:$0xff] }
 0x3b1   : > { %9889 = vmatmul.mubr.f32.gmra.mrb[20].mxu1 %v15235_v62  ;;  %10516 = vmatprep.subr.mxu0 %v15281_v27  ;;  %v15284_v62 = vld [vmem:[#allocation61_spill] sm:$0xff] }
 0x3b2   : > { %9891 = vmatprep.mubr.f32.mxu1 %v15237_v37  ;;  %v15285_v37 = vld [vmem:[#allocation64_spill] sm:$0xff] }
 0x3b3   : > { %10468 = vmatmul.mubr.f32.gmra.mrb[34].mxu0 %v15282_v40 }
 0x3b4   : > { %10470 = vmatprep.mubr.f32.mxu0 %v15283_v16  ;;  %10517 = vmatpush3.msra.mxu0 %v15281_v27 }
 0x3b5   : > { %9892 = vmatmul.mubr.f32.gmra.mrb[22].mxu1 %v15240_v7  ;;  %v15287_v7 = vld [vmem:[#allocation68_spill] sm:$0xff] }
 0x3b6   : > { %9894 = vmatprep.mubr.f32.mxu1 %v15242_v51  ;;  %v15306_v51 = vld [vmem:[#allocation105_spill] sm:$0xff] }
 0x3b7   : > { %10471 = vmatmul.mubr.f32.gmra.mrb[36].mxu0 %v15284_v62 }
 0x3b8   : > { %10473 = vmatprep.mubr.f32.mxu0 %v15285_v37 }
 0x3b9   : > { %9895 = vmatmul.mubr.f32.gmra.mrb[24].mxu1 %v15244_v56  ;;  %v15307_v56 = vld [vmem:[#allocation108_spill] sm:$0xff] }
 0x3ba   : > { %9897 = vmatprep.mubr.f32.mxu1 %v15246_v60  ;;  %v15308_v60 = vld [vmem:[#allocation109_spill] sm:$0xff] }
 0x3bb   : > { %10474 = vmatmul.mubr.f32.gmra.mrb[38].mxu0 %v15286_v12 }
 0x3bc   : > { %10476 = vmatprep.mubr.f32.mxu0 %v15287_v7 }
 0x3bd   : > { %9898 = vmatmul.mubr.f32.gmra.mrb[26].mxu1 %v15248_v32  ;;  %v15309_v32 = vld [vmem:[#allocation113_spill] sm:$0xff] }
 0x3be   : > { %9900 = vmatprep.mubr.f32.mxu1 %v15250_v57  ;;  %v15310_v57 = vld [vmem:[#allocation114_spill] sm:$0xff] }
 0x3bf   : > { %10477 = vmatmul.mubr.f32.gmra.mrb[40].mxu0 %v15288_v42 }
 0x3c0   : > { %10479 = vmatprep.mubr.f32.mxu0 %v15289_v13 }
 0x3c1   : > { %9901 = vmatmul.mubr.f32.gmra.mrb[28].mxu1 %v15252_v61  ;;  %v15311_v61 = vld [vmem:[#allocation24_spill] sm:$0xff] }
 0x3c2   : > { %9903 = vmatprep.mubr.f32.mxu1 %v15254_v34  ;;  %v15312_v34 = vand.u32 4294901760, %v15311_v61 }
 0x3c3   : > { %10480 = vmatmul.mubr.f32.gmra.mrb[42].mxu0 %v15290_v23 }
 0x3c4   : > { %10482 = vmatprep.mubr.f32.mxu0 %v15291_v55  ;;  %v13427_v2 = vsub.f32 %v15311_v61, %v15312_v34 }
 0x3c5   : > { %9904 = vmatmul.mubr.f32.gmra.mrb[30].mxu1 %v15256_v63  ;;  %v15313_v63 = vld [vmem:[#allocation21_spill] sm:$0xff] }
 0x3c6   : > { %v15314_v35 = vand.u32 4294901760, %v15313_v63  ;;  %v14823_v28 = vand.u32 4294901760, %v13427_v2 }
 0x3c7   : > { %10483 = vmatmul.mubr.f32.gmra.mrb[44].mxu0 %v15292_v39 }
 0x3c8   : > { %10485 = vmatprep.mubr.f32.mxu0 %v15293_v49  ;;  %v13432_v54 = vsub.f32 %v15313_v63, %v15314_v35  ;;  %v4686_v31 = vsub.f32 %v13427_v2, %v14823_v28 }
 0x3ca   : > { %v14822_v30 = vand.u32 4294901760, %v13432_v54  ;;  %v4687_v8 = vand.u32 4294901760, %v4686_v31  ;;  %v13475_v10 = vpack.c.bf16 %v13432_v54, %v13427_v2 }
 0x3cb   : > { %10486 = vmatmul.mubr.f32.gmra.mrb[46].mxu0 %v15294_v1 }
 0x3cc   : > { %10488 = vmatprep.mubr.f32.mxu0 %v15295_v4  ;;  %v4693_v52 = vsub.f32 %v13432_v54, %v14822_v30 }
 0x3ce   : > { %v4694_v9 = vand.u32 4294901760, %v4693_v52 }
 0x3cf   : > { %10489 = vmatmul.mubr.f32.gmra.mrb[48].mxu0 %v15296_v43 }
 0x3d0   : > { %10491 = vmatprep.mubr.f32.mxu0 %v15297_v11  ;;  %v13446_v38 = vpack.c.bf16 %v4694_v9, %v4687_v8 }
 0x3d2   : > { %10599 = vmatprep.subr.bf16.mxu1 %v13446_v38 }
 0x3d3   : > { %10492 = vmatmul.mubr.f32.gmra.mrb[50].mxu0 %v15298_v19 }
 0x3d4   : > { %10494 = vmatprep.mubr.f32.mxu0 %v15299_v24 }
 0x3d7   : > { %10495 = vmatmul.mubr.f32.gmra.mrb[52].mxu0 %v15300_v3 }
 0x3d8   : > { %10497 = vmatprep.mubr.f32.mxu0 %v15301_v26 }
 0x3db   : > { %10498 = vmatmul.mubr.f32.gmra.mrb[54].mxu0 %v15302_v41 }
 0x3dc   : > { %10500 = vmatprep.mubr.f32.mxu0 %v15303_v20 }
 0x3df   : > { %10501 = vmatmul.mubr.f32.gmra.mrb[56].mxu0 %v15304_v22 }
 0x3e0   : > { %10503 = vmatprep.mubr.f32.mxu0 %v15305_v33 }
 0x3e3   : > { %10504 = vmatmul.mubr.f32.gmra.mrb[58].mxu0 %v15306_v51 }
 0x3e4   : > { %10506 = vmatprep.mubr.f32.mxu0 %v15307_v56 }
 0x3e7   : > { %10507 = vmatmul.mubr.f32.gmra.mrb[60].mxu0 %v15308_v60 }
 0x3e8   : > { %10509 = vmatprep.mubr.f32.mxu0 %v15309_v32 }
 0x3eb   : > { %10510 = vmatmul.mubr.f32.gmra.mrb[62].mxu0 %v15310_v57 }
 0x3ec   : > { %10518 = vmatprep.mubr.f32.mxu0 %v15278_v45 }
 0x3ef   : > { %10519 = vmatmul.mubr.f32.vlgmr.msra.gmra.mrb[32].mxu0 %v15279_v0 }
 0x3f0   : > { %10521 = vmatprep.mubr.f32.mxu0 %v15280_v21  ;;  %v4707_v21 = vsub.f32 %v13486_v47, %v14817_v50 }
 0x3f3   : > { %10522 = vmatmul.mubr.f32.gmra.mrb[34].mxu0 %v15282_v40 }
 0x3f4   : > { %10524 = vmatprep.mubr.f32.mxu0 %v15283_v16 }
 0x3f7   : > { %10525 = vmatmul.mubr.f32.gmra.mrb[36].mxu0 %v15284_v62 }
 0x3f8   : > { %10527 = vmatprep.mubr.f32.mxu0 %v15285_v37 }
 0x3fb   : > { %10528 = vmatmul.mubr.f32.gmra.mrb[38].mxu0 %v15286_v12 }
 0x3fc   : > { %10530 = vmatprep.mubr.f32.mxu0 %v15287_v7 }
 0x3ff   : > { %10531 = vmatmul.mubr.f32.gmra.mrb[40].mxu0 %v15288_v42 }
 0x400   : > { %10533 = vmatprep.mubr.f32.mxu0 %v15289_v13  ;;  %v4701_v13 = vand.u32 4294901760, %v4700_v15 }
 0x403   : > { %10534 = vmatmul.mubr.f32.gmra.mrb[42].mxu0 %v15290_v23 }
 0x404   : > { %10536 = vmatprep.mubr.f32.mxu0 %v15291_v55 }
 0x407   : > { %10537 = vmatmul.mubr.f32.gmra.mrb[44].mxu0 %v15292_v39 }
 0x408   : > { %10539 = vmatprep.mubr.f32.mxu0 %v15293_v49 }
 0x40b   : > { %10540 = vmatmul.mubr.f32.gmra.mrb[46].mxu0 %v15294_v1  ;;  %v4708_v1 = vand.u32 4294901760, %v4707_v21 }
 0x40c   : > { %10542 = vmatprep.mubr.f32.mxu0 %v15295_v4 }
 0x40d   : > { %v10602_v35 = vpack.c.bf16 %v4708_v1, %v4701_v13 }
 0x40f   : > { %10543 = vmatmul.mubr.f32.gmra.mrb[48].mxu0 %v15296_v43 }
 0x410   : > { %10545 = vmatprep.mubr.f32.mxu0 %v15297_v11 }
 0x413   : > { %10546 = vmatmul.mubr.f32.gmra.mrb[50].mxu0 %v15298_v19 }
 0x414   : > { %10548 = vmatprep.mubr.f32.mxu0 %v15299_v24 }
 0x417   : > { %10549 = vmatmul.mubr.f32.gmra.mrb[52].mxu0 %v15300_v3 }
 0x418   : > { %10551 = vmatprep.mubr.f32.mxu0 %v15301_v26 }
 0x41b   : > { %10552 = vmatmul.mubr.f32.gmra.mrb[54].mxu0 %v15302_v41 }
 0x41c   : > { %10554 = vmatprep.mubr.f32.mxu0 %v15303_v20 }
 0x41f   : > { %10555 = vmatmul.mubr.f32.gmra.mrb[56].mxu0 %v15304_v22 }
 0x420   : > { %10557 = vmatprep.mubr.f32.mxu0 %v15305_v33 }
 0x423   : > { %10558 = vmatmul.mubr.f32.gmra.mrb[58].mxu0 %v15306_v51 }
 0x424   : > { %10560 = vmatprep.mubr.f32.mxu0 %v15307_v56 }
 0x427   : > { %10561 = vmatmul.mubr.f32.gmra.mrb[60].mxu0 %v15308_v60 }
 0x428   : > { %10563 = vmatprep.mubr.f32.mxu0 %v15309_v32 }
 0x42b   : > { %10564 = vmatmul.mubr.f32.gmra.mrb[62].mxu0 %v15310_v57 }
 0x45c   : > { %v9860_v18 = vpop.f32.mrb[0].mxu1 }
 0x45d   : > { %v10662_v6 = vadd.f32 %v9860_v18, %v13495_v44  ;;  %v3963_v58 = vpop.f32.mrb[1].mxu1 }
 0x45e   : > { %v10663_v48 = vadd.f32 %v13495_v44, %v3963_v58 }
 0x45f   : > { %v4154_v46 = vmax.f32 %v10662_v6, 0.0 }
 0x460   : > { %v4153_v53 = vmax.f32 %v10663_v48, 0.0  ;;  %v9863_v17 = vpop.f32.mrb[2].mxu1 }
 0x461   : > { %v4201_v59 = vsel %vm4196_vm2, %v4154_v46, 0  ;;  %v10664_v45 = vadd.f32 %v9863_v17, %v13495_v44  ;;  %v3975_v0 = vpop.f32.mrb[3].mxu1 }
 0x462   : > { %v13509_v27 = vand.u32 4294901760, %v4201_v59  ;;  %v4198_v40 = vsel %vm4196_vm2, %v4153_v53, 0  ;;  %v10665_v16 = vadd.f32 %v13495_v44, %v3975_v0 }
 0x463   : > { %v13513_v62 = vand.u32 4294901760, %v4198_v40  ;;  %v4156_v37 = vmax.f32 %v10664_v45, 0.0 }
 0x464   : > { %v13516_v12 = vsub.f32 %v4201_v59, %v13509_v27  ;;  %v4155_v7 = vmax.f32 %v10665_v16, 0.0  ;;  %v9866_v42 = vpop.f32.mrb[4].mxu1 }
 0x465   : > { %v13519_v23 = vsub.f32 %v4198_v40, %v13513_v62  ;;  %v4207_v55 = vsel %vm4196_vm2, %v4156_v37, 0  ;;  %v10666_v39 = vadd.f32 %v9866_v42, %v13495_v44  ;;  %v3987_v49 = vpop.f32.mrb[5].mxu1 }
 0x466   : > { %v14816_v4 = vand.u32 4294901760, %v13516_v12  ;;  %v13524_v43 = vand.u32 4294901760, %v4207_v55  ;;  %v4204_v11 = vsel %vm4196_vm2, %v4155_v7, 0  ;;  %v10667_v19 = vadd.f32 %v13495_v44, %v3987_v49 }
 0x467   : > { %v13528_v24 = vand.u32 4294901760, %v4204_v11  ;;  %v4158_v3 = vmax.f32 %v10666_v39, 0.0  ;;  %v14820_v26 = vand.u32 4294901760, %v13519_v23 }
 0x468   : > { %v4375_v41 = vsub.f32 %v13516_v12, %v14816_v4  ;;  %v13535_v20 = vsub.f32 %v4207_v55, %v13524_v43  ;;  %v4157_v22 = vmax.f32 %v10667_v19, 0.0  ;;  %v9869_v33 = vpop.f32.mrb[6].mxu1 }
 0x469   : > { %v13538_v51 = vsub.f32 %v4204_v11, %v13528_v24  ;;  %v4213_v56 = vsel %vm4196_vm2, %v4158_v3, 0  ;;  %v10668_v60 = vadd.f32 %v9869_v33, %v13495_v44  ;;  %v3999_v32 = vpop.f32.mrb[7].mxu1  ;;  %v4365_v57 = vsub.f32 %v13519_v23, %v14820_v26 }
 0x46a   : > { %v13545_v61 = vand.u32 4294901760, %v4213_v56  ;;  %v4210_v34 = vsel %vm4196_vm2, %v4157_v22, 0  ;;  %v10669_v63 = vadd.f32 %v13495_v44, %v3999_v32  ;;  %v4376_v18 = vand.u32 4294901760, %v4375_v41 }
 0x46b   : > { %v13549_v31 = vand.u32 4294901760, %v4210_v34  ;;  %v4160_v52 = vmax.f32 %v10668_v60, 0.0  ;;  %v4366_v8 = vand.u32 4294901760, %v4365_v57  ;;  %v14814_v9 = vand.u32 4294901760, %v13538_v51 }
 0x46c   : > { %v13553_v6 = vsub.f32 %v4213_v56, %v13545_v61  ;;  %v4159_v58 = vmax.f32 %v10669_v63, 0.0  ;;  %v9872_v48 = vpop.f32.mrb[8].mxu1  ;;  %v14813_v46 = vand.u32 4294901760, %v13535_v20 }
 0x46d   : > { %v13557_v53 = vsub.f32 %v4210_v34, %v13549_v31  ;;  %v4219_v17 = vsel %vm4196_vm2, %v4160_v52, 0  ;;  %v10670_v15 = vadd.f32 %v9872_v48, %v13495_v44  ;;  %v4011_v59 = vpop.f32.mrb[9].mxu1  ;;  %9914 = vmatprep.mubr.f32.mxu1 %v4366_v8  ;;  %v4385_v45 = vsub.f32 %v13538_v51, %v14814_v9 }
 0x46e   : > { %v13564_v0 = vand.u32 4294901760, %v4219_v17  ;;  %v4216_v21 = vsel %vm4196_vm2, %v4159_v58, 0  ;;  %v10671_v40 = vadd.f32 %v13495_v44, %v4011_v59  ;;  %9915 = vmatmul.mubr.f32.vlgmr.msra.gmra.mrb[32].mxu1 %v4376_v18  ;;  %v4395_v16 = vsub.f32 %v13535_v20, %v14813_v46 }
 0x46f   : > { %v13571_v37 = vand.u32 4294901760, %v4216_v21  ;;  %v4162_v7 = vmax.f32 %v10670_v15, 0.0  ;;  %10601 = vmatpush3.bf16.msra.mxu1 %v13446_v38  ;;  %v4386_v42 = vand.u32 4294901760, %v4385_v45  ;;  %v14811_v13 = vand.u32 4294901760, %v13557_v53 }
 0x470   : > { %v13576_v55 = vsub.f32 %v4219_v17, %v13564_v0  ;;  %v4161_v39 = vmax.f32 %v10671_v40, 0.0  ;;  %v9875_v49 = vpop.f32.mrb[10].mxu1  ;;  %v4396_v1 = vand.u32 4294901760, %v4395_v16  ;;  %v14810_v11 = vand.u32 4294901760, %v13553_v6  ;;  %10603 = vmatprep.subr.bf16.mxu1 %v10602_v35 }
 0x471   : > { %v13580_v19 = vsub.f32 %v4216_v21, %v13571_v37  ;;  %v4225_v3 = vsel %vm4196_vm2, %v4162_v7, 0  ;;  %v10672_v41 = vadd.f32 %v9875_v49, %v13495_v44  ;;  %v4023_v38 = vpop.f32.mrb[11].mxu1  ;;  %9917 = vmatprep.mubr.f32.mxu1 %v4386_v42  ;;  %v4405_v22 = vsub.f32 %v13557_v53, %v14811_v13 }
 0x472   : > { %v13587_v33 = vand.u32 4294901760, %v4225_v3  ;;  %v4222_v56 = vsel %vm4196_vm2, %v4161_v39, 0  ;;  %v10673_v60 = vadd.f32 %v13495_v44, %v4023_v38  ;;  %9918 = vmatmul.mubr.f32.gmra.mrb[34].mxu1 %v4396_v1  ;;  %v4415_v32 = vsub.f32 %v13553_v6, %v14810_v11 }
 0x473   : > { %v13594_v57 = vand.u32 4294901760, %v4222_v56  ;;  %v4164_v34 = vmax.f32 %v10672_v41, 0.0  ;;  %v4406_v63 = vand.u32 4294901760, %v4405_v22  ;;  %v14808_v52 = vand.u32 4294901760, %v13580_v19  ;;  %10605 = vmatpush3.bf16.msra.mxu1 %v10602_v35 }
 0x474   : > { %v13598_v8 = vsub.f32 %v4225_v3, %v13587_v33  ;;  %v4163_v18 = vmax.f32 %v10673_v60, 0.0  ;;  %v9878_v58 = vpop.f32.mrb[12].mxu1  ;;  %v4416_v48 = vand.u32 4294901760, %v4415_v32  ;;  %v14807_v17 = vand.u32 4294901760, %v13576_v55  ;;  %10607 = vmatprep.subr.bf16.mxu1 %v13475_v10 }
 0x475   : > { %v13603_v15 = vsub.f32 %v4222_v56, %v13594_v57  ;;  %v4231_v59 = vsel %vm4196_vm2, %v4164_v34, 0  ;;  %v10674_v45 = vadd.f32 %v9878_v58, %v13495_v44  ;;  %v4035_v21 = vpop.f32.mrb[13].mxu1  ;;  %9920 = vmatprep.mubr.f32.mxu1 %v4406_v63  ;;  %v4425_v35 = vsub.f32 %v13580_v19, %v14808_v52 }
 0x476   : > { %15317 = vst [vmem:[#allocation33_spill] sm:$0xff] %v13598_v8  ;;  %v13610_v40 = vand.u32 4294901760, %v4231_v59  ;;  %v4228_v16 = vsel %vm4196_vm2, %v4163_v18, 0  ;;  %v10675_v7 = vadd.f32 %v13495_v44, %v4035_v21  ;;  %9921 = vmatmul.mubr.f32.gmra.mrb[36].mxu1 %v4416_v48  ;;  %v4435_v42 = vsub.f32 %v13576_v55, %v14807_v17 }
 0x477   : > { %15318 = vst [vmem:[#allocation32_spill] sm:$0xff] %v13603_v15  ;;  %v13617_v39 = vand.u32 4294901760, %v4228_v16  ;;  %v4166_v49 = vmax.f32 %v10674_v45, 0.0  ;;  %v4426_v1 = vand.u32 4294901760, %v4425_v35  ;;  %v14805_v3 = vand.u32 4294901760, %v13603_v15 }
 0x478   : > { %v13621_v41 = vsub.f32 %v4231_v59, %v13610_v40  ;;  %v4165_v38 = vmax.f32 %v10675_v7, 0.0  ;;  %v9881_v22 = vpop.f32.mrb[14].mxu1  ;;  %v4436_v56 = vand.u32 4294901760, %v4435_v42  ;;  %v14806_v60 = vand.u32 4294901760, %v13598_v8 }
 0x479   : > { %v13625_v32 = vsub.f32 %v4228_v16, %v13617_v39  ;;  %v4237_v34 = vsel %vm4196_vm2, %v4166_v49, 0  ;;  %v10676_v63 = vadd.f32 %v9881_v22, %v13495_v44  ;;  %v4047_v18 = vpop.f32.mrb[15].mxu1  ;;  %9923 = vmatprep.mubr.f32.mxu1 %v4426_v1  ;;  %v4445_v58 = vsub.f32 %v13603_v15, %v14805_v3 }
 0x47a   : > { %15319 = vst [vmem:[#allocation37_spill] sm:$0xff] %v13621_v41  ;;  %v13632_v48 = vand.u32 4294901760, %v4237_v34  ;;  %v4234_v59 = vsel %vm4196_vm2, %v4165_v38, 0  ;;  %v10677_v45 = vadd.f32 %v13495_v44, %v4047_v18  ;;  %9924 = vmatmul.mubr.f32.gmra.mrb[38].mxu1 %v4436_v56  ;;  %v4455_v21 = vsub.f32 %v13598_v8, %v14806_v60 }
 0x47b   : > { %15320 = vst [vmem:[#allocation36_spill] sm:$0xff] %v13625_v32  ;;  %v13639_v35 = vand.u32 4294901760, %v4234_v59  ;;  %v4168_v16 = vmax.f32 %v10676_v63, 0.0  ;;  %v4446_v7 = vand.u32 4294901760, %v4445_v58  ;;  %v14809_v42 = vand.u32 4294901760, %v13625_v32 }
 0x47c   : > { %v13643_v49 = vsub.f32 %v4237_v34, %v13632_v48  ;;  %v4167_v1 = vmax.f32 %v10677_v45, 0.0  ;;  %v9884_v22 = vpop.f32.mrb[16].mxu1  ;;  %v4456_v3 = vand.u32 4294901760, %v4455_v21  ;;  %v14812_v38 = vand.u32 4294901760, %v13621_v41 }
 0x47d   : > { %v13647_v56 = vsub.f32 %v4234_v59, %v13639_v35  ;;  %v4243_v18 = vsel %vm4196_vm2, %v4168_v16, 0  ;;  %v10678_v60 = vadd.f32 %v9884_v22, %v13495_v44  ;;  %v4059_v17 = vpop.f32.mrb[17].mxu1  ;;  %9926 = vmatprep.mubr.f32.mxu1 %v4446_v7  ;;  %v4465_v63 = vsub.f32 %v13625_v32, %v14809_v42 }
 0x47e   : > { %15321 = vst [vmem:[#allocation41_spill] sm:$0xff] %v13643_v49  ;;  %v13654_v34 = vand.u32 4294901760, %v4243_v18  ;;  %v4240_v58 = vsel %vm4196_vm2, %v4167_v1, 0  ;;  %v10679_v45 = vadd.f32 %v13495_v44, %v4059_v17  ;;  %9927 = vmatmul.mubr.f32.gmra.mrb[40].mxu1 %v4456_v3  ;;  %v4475_v59 = vsub.f32 %v13621_v41, %v14812_v38 }
 0x47f   : > { %15322 = vst [vmem:[#allocation40_spill] sm:$0xff] %v13647_v56  ;;  %v13661_v21 = vand.u32 4294901760, %v4240_v58  ;;  %v4170_v16 = vmax.f32 %v10678_v60, 0.0  ;;  %v4466_v22 = vand.u32 4294901760, %v4465_v63  ;;  %v14815_v7 = vand.u32 4294901760, %v13647_v56 }
 0x480   : > { %v13665_v52 = vsub.f32 %v4243_v18, %v13654_v34  ;;  %v4169_v42 = vmax.f32 %v10679_v45, 0.0  ;;  %v9887_v11 = vpop.f32.mrb[18].mxu1  ;;  %v4476_v13 = vand.u32 4294901760, %v4475_v59  ;;  %v14818_v1 = vand.u32 4294901760, %v13643_v49 }
 0x481   : > { %v13669_v17 = vsub.f32 %v4240_v58, %v13661_v21  ;;  %v4249_v3 = vsel %vm4196_vm2, %v4170_v16, 0  ;;  %v10680_v38 = vadd.f32 %v9887_v11, %v13495_v44  ;;  %v4071_v46 = vpop.f32.mrb[19].mxu1  ;;  %9929 = vmatprep.mubr.f32.mxu1 %v4466_v22  ;;  %v4485_v60 = vsub.f32 %v13647_v56, %v14815_v7 }
 0x482   : > { %15323 = vst [vmem:[#allocation45_spill] sm:$0xff] %v13665_v52  ;;  %v13676_v18 = vand.u32 4294901760, %v4249_v3  ;;  %v4246_v63 = vsel %vm4196_vm2, %v4169_v42, 0  ;;  %v10681_v45 = vadd.f32 %v13495_v44, %v4071_v46  ;;  %9930 = vmatmul.mubr.f32.gmra.mrb[42].mxu1 %v4476_v13  ;;  %v4495_v58 = vsub.f32 %v13643_v49, %v14818_v1 }
 0x483   : > { %15324 = vst [vmem:[#allocation44_spill] sm:$0xff] %v13669_v17  ;;  %v13683_v59 = vand.u32 4294901760, %v4246_v63  ;;  %v4172_v11 = vmax.f32 %v10680_v38, 0.0  ;;  %v4486_v16 = vand.u32 4294901760, %v4485_v60  ;;  %v14821_v22 = vand.u32 4294901760, %v13669_v17 }
 0x484   : > { %v13687_v9 = vsub.f32 %v4249_v3, %v13676_v18  ;;  %v4171_v7 = vmax.f32 %v10681_v45, 0.0  ;;  %v9890_v4 = vpop.f32.mrb[20].mxu1  ;;  %v4496_v50 = vand.u32 4294901760, %v4495_v58  ;;  %v14824_v42 = vand.u32 4294901760, %v13665_v52 }
 0x485   : > { %v13691_v46 = vsub.f32 %v4246_v63, %v13683_v59  ;;  %v4255_v13 = vsel %vm4196_vm2, %v4172_v11, 0  ;;  %v10682_v1 = vadd.f32 %v9890_v4, %v13495_v44  ;;  %v4083_v14 = vpop.f32.mrb[21].mxu1  ;;  %9932 = vmatprep.mubr.f32.mxu1 %v4486_v16  ;;  %v4505_v38 = vsub.f32 %v13669_v17, %v14821_v22 }
 0x486   : > { %15325 = vst [vmem:[#allocation18_spill] sm:$0xff] %v13687_v9  ;;  %v13698_v3 = vand.u32 4294901760, %v4255_v13  ;;  %v4252_v60 = vsel %vm4196_vm2, %v4171_v7, 0  ;;  %v10683_v45 = vadd.f32 %v13495_v44, %v4083_v14  ;;  %9933 = vmatmul.mubr.f32.gmra.mrb[44].mxu1 %v4496_v50  ;;  %v4515_v63 = vsub.f32 %v13665_v52, %v14824_v42 }
 0x487   : > { %15326 = vst [vmem:[#allocation23_spill] sm:$0xff] %v13691_v46  ;;  %v13705_v58 = vand.u32 4294901760, %v4252_v60  ;;  %v4174_v4 = vmax.f32 %v10682_v1, 0.0  ;;  %v4506_v11 = vand.u32 4294901760, %v4505_v38  ;;  %v14827_v16 = vand.u32 4294901760, %v13691_v46 }
 0x488   : > { %15327 = vst [vmem:[#allocation112_spill] sm:$0xff] %v13698_v3  ;;  %v13709_v26 = vsub.f32 %v4255_v13, %v13698_v3  ;;  %v4173_v22 = vmax.f32 %v10683_v45, 0.0  ;;  %v9893_v30 = vpop.f32.mrb[22].mxu1  ;;  %v4516_v28 = vand.u32 4294901760, %v4515_v63  ;;  %v14832_v7 = vand.u32 4294901760, %v13687_v9 }
 0x489   : > { %v13713_v14 = vsub.f32 %v4252_v60, %v13705_v58  ;;  %v4261_v50 = vsel %vm4196_vm2, %v4174_v4, 0  ;;  %v10684_v42 = vadd.f32 %v9893_v30, %v13495_v44  ;;  %v4095_v47 = vpop.f32.mrb[23].mxu1  ;;  %9935 = vmatprep.mubr.f32.mxu1 %v4506_v11  ;;  %v4525_v1 = vsub.f32 %v13691_v46, %v14827_v16 }
 0x48a   : > { %15328 = vst [vmem:[#allocation53_spill] sm:$0xff] %v13709_v26  ;;  %v13720_v13 = vand.u32 4294901760, %v4261_v50  ;;  %v4258_v38 = vsel %vm4196_vm2, %v4173_v22, 0  ;;  %v10685_v45 = vadd.f32 %v13495_v44, %v4095_v47  ;;  %9936 = vmatmul.mubr.f32.gmra.mrb[46].mxu1 %v4516_v28  ;;  %v4535_v60 = vsub.f32 %v13687_v9, %v14832_v7 }
 0x48b   : > { %15329 = vst [vmem:[#allocation54_spill] sm:$0xff] %v13713_v14  ;;  %v13727_v63 = vand.u32 4294901760, %v4258_v38  ;;  %v4176_v30 = vmax.f32 %v10684_v42, 0.0  ;;  %v4526_v4 = vand.u32 4294901760, %v4525_v1  ;;  %v14837_v11 = vand.u32 4294901760, %v13713_v14 }
 0x48c   : > { %15330 = vst [vmem:[#allocation52_spill] sm:$0xff] %v13720_v13  ;;  %v13731_v29 = vsub.f32 %v4261_v50, %v13720_v13  ;;  %v4175_v16 = vmax.f32 %v10685_v45, 0.0  ;;  %v9896_v46 = vpop.f32.mrb[24].mxu1  ;;  %v4536_v52 = vand.u32 4294901760, %v4535_v60  ;;  %v14842_v22 = vand.u32 4294901760, %v13709_v26 }
 0x48d   : > { %15331 = vst [vmem:[#allocation57_spill] sm:$0xff] %v13727_v63  ;;  %v13735_v28 = vsub.f32 %v4258_v38, %v13727_v63  ;;  %v4267_v47 = vsel %vm4196_vm2, %v4176_v30, 0  ;;  %v10686_v7 = vadd.f32 %v9896_v46, %v13495_v44  ;;  %v4107_v9 = vpop.f32.mrb[25].mxu1  ;;  %9938 = vmatprep.mubr.f32.mxu1 %v4526_v4  ;;  %v4545_v42 = vsub.f32 %v13713_v14, %v14837_v11 }
 0x48e   : > { %15332 = vst [vmem:[#allocation59_spill] sm:$0xff] %v13731_v29  ;;  %v13742_v50 = vand.u32 4294901760, %v4267_v47  ;;  %v4264_v1 = vsel %vm4196_vm2, %v4175_v16, 0  ;;  %v10687_v45 = vadd.f32 %v13495_v44, %v4107_v9  ;;  %9939 = vmatmul.mubr.f32.gmra.mrb[48].mxu1 %v4536_v52  ;;  %v4555_v38 = vsub.f32 %v13709_v26, %v14842_v22 }
 0x48f   : > { %15333 = vst [vmem:[#allocation62_spill] sm:$0xff] %v13735_v28  ;;  %v13749_v60 = vand.u32 4294901760, %v4264_v1  ;;  %v4178_v46 = vmax.f32 %v10686_v7, 0.0  ;;  %v4546_v30 = vand.u32 4294901760, %v4545_v42  ;;  %v14847_v4 = vand.u32 4294901760, %v13735_v28 }
 0x490   : > { %15334 = vst [vmem:[#allocation63_spill] sm:$0xff] %v13742_v50  ;;  %v13753_v17 = vsub.f32 %v4267_v47, %v13742_v50  ;;  %v4177_v11 = vmax.f32 %v10687_v45, 0.0  ;;  %v9899_v14 = vpop.f32.mrb[26].mxu1  ;;  %v4556_v49 = vand.u32 4294901760, %v4555_v38  ;;  %v14852_v16 = vand.u32 4294901760, %v13731_v29 }
 0x491   : > { %15335 = vst [vmem:[#allocation66_spill] sm:$0xff] %v13749_v60  ;;  %v13757_v9 = vsub.f32 %v4264_v1, %v13749_v60  ;;  %v4273_v52 = vsel %vm4196_vm2, %v4178_v46, 0  ;;  %v10688_v22 = vadd.f32 %v9899_v14, %v13495_v44  ;;  %v4119_v26 = vpop.f32.mrb[27].mxu1  ;;  %9941 = vmatprep.mubr.f32.mxu1 %v4546_v30  ;;  %v4565_v7 = vsub.f32 %v13735_v28, %v14847_v4 }
 0x492   : > { %15336 = vst [vmem:[#allocation67_spill] sm:$0xff] %v13753_v17  ;;  %v13764_v47 = vand.u32 4294901760, %v4273_v52  ;;  %v4270_v42 = vsel %vm4196_vm2, %v4177_v11, 0  ;;  %v10689_v45 = vadd.f32 %v13495_v44, %v4119_v26  ;;  %9942 = vmatmul.mubr.f32.gmra.mrb[50].mxu1 %v4556_v49  ;;  %v4575_v1 = vsub.f32 %v13731_v29, %v14852_v16 }
 0x493   : > { %15337 = vst [vmem:[#allocation70_spill] sm:$0xff] %v13757_v9  ;;  %v13771_v38 = vand.u32 4294901760, %v4270_v42  ;;  %v4180_v14 = vmax.f32 %v10688_v22, 0.0  ;;  %v4566_v46 = vand.u32 4294901760, %v4565_v7  ;;  %v14857_v30 = vand.u32 4294901760, %v13757_v9 }
 0x494   : > { %15338 = vst [vmem:[#allocation71_spill] sm:$0xff] %v13764_v47  ;;  %v13775_v56 = vsub.f32 %v4273_v52, %v13764_v47  ;;  %v4179_v4 = vmax.f32 %v10689_v45, 0.0  ;;  %v9902_v28 = vpop.f32.mrb[28].mxu1  ;;  %v4576_v41 = vand.u32 4294901760, %v4575_v1  ;;  %v14862_v11 = vand.u32 4294901760, %v13753_v17 }
 0x495   : > { %15339 = vst [vmem:[#allocation74_spill] sm:$0xff] %v13771_v38  ;;  %v13779_v26 = vsub.f32 %v4270_v42, %v13771_v38  ;;  %v4279_v49 = vsel %vm4196_vm2, %v4180_v14, 0  ;;  %v10690_v16 = vadd.f32 %v9902_v28, %v13495_v44  ;;  %v4131_v29 = vpop.f32.mrb[29].mxu1  ;;  %9944 = vmatprep.mubr.f32.mxu1 %v4566_v46  ;;  %v4585_v22 = vsub.f32 %v13757_v9, %v14857_v30 }
 0x496   : > { %v13786_v52 = vand.u32 4294901760, %v4279_v49  ;;  %v4276_v7 = vsel %vm4196_vm2, %v4179_v4, 0  ;;  %v10691_v45 = vadd.f32 %v13495_v44, %v4131_v29  ;;  %9945 = vmatmul.mubr.f32.gmra.mrb[52].mxu1 %v4576_v41  ;;  %v4595_v42 = vsub.f32 %v13753_v17, %v14862_v11 }
 0x497   : > { %15340 = vst [vmem:[#allocation75_spill] sm:$0xff] %v13779_v26  ;;  %v13793_v1 = vand.u32 4294901760, %v4276_v7  ;;  %v4182_v28 = vmax.f32 %v10690_v16, 0.0  ;;  %v4586_v14 = vand.u32 4294901760, %v4585_v22  ;;  %v14867_v46 = vand.u32 4294901760, %v13779_v26 }
 0x498   : > { %15341 = vst [vmem:[#allocation5_spill] sm:$0xff] %v13786_v52  ;;  %v13797_v32 = vsub.f32 %v4279_v49, %v13786_v52  ;;  %v4181_v30 = vmax.f32 %v10691_v45, 0.0  ;;  %v9905_v9 = vpop.f32.mrb[30].mxu1  ;;  %v4596_v8 = vand.u32 4294901760, %v4595_v42  ;;  %v14872_v4 = vand.u32 4294901760, %v13775_v56 }
 0x499   : > { %15342 = vst [vmem:[#allocation78_spill] sm:$0xff] %v13793_v1  ;;  %v13801_v29 = vsub.f32 %v4276_v7, %v13793_v1  ;;  %v4285_v41 = vsel %vm4196_vm2, %v4182_v28, 0  ;;  %v10692_v11 = vadd.f32 %v9905_v9, %v13495_v44  ;;  %v4143_v17 = vpop.f32.mrb[31].mxu1  ;;  %9947 = vmatprep.mubr.f32.mxu1 %v4586_v14  ;;  %v4605_v16 = vsub.f32 %v13779_v26, %v14867_v46 }
 0x49a   : > { %15343 = vst [vmem:[#allocation4_spill] sm:$0xff] %v13797_v32  ;;  %v13808_v49 = vand.u32 4294901760, %v4285_v41  ;;  %v4282_v22 = vsel %vm4196_vm2, %v4181_v30, 0  ;;  %v10693_v45 = vadd.f32 %v13495_v44, %v4143_v17  ;;  %9948 = vmatmul.mubr.f32.gmra.mrb[54].mxu1 %v4596_v8  ;;  %v4615_v7 = vsub.f32 %v13775_v56, %v14872_v4 }
 0x49b   : > { %v13815_v42 = vand.u32 4294901760, %v4282_v22  ;;  %v4184_v9 = vmax.f32 %v10692_v11, 0.0  ;;  %v4606_v28 = vand.u32 4294901760, %v4605_v16  ;;  %v14870_v14 = vand.u32 4294901760, %v13801_v29 }
 0x49c   : > { %15344 = vst [vmem:[#allocation79_spill] sm:$0xff] %v13808_v49  ;;  %v13819_v15 = vsub.f32 %v4285_v41, %v13808_v49  ;;  %v4183_v46 = vmax.f32 %v10693_v45, 0.0  ;;  %v4616_v26 = vand.u32 4294901760, %v4615_v7  ;;  %v14871_v30 = vand.u32 4294901760, %v13797_v32 }
 0x49d   : > { %15345 = vst [vmem:[#allocation7_spill] sm:$0xff] %v13815_v42  ;;  %v13823_v44 = vsub.f32 %v4282_v22, %v13815_v42  ;;  %v4291_v8 = vsel %vm4196_vm2, %v4184_v9, 0  ;;  %9950 = vmatprep.mubr.f32.mxu1 %v4606_v28  ;;  %v4625_v17 = vsub.f32 %v13801_v29, %v14870_v14 }
 0x49e   : > { %v13829_v11 = vand.u32 4294901760, %v4291_v8  ;;  %v4288_v16 = vsel %vm4196_vm2, %v4183_v46, 0  ;;  %9951 = vmatmul.mubr.f32.gmra.mrb[56].mxu1 %v4616_v26  ;;  %v4635_v41 = vsub.f32 %v13797_v32, %v14871_v30  ;;  %v14875_v45 = vand.u32 4294901760, %v13819_v15 }
 0x49f   : > { %v13836_v22 = vand.u32 4294901760, %v4288_v16  ;;  %v4626_v7 = vand.u32 4294901760, %v4625_v17  ;;  %v14878_v9 = vand.u32 4294901760, %v13823_v44 }
 0x4a0   : > { %15346 = vst [vmem:[#allocation82_spill] sm:$0xff] %v13829_v11  ;;  %v13840_v28 = vsub.f32 %v4291_v8, %v13829_v11  ;;  %v4636_v14 = vand.u32 4294901760, %v4635_v41  ;;  %v4655_v46 = vsub.f32 %v13819_v15, %v14875_v45 }
 0x4a1   : > { %15347 = vst [vmem:[#allocation6_spill] sm:$0xff] %v13836_v22  ;;  %v13846_v26 = vsub.f32 %v4288_v16, %v13836_v22  ;;  %9953 = vmatprep.mubr.f32.mxu1 %v4626_v7  ;;  %v4645_v30 = vsub.f32 %v13823_v44, %v14878_v9 }
 0x4a2   : > { %9954 = vmatmul.mubr.f32.gmra.mrb[58].mxu1 %v4636_v14  ;;  %v14876_v17 = vand.u32 4294901760, %v13840_v28  ;;  %v4656_v32 = vand.u32 4294901760, %v4655_v46 }
 0x4a3   : > { %v4646_v4 = vand.u32 4294901760, %v4645_v30  ;;  %v14877_v8 = vand.u32 4294901760, %v13846_v26 }
 0x4a4   : > { %v4675_v41 = vsub.f32 %v13840_v28, %v14876_v17 }
 0x4a5   : > { %9956 = vmatprep.mubr.f32.mxu1 %v4646_v4  ;;  %v4665_v16 = vsub.f32 %v13846_v26, %v14877_v8 }
 0x4a6   : > { %9957 = vmatmul.mubr.f32.gmra.mrb[60].mxu1 %v4656_v32  ;;  %v4676_v45 = vand.u32 4294901760, %v4675_v41 }
 0x4a7   : > { %v4666_v7 = vand.u32 4294901760, %v4665_v16 }
 0x4a9   : > { %9959 = vmatprep.mubr.f32.mxu1 %v4666_v7 }
 0x4aa   : > { %9960 = vmatmul.mubr.f32.gmra.mrb[62].mxu1 %v4676_v45 }
 0x4ab   : > { %9970 = vmatprep.mubr.f32.mxu1 %v13513_v62 }
 0x4ae   : > { %9971 = vmatmul.mubr.f32.vlgmr.msra.gmra.mrb[32].mxu1 %v13509_v27 }
 0x4af   : > { %10609 = vmatpush3.bf16.msra.mxu1 %v13475_v10  ;;  %9973 = vmatprep.mubr.f32.mxu1 %v13528_v24 }
 0x4b0   : > { %10611 = vmatprep.subr.bf16.mxu1 %v13490_v5 }
 0x4b2   : > { %9974 = vmatmul.mubr.f32.gmra.mrb[34].mxu1 %v13524_v43 }
 0x4b3   : > { %9976 = vmatprep.mubr.f32.mxu1 %v13549_v31  ;;  %10613 = vmatpush3.bf16.msra.mxu1 %v13490_v5 }
 0x4b4   : > { %10615 = vmatprep.subr.bf16.mxu1 %v13212_v25 }
 0x4b6   : > { %9977 = vmatmul.mubr.f32.gmra.mrb[36].mxu1 %v13545_v61 }
 0x4b7   : > { %9979 = vmatprep.mubr.f32.mxu1 %v13571_v37 }
 0x4ba   : > { %9980 = vmatmul.mubr.f32.gmra.mrb[38].mxu1 %v13564_v0 }
 0x4bb   : > { %9982 = vmatprep.mubr.f32.mxu1 %v13594_v57 }
 0x4be   : > { %9983 = vmatmul.mubr.f32.gmra.mrb[40].mxu1 %v13587_v33 }
 0x4bf   : > { %9985 = vmatprep.mubr.f32.mxu1 %v13617_v39 }
 0x4c2   : > { %9986 = vmatmul.mubr.f32.gmra.mrb[42].mxu1 %v13610_v40  ;;  %v13876_v10 = vpop.f32.mrb[32].mxu0 }
 0x4c3   : > { %9988 = vmatprep.mubr.f32.mxu1 %v13639_v35  ;;  %15348 = vst [vmem:[#allocation83_spill] sm:$0xff] %v13876_v10  ;;  %v13878_v5 = vpop.f32.mrb[33].mxu0  ;;  %v15396_v10 = vld [vmem:[#allocation70_spill] sm:$0xff] }
 0x4c4   : > { %15349 = vst [vmem:[#allocation9_spill] sm:$0xff] %v13878_v5  ;;  %v15393_v5 = vld [vmem:[#allocation53_spill] sm:$0xff] }
 0x4c6   : > { %9989 = vmatmul.mubr.f32.gmra.mrb[44].mxu1 %v13632_v48  ;;  %v13882_v32 = vpop.f32.mrb[34].mxu0 }
 0x4c7   : > { %9991 = vmatprep.mubr.f32.mxu1 %v13661_v21  ;;  %15350 = vst [vmem:[#allocation86_spill] sm:$0xff] %v13882_v32  ;;  %v13884_v4 = vpop.f32.mrb[35].mxu0  ;;  %v15392_v32 = vld [vmem:[#allocation54_spill] sm:$0xff] }
 0x4c8   : > { %15351 = vst [vmem:[#allocation8_spill] sm:$0xff] %v13884_v4  ;;  %v15389_v4 = vld [vmem:[#allocation45_spill] sm:$0xff] }
 0x4ca   : > { %9992 = vmatmul.mubr.f32.gmra.mrb[46].mxu1 %v13654_v34  ;;  %v13888_v14 = vpop.f32.mrb[36].mxu0 }
 0x4cb   : > { %9994 = vmatprep.mubr.f32.mxu1 %v13683_v59  ;;  %15352 = vst [vmem:[#allocation87_spill] sm:$0xff] %v13888_v14  ;;  %v13890_v30 = vpop.f32.mrb[37].mxu0  ;;  %v15388_v14 = vld [vmem:[#allocation44_spill] sm:$0xff] }
 0x4cc   : > { %15353 = vst [vmem:[#allocation11_spill] sm:$0xff] %v13890_v30  ;;  %v15385_v30 = vld [vmem:[#allocation37_spill] sm:$0xff] }
 0x4ce   : > { %9995 = vmatmul.mubr.f32.gmra.mrb[48].mxu1 %v13676_v18  ;;  %v13894_v45 = vpop.f32.mrb[38].mxu0 }
 0x4cf   : > { %9997 = vmatprep.mubr.f32.mxu1 %v13705_v58  ;;  %15354 = vst [vmem:[#allocation90_spill] sm:$0xff] %v13894_v45  ;;  %v13896_v46 = vpop.f32.mrb[39].mxu0 }
 0x4d0   : > { %15355 = vst [vmem:[#allocation10_spill] sm:$0xff] %v13896_v46 }
 0x4d2   : > { %9998 = vmatmul.mubr.f32.gmra.mrb[50].mxu1 %v13698_v3  ;;  %v13900_v41 = vpop.f32.mrb[40].mxu0  ;;  %v15408_v3 = vand.u32 4294901760, %v13557_v53 }
 0x4d3   : > { %10000 = vmatprep.mubr.f32.mxu1 %v13727_v63  ;;  %15356 = vst [vmem:[#allocation91_spill] sm:$0xff] %v13900_v41  ;;  %v13902_v16 = vpop.f32.mrb[41].mxu0  ;;  %v15407_v63 = vand.u32 4294901760, %v13535_v20 }
 0x4d4   : > { %15357 = vst [vmem:[#allocation13_spill] sm:$0xff] %v13902_v16 }
 0x4d6   : > { %10001 = vmatmul.mubr.f32.gmra.mrb[52].mxu1 %v13720_v13  ;;  %v13906_v7 = vpop.f32.mrb[42].mxu0  ;;  %v15406_v13 = vand.u32 4294901760, %v13538_v51 }
 0x4d7   : > { %10003 = vmatprep.mubr.f32.mxu1 %v13749_v60  ;;  %15358 = vst [vmem:[#allocation94_spill] sm:$0xff] %v13906_v7  ;;  %v13908_v17 = vpop.f32.mrb[43].mxu0  ;;  %v15405_v60 = vand.u32 4294901760, %v13516_v12 }
 0x4d8   : > { %15359 = vst [vmem:[#allocation12_spill] sm:$0xff] %v13908_v17 }
 0x4da   : > { %10004 = vmatmul.mubr.f32.gmra.mrb[54].mxu1 %v13742_v50  ;;  %v13912_v8 = vpop.f32.mrb[44].mxu0 }
 0x4db   : > { %10006 = vmatprep.mubr.f32.mxu1 %v13771_v38  ;;  %15360 = vst [vmem:[#allocation95_spill] sm:$0xff] %v13912_v8  ;;  %v13914_v9 = vpop.f32.mrb[45].mxu0 }
 0x4dc   : > { %15361 = vst [vmem:[#allocation15_spill] sm:$0xff] %v13914_v9 }
 0x4de   : > { %10007 = vmatmul.mubr.f32.gmra.mrb[56].mxu1 %v13764_v47  ;;  %v13918_v16 = vpop.f32.mrb[46].mxu0  ;;  %v15403_v47 = vld [vmem:[#allocation27_spill] sm:$0xff] }
 0x4df   : > { %10009 = vmatprep.mubr.f32.mxu1 %v13793_v1  ;;  %15362 = vst [vmem:[#allocation98_spill] sm:$0xff] %v13918_v16  ;;  %v13920_v41 = vpop.f32.mrb[47].mxu0  ;;  %v15404_v38 = vand.u32 4294901760, %v15403_v47  ;;  %v15422_v47 = vand.u32 4294901760, %v15392_v32 }
 0x4e0   : > { %15363 = vst [vmem:[#allocation14_spill] sm:$0xff] %v13920_v41 }
 0x4e2   : > { %10010 = vmatmul.mubr.f32.gmra.mrb[58].mxu1 %v13786_v52  ;;  %v13924_v17 = vpop.f32.mrb[48].mxu0  ;;  %v15401_v52 = vld [vmem:[#allocation29_spill] sm:$0xff] }
 0x4e3   : > { %10012 = vmatprep.mubr.f32.mxu1 %v13815_v42  ;;  %15364 = vst [vmem:[#allocation99_spill] sm:$0xff] %v13924_v17  ;;  %v13926_v7 = vpop.f32.mrb[49].mxu0  ;;  %v15400_v42 = vand.u32 4294901760, %v13519_v23  ;;  %v15402_v1 = vand.u32 4294901760, %v15401_v52 }
 0x4e4   : > { %15365 = vst [vmem:[#allocation17_spill] sm:$0xff] %v13926_v7 }
 0x4e5   : > { %v10626_v50 = vpack.c.bf16 %v15404_v38, %v15402_v1  ;;  %v15423_v38 = vand.u32 4294901760, %v15393_v5 }
 0x4e6   : > { %10013 = vmatmul.mubr.f32.gmra.mrb[60].mxu1 %v13808_v49  ;;  %v13930_v9 = vpop.f32.mrb[50].mxu0  ;;  %v15399_v49 = vld [vmem:[#allocation4_spill] sm:$0xff] }
 0x4e7   : > { %10015 = vmatprep.mubr.f32.mxu1 %v13836_v22  ;;  %15366 = vst [vmem:[#allocation102_spill] sm:$0xff] %v13930_v9  ;;  %v13932_v8 = vpop.f32.mrb[51].mxu0  ;;  %v15370_v9 = vand.u32 4294901760, %v13427_v2  ;;  %v15398_v22 = vld [vmem:[#allocation75_spill] sm:$0xff] }
 0x4e8   : > { %15367 = vst [vmem:[#allocation16_spill] sm:$0xff] %v13932_v8  ;;  %v15371_v8 = vand.u32 4294901760, %v13432_v54 }
 0x4ea   : > { %10016 = vmatmul.mubr.f32.gmra.mrb[62].mxu1 %v13829_v11  ;;  %v13936_v41 = vpop.f32.mrb[52].mxu0  ;;  %v10622_v7 = vpack.c.bf16 %v15371_v8, %v15370_v9  ;;  %v15378_v9 = vld [vmem:[#allocation32_spill] sm:$0xff]  ;;  %v15397_v11 = vld [vmem:[#allocation67_spill] sm:$0xff] }
 0x4eb   : > { %10026 = vmatprep.mubr.f32.mxu1 %v13519_v23  ;;  %15368 = vst [vmem:[#allocation103_spill] sm:$0xff] %v13936_v41  ;;  %v13938_v16 = vpop.f32.mrb[53].mxu0  ;;  %v15409_v23 = vand.u32 4294901760, %v13553_v6 }
 0x4ec   : > { %15369 = vst [vmem:[#allocation20_spill] sm:$0xff] %v13938_v16 }
 0x4ee   : > { %10027 = vmatmul.mubr.f32.vlgmr.msra.gmra.mrb[32].mxu1 %v13516_v12  ;;  %v13948_v17 = vpop.f32.mrb[54].mxu0  ;;  %v15410_v12 = vand.u32 4294901760, %v13580_v19 }
 0x4ef   : > { %10617 = vmatpush3.bf16.msra.mxu1 %v13212_v25  ;;  %10029 = vmatprep.mubr.f32.mxu1 %v13538_v51  ;;  %15372 = vst [vmem:[#allocation106_spill] sm:$0xff] %v13948_v17  ;;  %v13950_v46 = vpop.f32.mrb[55].mxu0  ;;  %v15381_v17 = vld [vmem:[#allocation33_spill] sm:$0xff]  ;;  %v15412_v51 = vand.u32 4294901760, %v15378_v9 }
 0x4f0   : > { %10619 = vmatprep.subr.bf16.mxu1 %v13312_v36  ;;  %15373 = vst [vmem:[#allocation19_spill] sm:$0xff] %v13950_v46 }
 0x4f2   : > { %10030 = vmatmul.mubr.f32.gmra.mrb[34].mxu1 %v13535_v20  ;;  %v13955_v16 = vpop.f32.mrb[56].mxu0  ;;  %v15413_v20 = vand.u32 4294901760, %v15381_v17 }
 0x4f3   : > { %10032 = vmatprep.mubr.f32.mxu1 %v13557_v53  ;;  %10621 = vmatpush3.bf16.msra.mxu1 %v13312_v36  ;;  %15374 = vst [vmem:[#allocation107_spill] sm:$0xff] %v13955_v16  ;;  %v13957_v41 = vpop.f32.mrb[57].mxu0  ;;  %v15382_v16 = vld [vmem:[#allocation36_spill] sm:$0xff] }
 0x4f4   : > { %10623 = vmatprep.subr.bf16.mxu1 %v10622_v7  ;;  %15375 = vst [vmem:[#allocation3_spill] sm:$0xff] %v13957_v41  ;;  %v15414_v53 = vand.u32 4294901760, %v15382_v16 }
 0x4f6   : > { %10033 = vmatmul.mubr.f32.gmra.mrb[36].mxu1 %v13553_v6  ;;  %v13961_v2 = vpop.f32.mrb[58].mxu0 }
 0x4f7   : > { %10035 = vmatprep.mubr.f32.mxu1 %v13580_v19  ;;  %15376 = vst [vmem:[#allocation110_spill] sm:$0xff] %v13961_v2  ;;  %v13963_v54 = vpop.f32.mrb[59].mxu0  ;;  %v15386_v2 = vld [vmem:[#allocation40_spill] sm:$0xff] }
 0x4f8   : > { %15377 = vst [vmem:[#allocation28_spill] sm:$0xff] %v13963_v54  ;;  %v15387_v54 = vld [vmem:[#allocation41_spill] sm:$0xff]  ;;  %v15416_v6 = vand.u32 4294901760, %v15386_v2 }
 0x4f9   : > { %v15417_v19 = vand.u32 4294901760, %v15387_v54 }
 0x4fa   : > { %10036 = vmatmul.mubr.f32.gmra.mrb[38].mxu1 %v13576_v55  ;;  %v13967_v8 = vpop.f32.mrb[60].mxu0 }
 0x4fb   : > { %10038 = vmatprep.mubr.f32.mxu1 %v15378_v9  ;;  %15379 = vst [vmem:[#allocation111_spill] sm:$0xff] %v13967_v8  ;;  %v13969_v46 = vpop.f32.mrb[61].mxu0  ;;  %v15390_v8 = vld [vmem:[#allocation23_spill] sm:$0xff] }
 0x4fc   : > { %15380 = vst [vmem:[#allocation26_spill] sm:$0xff] %v13969_v46  ;;  %v15391_v46 = vld [vmem:[#allocation18_spill] sm:$0xff] }
 0x4fe   : > { %10039 = vmatmul.mubr.f32.gmra.mrb[40].mxu1 %v15381_v17  ;;  %v13973_v41 = vpop.f32.mrb[62].mxu0  ;;  %v15427_v17 = vand.u32 4294901760, %v15397_v11 }
 0x4ff   : > { %10041 = vmatprep.mubr.f32.mxu1 %v15382_v16  ;;  %15383 = vst [vmem:[#allocation25_spill] sm:$0xff] %v13973_v41  ;;  %v13975_v45 = vpop.f32.mrb[63].mxu0  ;;  %v15394_v41 = vld [vmem:[#allocation62_spill] sm:$0xff] }
 0x500   : > { %15384 = vst [vmem:[#allocation31_spill] sm:$0xff] %v13975_v45  ;;  %v15395_v45 = vld [vmem:[#allocation59_spill] sm:$0xff]  ;;  %v15424_v52 = vand.u32 4294901760, %v15394_v41  ;;  %v15448_v16 = vld [vmem:[#allocation82_spill] sm:$0xff] }
 0x501   : > { %v15425_v1 = vand.u32 4294901760, %v15395_v45 }
 0x502   : > { %10042 = vmatmul.mubr.f32.gmra.mrb[42].mxu1 %v15385_v30 }
 0x503   : > { %10044 = vmatprep.mubr.f32.mxu1 %v15386_v2 }
 0x506   : > { %10045 = vmatmul.mubr.f32.gmra.mrb[44].mxu1 %v15387_v54  ;;  %v15453_v54 = vld [vmem:[#allocation87_spill] sm:$0xff] }
 0x507   : > { %10047 = vmatprep.mubr.f32.mxu1 %v15388_v14 }
 0x50a   : > { %10048 = vmatmul.mubr.f32.gmra.mrb[46].mxu1 %v15389_v4 }
 0x50b   : > { %10050 = vmatprep.mubr.f32.mxu1 %v15390_v8 }
 0x50e   : > { %10051 = vmatmul.mubr.f32.gmra.mrb[48].mxu1 %v15391_v46 }
 0x50f   : > { %10053 = vmatprep.mubr.f32.mxu1 %v15392_v32  ;;  %v15429_v32 = vand.u32 4294901760, %v13775_v56 }
 0x512   : > { %10054 = vmatmul.mubr.f32.gmra.mrb[50].mxu1 %v15393_v5  ;;  %v15430_v5 = vand.u32 4294901760, %v13801_v29 }
 0x513   : > { %10056 = vmatprep.mubr.f32.mxu1 %v15394_v41  ;;  %v15447_v41 = vld [vmem:[#allocation6_spill] sm:$0xff] }
 0x516   : > { %10057 = vmatmul.mubr.f32.gmra.mrb[52].mxu1 %v15395_v45  ;;  %v15445_v45 = vld [vmem:[#allocation7_spill] sm:$0xff] }
 0x517   : > { %10059 = vmatprep.mubr.f32.mxu1 %v15396_v10 }
 0x51a   : > { %10060 = vmatmul.mubr.f32.gmra.mrb[54].mxu1 %v15397_v11  ;;  %v15434_v11 = vand.u32 4294901760, %v13846_v26 }
 0x51b   : > { %10062 = vmatprep.mubr.f32.mxu1 %v15398_v22 }
 0x51e   : > { %10063 = vmatmul.mubr.f32.gmra.mrb[56].mxu1 %v13775_v56  ;;  %v15439_v56 = vld [vmem:[#allocation66_spill] sm:$0xff] }
 0x51f   : > { %10065 = vmatprep.mubr.f32.mxu1 %v13801_v29  ;;  %v15440_v29 = vld [vmem:[#allocation63_spill] sm:$0xff] }
 0x522   : > { %10066 = vmatmul.mubr.f32.gmra.mrb[58].mxu1 %v15399_v49 }
 0x523   : > { %10068 = vmatprep.mubr.f32.mxu1 %v13823_v44 }
 0x526   : > { %10069 = vmatmul.mubr.f32.gmra.mrb[60].mxu1 %v13819_v15 }
 0x527   : > { %10071 = vmatprep.mubr.f32.mxu1 %v13846_v26  ;;  %v15444_v26 = vld [vmem:[#allocation5_spill] sm:$0xff] }
 0x52a   : > { %10072 = vmatmul.mubr.f32.gmra.mrb[62].mxu1 %v13840_v28 }
 0x52b   : > { %10082 = vmatprep.mubr.f32.mxu1 %v15400_v42  ;;  %v15426_v42 = vand.u32 4294901760, %v15396_v10  ;;  %v15433_v10 = vand.u32 4294901760, %v13819_v15  ;;  %v15438_v15 = vld [vmem:[#allocation52_spill] sm:$0xff] }
 0x52e   : > { %10083 = vmatmul.mubr.f32.vlgmr.msra.gmra.mrb[32].mxu1 %v15405_v60  ;;  %v15411_v60 = vand.u32 4294901760, %v13576_v55  ;;  %v15418_v55 = vand.u32 4294901760, %v15388_v14  ;;  %v15431_v14 = vand.u32 4294901760, %v15399_v49  ;;  %v15441_v49 = vld [vmem:[#allocation74_spill] sm:$0xff] }
 0x52f   : > { %10625 = vmatpush3.bf16.msra.mxu1 %v10622_v7  ;;  %10085 = vmatprep.mubr.f32.mxu1 %v15406_v13  ;;  %v15419_v13 = vand.u32 4294901760, %v15389_v4  ;;  %v15428_v4 = vand.u32 4294901760, %v15398_v22  ;;  %v15435_v22 = vand.u32 4294901760, %v13840_v28  ;;  %v15443_v28 = vld [vmem:[#allocation78_spill] sm:$0xff] }
 0x530   : > { %10627 = vmatprep.subr.bf16.mxu1 %v10626_v50 }
 0x532   : > { %10086 = vmatmul.mubr.f32.gmra.mrb[34].mxu1 %v15407_v63  ;;  %v15420_v63 = vand.u32 4294901760, %v15390_v8  ;;  %v15454_v8 = vld [vmem:[#allocation11_spill] sm:$0xff] }
 0x533   : > { %10088 = vmatprep.mubr.f32.mxu1 %v15408_v3  ;;  %10629 = vmatpush3.bf16.msra.mxu1 %v10626_v50  ;;  %v15415_v3 = vand.u32 4294901760, %v15385_v30  ;;  %v15421_v50 = vand.u32 4294901760, %v15391_v46  ;;  %v15432_v30 = vand.u32 4294901760, %v13823_v44  ;;  %v15442_v44 = vld [vmem:[#allocation71_spill] sm:$0xff] }
 0x534   : > { %10631 = vmatprep.subr.bf16.mxu1 %v13212_v25  ;;  %v15446_v46 = vld [vmem:[#allocation79_spill] sm:$0xff] }
 0x536   : > { %10089 = vmatmul.mubr.f32.gmra.mrb[36].mxu1 %v15409_v23 }
 0x537   : > { %10091 = vmatprep.mubr.f32.mxu1 %v15410_v12 }
 0x53a   : > { %10092 = vmatmul.mubr.f32.gmra.mrb[38].mxu1 %v15411_v60 }
 0x53b   : > { %10094 = vmatprep.mubr.f32.mxu1 %v15412_v51 }
 0x53e   : > { %10095 = vmatmul.mubr.f32.gmra.mrb[40].mxu1 %v15413_v20 }
 0x53f   : > { %10097 = vmatprep.mubr.f32.mxu1 %v15414_v53  ;;  %v15455_v53 = vld [vmem:[#allocation90_spill] sm:$0xff] }
 0x542   : > { %10098 = vmatmul.mubr.f32.gmra.mrb[42].mxu1 %v15415_v3 }
 0x543   : > { %10100 = vmatprep.mubr.f32.mxu1 %v15416_v6  ;;  %v15456_v6 = vld [vmem:[#allocation10_spill] sm:$0xff] }
 0x546   : > { %10101 = vmatmul.mubr.f32.gmra.mrb[44].mxu1 %v15417_v19 }
 0x547   : > { %10103 = vmatprep.mubr.f32.mxu1 %v15418_v55 }
 0x54a   : > { %10104 = vmatmul.mubr.f32.gmra.mrb[46].mxu1 %v15419_v13 }
 0x54b   : > { %10106 = vmatprep.mubr.f32.mxu1 %v15420_v63 }
 0x54e   : > { %10107 = vmatmul.mubr.f32.gmra.mrb[48].mxu1 %v15421_v50 }
 0x54f   : > { %10109 = vmatprep.mubr.f32.mxu1 %v15422_v47  ;;  %v15457_v47 = vld [vmem:[#allocation91_spill] sm:$0xff] }
 0x552   : > { %10110 = vmatmul.mubr.f32.gmra.mrb[50].mxu1 %v15423_v38 }
 0x553   : > { %10112 = vmatprep.mubr.f32.mxu1 %v15424_v52  ;;  %v15458_v52 = vld [vmem:[#allocation13_spill] sm:$0xff] }
 0x556   : > { %10113 = vmatmul.mubr.f32.gmra.mrb[52].mxu1 %v15425_v1 }
 0x557   : > { %10115 = vmatprep.mubr.f32.mxu1 %v15426_v42 }
 0x55a   : > { %10116 = vmatmul.mubr.f32.gmra.mrb[54].mxu1 %v15427_v17 }
 0x55b   : > { %10118 = vmatprep.mubr.f32.mxu1 %v15428_v4 }
 0x55e   : > { %10119 = vmatmul.mubr.f32.gmra.mrb[56].mxu1 %v15429_v32 }
 0x55f   : > { %10121 = vmatprep.mubr.f32.mxu1 %v15430_v5  ;;  %v15459_v5 = vld [vmem:[#allocation94_spill] sm:$0xff] }
 0x562   : > { %10122 = vmatmul.mubr.f32.gmra.mrb[58].mxu1 %v15431_v14 }
 0x563   : > { %10124 = vmatprep.mubr.f32.mxu1 %v15432_v30  ;;  %v15460_v30 = vld [vmem:[#allocation12_spill] sm:$0xff] }
 0x566   : > { %10125 = vmatmul.mubr.f32.gmra.mrb[60].mxu1 %v15433_v10 }
 0x567   : > { %10127 = vmatprep.mubr.f32.mxu1 %v15434_v11 }
 0x56a   : > { %10128 = vmatmul.mubr.f32.gmra.mrb[62].mxu1 %v15435_v22 }
 0x56b   : > { %10138 = vmatprep.mubr.f32.mxu1 %v13513_v62 }
 0x56e   : > { %10139 = vmatmul.mubr.f32.vlgmr.msra.gmra.mrb[32].mxu1 %v13509_v27 }
 0x56f   : > { %10633 = vmatpush3.bf16.msra.mxu1 %v13212_v25  ;;  %10141 = vmatprep.mubr.f32.mxu1 %v13528_v24  ;;  %v15436_v25 = vld [vmem:[#allocation112_spill] sm:$0xff] }
 0x570   : > { %10635 = vmatprep.subr.bf16.mxu1 %v13312_v36 }
 0x572   : > { %10142 = vmatmul.mubr.f32.gmra.mrb[34].mxu1 %v13524_v43 }
 0x573   : > { %10144 = vmatprep.mubr.f32.mxu1 %v13549_v31  ;;  %10637 = vmatpush3.bf16.msra.mxu1 %v13312_v36  ;;  %v15437_v36 = vld [vmem:[#allocation57_spill] sm:$0xff] }
 0x576   : > { %10145 = vmatmul.mubr.f32.gmra.mrb[36].mxu1 %v13545_v61 }
 0x577   : > { %10147 = vmatprep.mubr.f32.mxu1 %v13571_v37 }
 0x57a   : > { %10148 = vmatmul.mubr.f32.gmra.mrb[38].mxu1 %v13564_v0 }
 0x57b   : > { %10150 = vmatprep.mubr.f32.mxu1 %v13594_v57 }
 0x57e   : > { %10151 = vmatmul.mubr.f32.gmra.mrb[40].mxu1 %v13587_v33 }
 0x57f   : > { %10153 = vmatprep.mubr.f32.mxu1 %v13617_v39 }
 0x582   : > { %10154 = vmatmul.mubr.f32.gmra.mrb[42].mxu1 %v13610_v40 }
 0x583   : > { %10156 = vmatprep.mubr.f32.mxu1 %v13639_v35 }
 0x586   : > { %10157 = vmatmul.mubr.f32.gmra.mrb[44].mxu1 %v13632_v48 }
 0x587   : > { %10159 = vmatprep.mubr.f32.mxu1 %v13661_v21 }
 0x58a   : > { %10160 = vmatmul.mubr.f32.gmra.mrb[46].mxu1 %v13654_v34 }
 0x58b   : > { %10162 = vmatprep.mubr.f32.mxu1 %v13683_v59 }
 0x58e   : > { %10163 = vmatmul.mubr.f32.gmra.mrb[48].mxu1 %v13676_v18 }
 0x58f   : > { %10165 = vmatprep.mubr.f32.mxu1 %v13705_v58 }
 0x592   : > { %10166 = vmatmul.mubr.f32.gmra.mrb[50].mxu1 %v15436_v25 }
 0x593   : > { %10168 = vmatprep.mubr.f32.mxu1 %v15437_v36 }
 0x596   : > { %10169 = vmatmul.mubr.f32.gmra.mrb[52].mxu1 %v15438_v15 }
 0x597   : > { %10171 = vmatprep.mubr.f32.mxu1 %v15439_v56 }
 0x59a   : > { %10172 = vmatmul.mubr.f32.gmra.mrb[54].mxu1 %v15440_v29 }
 0x59b   : > { %10174 = vmatprep.mubr.f32.mxu1 %v15441_v49 }
 0x59e   : > { %10175 = vmatmul.mubr.f32.gmra.mrb[56].mxu1 %v15442_v44 }
 0x59f   : > { %10177 = vmatprep.mubr.f32.mxu1 %v15443_v28 }
 0x5a2   : > { %10178 = vmatmul.mubr.f32.gmra.mrb[58].mxu1 %v15444_v26 }
 0x5a3   : > { %10180 = vmatprep.mubr.f32.mxu1 %v15445_v45 }
 0x5a6   : > { %10181 = vmatmul.mubr.f32.gmra.mrb[60].mxu1 %v15446_v46 }
 0x5a7   : > { %10183 = vmatprep.mubr.f32.mxu1 %v15447_v41 }
 0x5aa   : > { %10184 = vmatmul.mubr.f32.gmra.mrb[62].mxu1 %v15448_v16 }
 0x5ab   : > { %10194 = vmatprep.mubr.f32.mxu1 %v13513_v62 }
 0x5ae   : > { %10195 = vmatmul.mubr.f32.vlgmr.msra.gmra.mrb[32].mxu1 %v13509_v27  ;;  %v14138_v27 = vld [vmem:[%s14414_s5] ss:$0 sm:$0xff] }
 0x5af   : > { %10197 = vmatprep.mubr.f32.mxu1 %v13528_v24 }
 0x5b2   : > { %10198 = vmatmul.mubr.f32.gmra.mrb[34].mxu1 %v13524_v43 }
 0x5b3   : > { %10200 = vmatprep.mubr.f32.mxu1 %v13549_v31  ;;  %v15449_v31 = vld [vmem:[#allocation83_spill] sm:$0xff] }
 0x5b6   : > { %10201 = vmatmul.mubr.f32.gmra.mrb[36].mxu1 %v13545_v61 }
 0x5b7   : > { %10203 = vmatprep.mubr.f32.mxu1 %v13571_v37  ;;  %v15450_v37 = vld [vmem:[#allocation9_spill] sm:$0xff] }
 0x5ba   : > { %10204 = vmatmul.mubr.f32.gmra.mrb[38].mxu1 %v13564_v0 }
 0x5bb   : > { %10206 = vmatprep.mubr.f32.mxu1 %v13594_v57 }
 0x5be   : > { %10207 = vmatmul.mubr.f32.gmra.mrb[40].mxu1 %v13587_v33 }
 0x5bf   : > { %10209 = vmatprep.mubr.f32.mxu1 %v13617_v39 }
 0x5c2   : > { %10210 = vmatmul.mubr.f32.gmra.mrb[42].mxu1 %v13610_v40 }
 0x5c3   : > { %10212 = vmatprep.mubr.f32.mxu1 %v13639_v35  ;;  %v15451_v35 = vld [vmem:[#allocation86_spill] sm:$0xff] }
 0x5c6   : > { %10213 = vmatmul.mubr.f32.gmra.mrb[44].mxu1 %v13632_v48 }
 0x5c7   : > { %10215 = vmatprep.mubr.f32.mxu1 %v13661_v21  ;;  %v15452_v21 = vld [vmem:[#allocation8_spill] sm:$0xff] }
 0x5ca   : > { %10216 = vmatmul.mubr.f32.gmra.mrb[46].mxu1 %v13654_v34 }
 0x5cb   : > { %10218 = vmatprep.mubr.f32.mxu1 %v13683_v59 }
 0x5ce   : > { %10219 = vmatmul.mubr.f32.gmra.mrb[48].mxu1 %v13676_v18 }
 0x5cf   : > { %10221 = vmatprep.mubr.f32.mxu1 %v13705_v58 }
 0x5d2   : > { %10222 = vmatmul.mubr.f32.gmra.mrb[50].mxu1 %v15436_v25 }
 0x5d3   : > { %10224 = vmatprep.mubr.f32.mxu1 %v15437_v36 }
 0x5d6   : > { %10225 = vmatmul.mubr.f32.gmra.mrb[52].mxu1 %v15438_v15  ;;  %v15461_v15 = vld [vmem:[#allocation95_spill] sm:$0xff] }
 0x5d7   : > { %10227 = vmatprep.mubr.f32.mxu1 %v15439_v56 }
 0x5da   : > { %10228 = vmatmul.mubr.f32.gmra.mrb[54].mxu1 %v15440_v29  ;;  %v15462_v29 = vld [vmem:[#allocation15_spill] sm:$0xff] }
 0x5db   : > { %10230 = vmatprep.mubr.f32.mxu1 %v15441_v49 }
 0x5de   : > { %10231 = vmatmul.mubr.f32.gmra.mrb[56].mxu1 %v15442_v44 }
 0x5df   : > { %10233 = vmatprep.mubr.f32.mxu1 %v15443_v28 }
 0x5e2   : > { %10234 = vmatmul.mubr.f32.gmra.mrb[58].mxu1 %v15444_v26 }
 0x5e3   : > { %10236 = vmatprep.mubr.f32.mxu1 %v15445_v45 }
 0x5e6   : > { %10237 = vmatmul.mubr.f32.gmra.mrb[60].mxu1 %v15446_v46  ;;  %v15463_v46 = vld [vmem:[#allocation98_spill] sm:$0xff] }
 0x5e7   : > { %10239 = vmatprep.mubr.f32.mxu1 %v15447_v41 }
 0x5ea   : > { %10240 = vmatmul.mubr.f32.gmra.mrb[62].mxu1 %v15448_v16  ;;  %v15464_v16 = vld [vmem:[#allocation14_spill] sm:$0xff] }
 0x681   : > { %v10196_v62 = vpop.f32.mrb[32].mxu1 }
 0x682   : > { %v10694_v43 = vadd.f32 %v10196_v62, %v14138_v27  ;;  %v5921_v24 = vpop.f32.mrb[33].mxu1 }
 0x683   : > { %v10695_v61 = vadd.f32 %v14138_v27, %v5921_v24 }
 0x684   : > { %v8016_v0 = vmul.f32 %v10694_v43, %v15449_v31 }
 0x685   : > { %v8015_v33 = vmul.f32 %v10695_v61, %v15450_v37  ;;  %v10199_v57 = vpop.f32.mrb[34].mxu1 }
 0x686   : > { %8049 = vst.msk [vmem:[%s14144_s11 + $0x8] sm:$0xff] %vm8047_vm3, %v8016_v0  ;;  %v10696_v40 = vadd.f32 %v10199_v57, %v14138_v27  ;;  %v5933_v39 = vpop.f32.mrb[35].mxu1  ;;  %v15465_v0 = vld [vmem:[#allocation99_spill] sm:$0xff] }
 0x687   : > { %8048 = vst.msk [vmem:[%s14144_s11] sm:$0xff] %vm8047_vm3, %v8015_v33  ;;  %v10697_v48 = vadd.f32 %v14138_v27, %v5933_v39  ;;  %v15466_v33 = vld [vmem:[#allocation17_spill] sm:$0xff] }
 0x688   : > { %v8018_v34 = vmul.f32 %v10696_v40, %v15451_v35 }
 0x689   : > { %v8017_v18 = vmul.f32 %v10697_v48, %v15452_v21  ;;  %v10202_v59 = vpop.f32.mrb[36].mxu1 }
 0x68a   : > { %8051 = vst.msk [vmem:[%s14144_s11 + $0x18] sm:$0xff] %vm8047_vm3, %v8018_v34  ;;  %v10698_v58 = vadd.f32 %v10202_v59, %v14138_v27  ;;  %v5945_v7 = vpop.f32.mrb[37].mxu1  ;;  %v15467_v34 = vld [vmem:[#allocation102_spill] sm:$0xff] }
 0x68b   : > { %8050 = vst.msk [vmem:[%s14144_s11 + $0x10] sm:$0xff] %vm8047_vm3, %v8017_v18  ;;  %v10699_v2 = vadd.f32 %v14138_v27, %v5945_v7  ;;  %v15468_v18 = vld [vmem:[#allocation16_spill] sm:$0xff] }
 0x68c   : > { %v8020_v9 = vmul.f32 %v10698_v58, %v15453_v54 }
 0x68d   : > { %v8019_v23 = vmul.f32 %v10699_v2, %v15454_v8  ;;  %v10205_v12 = vpop.f32.mrb[38].mxu1 }
 0x68e   : > { %8053 = vst.msk [vmem:[%s14144_s11 + $0x28] sm:$0xff] %vm8047_vm3, %v8020_v9  ;;  %v10700_v60 = vadd.f32 %v10205_v12, %v14138_v27  ;;  %v5957_v51 = vpop.f32.mrb[39].mxu1  ;;  %v15469_v9 = vld [vmem:[#allocation103_spill] sm:$0xff] }
 0x68f   : > { %8052 = vst.msk [vmem:[%s14144_s11 + $0x20] sm:$0xff] %vm8047_vm3, %v8019_v23  ;;  %v10701_v20 = vadd.f32 %v14138_v27, %v5957_v51  ;;  %v15470_v23 = vld [vmem:[#allocation20_spill] sm:$0xff] }
 0x690   : > { %v8022_v3 = vmul.f32 %v10700_v60, %v15455_v53 }
 0x691   : > { %v8021_v19 = vmul.f32 %v10701_v20, %v15456_v6  ;;  %v10208_v55 = vpop.f32.mrb[40].mxu1 }
 0x692   : > { %8055 = vst.msk [vmem:[%s14144_s11 + $0x38] sm:$0xff] %vm8047_vm3, %v8022_v3  ;;  %v10702_v13 = vadd.f32 %v10208_v55, %v14138_v27  ;;  %v5969_v63 = vpop.f32.mrb[41].mxu1  ;;  %v15471_v3 = vld [vmem:[#allocation106_spill] sm:$0xff] }
 0x693   : > { %8054 = vst.msk [vmem:[%s14144_s11 + $0x30] sm:$0xff] %vm8047_vm3, %v8021_v19  ;;  %v10703_v50 = vadd.f32 %v14138_v27, %v5969_v63  ;;  %v15472_v19 = vld [vmem:[#allocation19_spill] sm:$0xff] }
 0x694   : > { %v8024_v38 = vmul.f32 %v10702_v13, %v15457_v47 }
 0x695   : > { %v8023_v1 = vmul.f32 %v10703_v50, %v15458_v52  ;;  %v10211_v42 = vpop.f32.mrb[42].mxu1 }
 0x696   : > { %8057 = vst.msk [vmem:[%s14144_s11 + $0x48] sm:$0xff] %vm8047_vm3, %v8024_v38  ;;  %v10704_v17 = vadd.f32 %v10211_v42, %v14138_v27  ;;  %v5981_v4 = vpop.f32.mrb[43].mxu1  ;;  %v15473_v38 = vld [vmem:[#allocation107_spill] sm:$0xff] }
 0x697   : > { %8056 = vst.msk [vmem:[%s14144_s11 + $0x40] sm:$0xff] %vm8047_vm3, %v8023_v1  ;;  %v10705_v32 = vadd.f32 %v14138_v27, %v5981_v4  ;;  %v15474_v1 = vld [vmem:[#allocation3_spill] sm:$0xff] }
 0x698   : > { %v8026_v14 = vmul.f32 %v10704_v17, %v15459_v5 }
 0x699   : > { %v8025_v10 = vmul.f32 %v10705_v32, %v15460_v30  ;;  %v10214_v11 = vpop.f32.mrb[44].mxu1 }
 0x69a   : > { %8059 = vst.msk [vmem:[%s14144_s11 + $0x58] sm:$0xff] %vm8047_vm3, %v8026_v14  ;;  %v10706_v22 = vadd.f32 %v10214_v11, %v14138_v27  ;;  %v5993_v25 = vpop.f32.mrb[45].mxu1  ;;  %v15475_v14 = vld [vmem:[#allocation110_spill] sm:$0xff] }
 0x69b   : > { %8058 = vst.msk [vmem:[%s14144_s11 + $0x50] sm:$0xff] %vm8047_vm3, %v8025_v10  ;;  %v10707_v36 = vadd.f32 %v14138_v27, %v5993_v25  ;;  %v15476_v10 = vld [vmem:[#allocation28_spill] sm:$0xff] }
 0x69c   : > { %v8028_v56 = vmul.f32 %v10706_v22, %v15461_v15 }
 0x69d   : > { %v8027_v49 = vmul.f32 %v10707_v36, %v15462_v29  ;;  %v10217_v44 = vpop.f32.mrb[46].mxu1 }
 0x69e   : > { %8061 = vst.msk [vmem:[%s14144_s11 + $0x68] sm:$0xff] %vm8047_vm3, %v8028_v56  ;;  %v10708_v28 = vadd.f32 %v10217_v44, %v14138_v27  ;;  %v6005_v26 = vpop.f32.mrb[47].mxu1  ;;  %v15477_v56 = vld [vmem:[#allocation111_spill] sm:$0xff] }
 0x69f   : > { %8060 = vst.msk [vmem:[%s14144_s11 + $0x60] sm:$0xff] %vm8047_vm3, %v8027_v49  ;;  %v10709_v45 = vadd.f32 %v14138_v27, %v6005_v26  ;;  %v15478_v49 = vld [vmem:[#allocation26_spill] sm:$0xff] }
 0x6a0   : > { %v8030_v41 = vmul.f32 %v10708_v28, %v15463_v46 }
 0x6a1   : > { %v8029_v62 = vmul.f32 %v10709_v45, %v15464_v16  ;;  %v10220_v43 = vpop.f32.mrb[48].mxu1 }
 0x6a2   : > { %8063 = vst.msk [vmem:[%s14144_s11 + $0x78] sm:$0xff] %vm8047_vm3, %v8030_v41  ;;  %v10710_v24 = vadd.f32 %v10220_v43, %v14138_v27  ;;  %v6017_v61 = vpop.f32.mrb[49].mxu1  ;;  %v15479_v41 = vld [vmem:[#allocation25_spill] sm:$0xff] }
 0x6a3   : > { %8062 = vst.msk [vmem:[%s14144_s11 + $0x70] sm:$0xff] %vm8047_vm3, %v8029_v62  ;;  %v10711_v31 = vadd.f32 %v14138_v27, %v6017_v61  ;;  %v15480_v62 = vld [vmem:[#allocation31_spill] sm:$0xff] }
 0x6a4   : > { %v8032_v37 = vmul.f32 %v10710_v24, %v15465_v0 }
 0x6a5   : > { %v8031_v57 = vmul.f32 %v10711_v31, %v15466_v33  ;;  %v10223_v40 = vpop.f32.mrb[50].mxu1 }
 0x6a6   : > { %8065 = vst.msk [vmem:[%s14144_s11 + $0x88] sm:$0xff] %vm8047_vm3, %v8032_v37  ;;  %v10712_v39 = vadd.f32 %v10223_v40, %v14138_v27  ;;  %v6029_v48 = vpop.f32.mrb[51].mxu1 }
 0x6a7   : > { %8064 = vst.msk [vmem:[%s14144_s11 + $0x80] sm:$0xff] %vm8047_vm3, %v8031_v57  ;;  %v10713_v35 = vadd.f32 %v14138_v27, %v6029_v48 }
 0x6a8   : > { %v8034_v21 = vmul.f32 %v10712_v39, %v15467_v34 }
 0x6a9   : > { %v8033_v59 = vmul.f32 %v10713_v35, %v15468_v18  ;;  %v10226_v58 = vpop.f32.mrb[52].mxu1 }
 0x6aa   : > { %8067 = vst.msk [vmem:[%s14144_s11 + $0x98] sm:$0xff] %vm8047_vm3, %v8034_v21  ;;  %v10714_v7 = vadd.f32 %v10226_v58, %v14138_v27  ;;  %v6041_v2 = vpop.f32.mrb[53].mxu1 }
 0x6ab   : > { %8066 = vst.msk [vmem:[%s14144_s11 + $0x90] sm:$0xff] %vm8047_vm3, %v8033_v59  ;;  %v10715_v54 = vadd.f32 %v14138_v27, %v6041_v2 }
 0x6ac   : > { %v8036_v8 = vmul.f32 %v10714_v7, %v15469_v9 }
 0x6ad   : > { %v8035_v12 = vmul.f32 %v10715_v54, %v15470_v23  ;;  %v10229_v60 = vpop.f32.mrb[54].mxu1 }
 0x6ae   : > { %8069 = vst.msk [vmem:[%s14144_s11 + $0xa8] sm:$0xff] %vm8047_vm3, %v8036_v8  ;;  %v10716_v51 = vadd.f32 %v10229_v60, %v14138_v27  ;;  %v6053_v20 = vpop.f32.mrb[55].mxu1 }
 0x6af   : > { %8068 = vst.msk [vmem:[%s14144_s11 + $0xa0] sm:$0xff] %vm8047_vm3, %v8035_v12  ;;  %v10717_v53 = vadd.f32 %v14138_v27, %v6053_v20 }
 0x6b0   : > { %v8038_v6 = vmul.f32 %v10716_v51, %v15471_v3 }
 0x6b1   : > { %v8037_v55 = vmul.f32 %v10717_v53, %v15472_v19  ;;  %v10232_v13 = vpop.f32.mrb[56].mxu1 }
 0x6b2   : > { %8071 = vst.msk [vmem:[%s14144_s11 + $0xb8] sm:$0xff] %vm8047_vm3, %v8038_v6  ;;  %v10718_v63 = vadd.f32 %v10232_v13, %v14138_v27  ;;  %v6065_v50 = vpop.f32.mrb[57].mxu1 }
 0x6b3   : > { %8070 = vst.msk [vmem:[%s14144_s11 + $0xb0] sm:$0xff] %vm8047_vm3, %v8037_v55  ;;  %v10719_v47 = vadd.f32 %v14138_v27, %v6065_v50 }
 0x6b4   : > { %v8040_v52 = vmul.f32 %v10718_v63, %v15473_v38 }
 0x6b5   : > { %v8039_v42 = vmul.f32 %v10719_v47, %v15474_v1  ;;  %v10235_v17 = vpop.f32.mrb[58].mxu1 }
 0x6b6   : > { %8073 = vst.msk [vmem:[%s14144_s11 + $0xc8] sm:$0xff] %vm8047_vm3, %v8040_v52  ;;  %v10720_v4 = vadd.f32 %v10235_v17, %v14138_v27  ;;  %v6077_v32 = vpop.f32.mrb[59].mxu1 }
 0x6b7   : > { %8072 = vst.msk [vmem:[%s14144_s11 + $0xc0] sm:$0xff] %vm8047_vm3, %v8039_v42  ;;  %v10721_v5 = vadd.f32 %v14138_v27, %v6077_v32 }
 0x6b8   : > { %v8042_v30 = vmul.f32 %v10720_v4, %v15475_v14 }
 0x6b9   : > { %v8041_v11 = vmul.f32 %v10721_v5, %v15476_v10  ;;  %v10238_v22 = vpop.f32.mrb[60].mxu1 }
 0x6ba   : > { %8075 = vst.msk [vmem:[%s14144_s11 + $0xd8] sm:$0xff] %vm8047_vm3, %v8042_v30  ;;  %v10722_v25 = vadd.f32 %v10238_v22, %v14138_v27  ;;  %v6089_v36 = vpop.f32.mrb[61].mxu1 }
 0x6bb   : > { %8074 = vst.msk [vmem:[%s14144_s11 + $0xd0] sm:$0xff] %vm8047_vm3, %v8041_v11  ;;  %v10723_v15 = vadd.f32 %v14138_v27, %v6089_v36 }
 0x6bc   : > { %v8044_v29 = vmul.f32 %v10722_v25, %v15477_v56 }
 0x6bd   : > { %v8043_v44 = vmul.f32 %v10723_v15, %v15478_v49  ;;  %v10241_v28 = vpop.f32.mrb[62].mxu1  ;;  %8086 = sbr.rel (!%p11639_p4) target bundleno = 1788 (0x6fc), region = 52 }
 0x6be   : > { %8077 = vst.msk [vmem:[%s14144_s11 + $0xe8] sm:$0xff] %vm8047_vm3, %v8044_v29  ;;  %v10724_v26 = vadd.f32 %v10241_v28, %v14138_v27  ;;  %v6101_v45 = vpop.f32.mrb[63].mxu1 }
 0x6bf   : > { %8076 = vst.msk [vmem:[%s14144_s11 + $0xe0] sm:$0xff] %vm8047_vm3, %v8043_v44  ;;  %v10725_v46 = vadd.f32 %v14138_v27, %v6101_v45 }
 0x6c0   : > { %v8046_v16 = vmul.f32 %v10724_v26, %v15479_v41 }
 0x6c1   : > { %v8045_v43 = vmul.f32 %v10725_v46, %v15480_v62 }
 0x6c2   : > { %8079 = vst.msk [vmem:[%s14144_s11 + $0xf8] sm:$0xff] %vm8047_vm3, %v8046_v16 }
 0x6c3   : > { %8078 = vst.msk [vmem:[%s14144_s11 + $0xf0] sm:$0xff] %vm8047_vm3, %v8045_v43 }
 0x6c4   : > { %s15490_s24 = smov (!%p8089_p8, %s8088_s24), 32 }
 0x6c5   : > { %s8430_s17 = sshll.u32 %s15490_s24, 7 }
 0x6c6   : > { %p8433_p9 = scmp.eq.s32.totalorder %s8430_s17, 0 }
 0x6c7   : > { %s14283_s18 = sshrl.u32 (!%p8433_p9), %s15490_s24, 5 }
 0x6c8   : > { %8097 = sbr.rel (%p8433_p9) target bundleno = 1788 (0x6fc), region = 56  ;;  %p8434_p10 = scmp.le.s32.totalorder (!%p8433_p9), %s14283_s18, 0 }
 0x6cf   : > { %8375 = sbr.rel (%p8434_p10) target bundleno = 1767 (0x6e7), region = 132  ;;  %s15481_s27 = smov (!%p8434_p10), %s14277_s15 }
 0x6d0   : > { %s15482_s9 = smov (!%p8434_p10), %s14144_s11  ;;  %s14292_s16 = smov (!%p8434_p10), 0  }
 0x6d1   : > { %s14294_s19 = smov (!%p8434_p10), 0  }
 0x6d6 LB: >> { %v8221_v27 = vld [vmem:[%s11548_s9] sm:$0xff]  ;;  %v8223_v24 = vld [vmem:[%s11548_s9 + $0x8] sm:$0xff]  ;;  %v8225_v61 = vld [vmem:[%s11548_s9 + $0x10] sm:$0xff]  ;;  %s8285_s20 = sadd.s32 1, %s11552_s16  ;;  %s8215_s19 = sadd.s32 1, %s11556_s19   ;;  %s11556_s19 = sphi %s14294_s19, %s8215_s19   ;;  %s11552_s16 = sphi %s14292_s16, %s15485_s16   ;;  %s11548_s9 = sphi %s15482_s9, %s15484_s9   ;;  %s11544_s27 = sphi %s15481_s27, %s15483_s27  }
 0x6d7   : >> { %8222 = vst [vmem:[%s11544_s27] sm:$0xff] %v8221_v27  ;;  %8224 = vst [vmem:[%s11544_s27 + $0x8] sm:$0xff] %v8223_v24  ;;  %v8227_v31 = vld [vmem:[%s11548_s9 + $0x18] sm:$0xff]  ;;  %v8229_v0 = vld [vmem:[%s11548_s9 + $0x20] sm:$0xff]  ;;  %p8286_p11 = scmp.ge.s32.totalorder %s8285_s20, %s14283_s18  ;;  %p8214_p12 = scmp.ge.s32.totalorder %s8215_s19, %s14283_s18 }
 0x6d8   : >> { %8226 = vst [vmem:[%s11544_s27 + $0x10] sm:$0xff] %v8225_v61  ;;  %v8231_v37 = vld [vmem:[%s11548_s9 + $0x28] sm:$0xff]  ;;  %8228 = vst [vmem:[%s11544_s27 + $0x18] sm:$0xff] %v8227_v31  ;;  %v8233_v33 = vld [vmem:[%s11548_s9 + $0x30] sm:$0xff] }
 0x6d9   : >> { %8230 = vst [vmem:[%s11544_s27 + $0x20] sm:$0xff] %v8229_v0  ;;  %8232 = vst [vmem:[%s11544_s27 + $0x28] sm:$0xff] %v8231_v37  ;;  %v8235_v57 = vld [vmem:[%s11548_s9 + $0x38] sm:$0xff]  ;;  %v8237_v40 = vld [vmem:[%s11548_s9 + $0x40] sm:$0xff]  ;;  %s15492_s20 = smov (%p8286_p11, %s8285_s20), 0 }
 0x6da   : >> { %8234 = vst [vmem:[%s11544_s27 + $0x30] sm:$0xff] %v8233_v33  ;;  %8236 = vst [vmem:[%s11544_s27 + $0x38] sm:$0xff] %v8235_v57  ;;  %v8239_v39 = vld [vmem:[%s11548_s9 + $0x48] sm:$0xff]  ;;  %v8241_v48 = vld [vmem:[%s11548_s9 + $0x50] sm:$0xff]  ;;  %s8435_s21 = sshll.u32 %s15492_s20, 8  ;;  %s15485_s16 = smov %s15492_s20 }
 0x6db   : >> { %8238 = vst [vmem:[%s11544_s27 + $0x40] sm:$0xff] %v8237_v40  ;;  %v8243_v35 = vld [vmem:[%s11548_s9 + $0x58] sm:$0xff]  ;;  %8240 = vst [vmem:[%s11544_s27 + $0x48] sm:$0xff] %v8239_v39  ;;  %v8245_v34 = vld [vmem:[%s11548_s9 + $0x60] sm:$0xff]  ;;  %s14350_s22 = scalar_lea.vmem %s14144_s11, %s8435_s21 [#allocation2]   ;;  %s8291_s23 = scalar_lea.vmem %s14277_s15, %s8435_s21  }
 0x6dc   : >> { %8242 = vst [vmem:[%s11544_s27 + $0x50] sm:$0xff] %v8241_v48  ;;  %8244 = vst [vmem:[%s11544_s27 + $0x58] sm:$0xff] %v8243_v35  ;;  %v8247_v21 = vld [vmem:[%s11548_s9 + $0x68] sm:$0xff]  ;;  %v8249_v18 = vld [vmem:[%s11548_s9 + $0x70] sm:$0xff] }
 0x6dd   : >> { %8246 = vst [vmem:[%s11544_s27 + $0x60] sm:$0xff] %v8245_v34  ;;  %8248 = vst [vmem:[%s11544_s27 + $0x68] sm:$0xff] %v8247_v21  ;;  %v8251_v59 = vld [vmem:[%s11548_s9 + $0x78] sm:$0xff]  ;;  %v8253_v58 = vld [vmem:[%s11548_s9 + $0x80] sm:$0xff] }
 0x6de   : >> { %8250 = vst [vmem:[%s11544_s27 + $0x70] sm:$0xff] %v8249_v18  ;;  %v8255_v7 = vld [vmem:[%s11548_s9 + $0x88] sm:$0xff]  ;;  %8252 = vst [vmem:[%s11544_s27 + $0x78] sm:$0xff] %v8251_v59  ;;  %v8257_v2 = vld [vmem:[%s11548_s9 + $0x90] sm:$0xff] }
 0x6df   : >> { %8254 = vst [vmem:[%s11544_s27 + $0x80] sm:$0xff] %v8253_v58  ;;  %8256 = vst [vmem:[%s11544_s27 + $0x88] sm:$0xff] %v8255_v7  ;;  %v8259_v54 = vld [vmem:[%s11548_s9 + $0x98] sm:$0xff]  ;;  %v8261_v9 = vld [vmem:[%s11548_s9 + $0xa0] sm:$0xff] }
 0x6e0   : >> { %8258 = vst [vmem:[%s11544_s27 + $0x90] sm:$0xff] %v8257_v2  ;;  %8260 = vst [vmem:[%s11544_s27 + $0x98] sm:$0xff] %v8259_v54  ;;  %v8263_v8 = vld [vmem:[%s11548_s9 + $0xa8] sm:$0xff]  ;;  %v8265_v23 = vld [vmem:[%s11548_s9 + $0xb0] sm:$0xff]  ;;  %8217 = sbr.rel (!%p8214_p12) target bundleno = 1750 (0x6d6), region = 138 }
 0x6e1   : >> { %8262 = vst [vmem:[%s11544_s27 + $0xa0] sm:$0xff] %v8261_v9  ;;  %v8267_v12 = vld [vmem:[%s11548_s9 + $0xb8] sm:$0xff]  ;;  %8264 = vst [vmem:[%s11544_s27 + $0xa8] sm:$0xff] %v8263_v8  ;;  %v8269_v60 = vld [vmem:[%s11548_s9 + $0xc0] sm:$0xff] }
 0x6e2   : >> { %8266 = vst [vmem:[%s11544_s27 + $0xb0] sm:$0xff] %v8265_v23  ;;  %8268 = vst [vmem:[%s11544_s27 + $0xb8] sm:$0xff] %v8267_v12  ;;  %v8271_v51 = vld [vmem:[%s11548_s9 + $0xc8] sm:$0xff]  ;;  %v8273_v20 = vld [vmem:[%s11548_s9 + $0xd0] sm:$0xff] }
 0x6e3   : >> { %8270 = vst [vmem:[%s11544_s27 + $0xc0] sm:$0xff] %v8269_v60  ;;  %8272 = vst [vmem:[%s11544_s27 + $0xc8] sm:$0xff] %v8271_v51  ;;  %v8275_v53 = vld [vmem:[%s11548_s9 + $0xd8] sm:$0xff]  ;;  %v8277_v3 = vld [vmem:[%s11548_s9 + $0xe0] sm:$0xff] }
 0x6e4   : >> { %8274 = vst [vmem:[%s11544_s27 + $0xd0] sm:$0xff] %v8273_v20  ;;  %v8279_v6 = vld [vmem:[%s11548_s9 + $0xe8] sm:$0xff]  ;;  %8276 = vst [vmem:[%s11544_s27 + $0xd8] sm:$0xff] %v8275_v53  ;;  %v8281_v19 = vld [vmem:[%s11548_s9 + $0xf0] sm:$0xff] }
 0x6e5   : >> { %8278 = vst [vmem:[%s11544_s27 + $0xe0] sm:$0xff] %v8277_v3  ;;  %8280 = vst [vmem:[%s11544_s27 + $0xe8] sm:$0xff] %v8279_v6  ;;  %v8283_v55 = vld [vmem:[%s11548_s9 + $0xf8] sm:$0xff]  ;;  %s15484_s9 = smov %s14350_s22 }
 0x6e6   : >> { %8282 = vst [vmem:[%s11544_s27 + $0xf0] sm:$0xff] %v8281_v19  ;;  %8284 = vst [vmem:[%s11544_s27 + $0xf8] sm:$0xff] %v8283_v55  ;;  %s15483_s27 = smov %s8291_s23 }
 0x6e7 PF: > { %s14391_s26 = sand.u32 31, %s15490_s24   ;;  %s8446_s29 = sshll.u32 %s14283_s18, 8 }
 0x6e8   : > { %s8296_s30 = scalar_lea.vmem %s14144_s11, %s8446_s29 [#allocation2]   ;;  %s8298_s10 = scalar_lea.vmem %s14277_s15, %s8446_s29  }
 0x6e9   : > { %p8440_p13 = scmp.le.s32.totalorder %s14391_s26, 0 }
 0x6ea   : > { %s11558_s12 = smov (!%p8440_p13), %s8298_s10   ;;  %s11562_s13 = smov (!%p8440_p13), %s8296_s30  }
 0x6eb   : > { %8389 = sbr.rel (%p8440_p13) target bundleno = 1788 (0x6fc), region = 143  ;;  %s11566_s14 = smov (!%p8440_p13), 0  }
 0x6ec   : > { %s11570_s17 = smov (!%p8440_p13), 0  }
 0x6f2 LB: >> { %v8308_v13 = vld [vmem:[%s11564_s13] sm:$0xff]  ;;  %s8310_s24 = sadd.s32 1, %s11568_s14  ;;  %s8302_s17 = sadd.s32 1, %s11572_s17   ;;  %s11572_s17 = sphi %s11570_s17, %s8302_s17   ;;  %s11568_s14 = sphi %s11566_s14, %s11567_s14   ;;  %s11564_s13 = sphi %s11562_s13, %s8315_s13   ;;  %s11560_s12 = sphi %s11558_s12, %s8316_s12  }
 0x6f3   : >> { %8309 = vst [vmem:[%s11560_s12] sm:$0xff] %v8308_v13  ;;  %p8311_p0 = scmp.ge.s32.totalorder %s8310_s24, %s14391_s26  ;;  %p8301_p1 = scmp.ge.s32.totalorder %s8302_s17, %s14391_s26 }
 0x6f5   : >> { %s15494_s24 = smov (%p8311_p0, %s8310_s24), 0  ;;  %8304 = sbr.rel (!%p8301_p1) target bundleno = 1778 (0x6f2), region = 149 }
 0x6f6   : >> { %s8441_s11 = sshll.u32 %s15494_s24, 3  ;;  %s11567_s14 = smov %s15494_s24  }
 0x6f7   : >> { %s8315_s13 = scalar_lea.vmem %s8296_s30, %s8441_s11 [#allocation2]   ;;  %s8316_s12 = scalar_lea.vmem %s8298_s10, %s8441_s11  }
 0x6fc PF: > { %p14_p2 = scmp.ge.s32.totalorder %s11629_s28, 6   ;;  %s15486_s24 = smov %s11536_s25 }
 0x6fd   : > { %s15487_s25 = smov %s11637_s8  ;;  %s15488_s26 = smov %s11629_s28 }
 0x6fe   :  { %16 = sbr.rel (!%p14_p2) target bundleno = 2 (0x2), region = 160 }

</bundles_post_ra>
